<compile_context>
chip_gen: v5e
topology: v5e:2x2
jax: 0.10.0
libtpu: 0.0.40
codegen_flags: <defaults>
</compile_context>

<pallas_src>
import jax
import jax.numpy as jnp
from jax import lax
from jax.experimental import pallas as pl
from jax.experimental.pallas import tpu as pltpu  # noqa: F401  (TPU backend)

# ------------------------- small synthetic config --------------------------
VOCAB = 100
VOCAB_PAD = 128      # word-embedding table padded to 128 rows (lane-dense onehot)
MAX_POS = 64
HIDDEN = 32          # transformer hidden size
N_HEADS = 4
HEAD_DIM = HIDDEN // N_HEADS
FFN = 64             # transformer FFN intermediate size
N_LAYERS = 2         # number of DistilBERT-style blocks
CLS_HIDDEN = 128     # nn.Linear(hidden, 128)
NUM_CLASSES = 3
CLS_PAD = 128        # lane-dense padded width of the classifier output
LN_EPS = 1e-12

BATCH = 2
SEQ = 8
TOKENS = BATCH * SEQ
GROUPS = N_HEADS * BATCH   # merged (head, batch) attention batch axis


# ------------------------------ kernel helpers ------------------------------
def _gelu_tanh(x):
    # TODO(synk): HF DistilBERT uses erf-GELU; tanh approximation is ~1e-3 close
    # and lowers cleanly onto the EUP.
    c = 0.7978845608028654  # sqrt(2/pi)
    return 0.5 * x * (1.0 + jnp.tanh(c * (x + 0.044715 * x * x * x)))


def _layernorm(x, g, b):
    mean = jnp.mean(x, axis=-1, keepdims=True)
    xc = x - mean
    var = jnp.mean(xc * xc, axis=-1, keepdims=True)
    return xc * lax.rsqrt(var + LN_EPS) * g + b


# ------------------------------ fused kernel --------------------------------
def _fused_forward_kernel(
    ids_ref,      # [T, 1]               int32 token ids (T = B*S)
    mask_ref,     # [B, S]               f32 attention mask (1 = keep)
    wemb_ref,     # [VOCAB_PAD, H]       bf16 word embeddings (rows >= VOCAB zero)
    pos_ref,      # [MAX_POS, H]         f32 positional embeddings
    embln_ref,    # [2, H]               f32 embedding LayerNorm (gamma, beta)
    wqkv_ref,     # [L*3*NH, H, HD]      bf16 per-head Q/K/V weights (Q pre-scaled)
    bqkv_ref,     # [L*3*NH, HD]         f32 per-head Q/K/V biases (Q pre-scaled)
    wo_ref,       # [L, H, H]            bf16 attention output projection
    vecs_ref,     # [L, 6, H]            f32: bo, ln1_g, ln1_b, ff2_b, ln2_g, ln2_b
    ff1w_ref,     # [L, H, FFN]          bf16
    ff1b_ref,     # [L, 1, FFN]          f32
    ff2w_ref,     # [L, FFN, H]          bf16
    cls1w_ref,    # [H, CLS_HIDDEN]      bf16
    cls2w_ref,    # [CLS_HIDDEN, CLS_PAD] bf16 (cols >= NUM_CLASSES are zero)
    clsb_ref,     # [2, CLS_PAD]         f32: cls1_b, cls2_b
    out_ref,      # [B, CLS_PAD]         f32 logits (lane-dense)
):
    # ---- embedding gather as one-hot matmul (MXU is otherwise idle) ----
    ids = ids_ref[...]                                           # [T, 1] int32
    iota = lax.broadcasted_iota(jnp.int32, (TOKENS, VOCAB_PAD), 1)
    onehot = (iota == ids).astype(jnp.bfloat16)                  # [T, VOCAB_PAD]
    emb = jnp.dot(onehot, wemb_ref[...],
                  preferred_element_type=jnp.float32)            # [T, H] f32
    pos = pos_ref[0:SEQ, :]                                      # [S, H]
    x = (emb.reshape(BATCH, SEQ, HIDDEN) + pos[None, :, :]).reshape(TOKENS, HIDDEN)
    x = _layernorm(x, embln_ref[0], embln_ref[1])                # embedding LN

    # ---- additive key-mask bias, built once, replicated over heads ----
    bias_b = ((1.0 - mask_ref[...]) * -1e9).reshape(BATCH, 1, SEQ)
    bias_g = jnp.broadcast_to(bias_b[None],
                              (N_HEADS, BATCH, 1, SEQ)).reshape(GROUPS, 1, SEQ)

    for l in range(N_LAYERS):                                    # unrolled (L = 2)
        xb = x.astype(jnp.bfloat16)

        # per-head Q/K/V projections: no lane-offset slicing, weights are
        # already stored per head; stack heads on a leading axis.
        def proj(j):
            heads = []
            for h in range(N_HEADS):
                idx = (l * 3 + j) * N_HEADS + h
                ph = jnp.dot(xb, wqkv_ref[idx],
                             preferred_element_type=jnp.float32)  # [T, HD]
                ph = ph + bqkv_ref[idx]
                heads.append(ph.reshape(BATCH, SEQ, HEAD_DIM))
            return jnp.stack(heads, axis=0).reshape(GROUPS, SEQ, HEAD_DIM)

        qg, kg, vg = proj(0), proj(1), proj(2)                   # [G, S, HD]

        # one batched score matmul + ONE softmax for all (head, batch) pairs
        s = jnp.einsum('gqd,gkd->gqk',
                       qg.astype(jnp.bfloat16), kg.astype(jnp.bfloat16),
                       preferred_element_type=jnp.float32)        # [G, S, S]
        s = s + bias_g
        m = jnp.max(s, axis=-1, keepdims=True)
        p = jnp.exp(s - m)
        # TODO(synk): approx reciprocal (EUP) — use exact divide if bit-closeness
        # to the PyTorch softmax is required.
        p = p * pl.reciprocal(jnp.sum(p, axis=-1, keepdims=True), approx=True)
        ctx = jnp.einsum('gqk,gkd->gqd',
                         p.astype(jnp.bfloat16), vg.astype(jnp.bfloat16),
                         preferred_element_type=jnp.float32)      # [G, S, HD]
        ctx = ctx.reshape(N_HEADS, TOKENS, HEAD_DIM)

        # output projection folded per head (sum over heads == concat @ Wo)
        wo_l = wo_ref[l]                                          # [H, H] bf16
        attn = jnp.zeros((TOKENS, HIDDEN), jnp.float32)
        for h in range(N_HEADS):
            attn = attn + jnp.dot(ctx[h].astype(jnp.bfloat16),
                                  wo_l[h * HEAD_DIM:(h + 1) * HEAD_DIM, :],
                                  preferred_element_type=jnp.float32)
        attn = attn + vecs_ref[l, 0]                              # bo
        x = _layernorm(x + attn, vecs_ref[l, 1], vecs_ref[l, 2])  # ln1

        # ---- FFN ----
        hmid = jnp.dot(x.astype(jnp.bfloat16), ff1w_ref[l],
                       preferred_element_type=jnp.float32)        # [T, FFN]
        hmid = _gelu_tanh(hmid + ff1b_ref[l])
        ffn = jnp.dot(hmid.astype(jnp.bfloat16), ff2w_ref[l],
                      preferred_element_type=jnp.float32)         # [T, H]
        ffn = ffn + vecs_ref[l, 3]                                # ff2_b
        x = _layernorm(x + ffn, vecs_ref[l, 4], vecs_ref[l, 5])   # ln2

    # ---- classifier head on the CLS rows only (Linear -> ReLU -> Linear) ----
    # TODO(synk): dropout layers are eval-mode identities (not applied).
    cls_x = x.reshape(BATCH, SEQ, HIDDEN)[:, 0, :]                # [B, H]
    h1 = jnp.dot(cls_x.astype(jnp.bfloat16), cls1w_ref[...],
                 preferred_element_type=jnp.float32)
    h1 = jnp.maximum(h1 + clsb_ref[0], 0.0)                       # [B, CLS_HIDDEN]
    logits = jnp.dot(h1.astype(jnp.bfloat16), cls2w_ref[...],
                     preferred_element_type=jnp.float32)
    out_ref[...] = logits + clsb_ref[1]                           # [B, CLS_PAD]


def fused_forward(params, input_ids, attention_mask):
    """input_ids:[B,S] int, attention_mask:[B,S] -> [B, NUM_CLASSES] f32."""
    assert input_ids.shape == (BATCH, SEQ)
    ids = input_ids.reshape(TOKENS, 1).astype(jnp.int32)
    mask = attention_mask.astype(jnp.float32)

    # Single ungridded pallas_call: whole model (<100 KB) + activations are
    # VMEM-resident; no grid means zero per-step invocation overhead.
    out = pl.pallas_call(
        _fused_forward_kernel,
        out_shape=jax.ShapeDtypeStruct((BATCH, CLS_PAD), jnp.float32),
    )(
        ids, mask,
        params["word_emb"], params["pos_emb"], params["emb_ln"],
        params["wqkv"], params["bqkv"], params["wo"], params["vecs"],
        params["ff1_w"], params["ff1_b"], params["ff2_w"],
        params["cls1_w"], params["cls2_w"], params["cls_b"],
    )
    return out[:, :NUM_CLASSES]


# ----------------------------- model definition -----------------------------
def init_params(key):
    # TODO(synk): the original module loads pretrained DistilBERT weights;
    # here the same architecture (at reduced size) uses random init.
    ks = jax.random.split(key, 10)

    def w(k, shape):
        return jax.random.normal(k, shape, jnp.float32) * 0.02

    scale = 1.0 / (HEAD_DIM ** 0.5)

    word_emb = jnp.zeros((VOCAB_PAD, HIDDEN), jnp.float32)
    word_emb = word_emb.at[:VOCAB].set(w(ks[0], (VOCAB, HIDDEN)))

    # Q/K/V weights; 1/sqrt(head_dim) folded into Q weights + biases at init.
    wq = w(ks[2], (N_LAYERS, HIDDEN, HIDDEN)) * scale
    wk = w(ks[3], (N_LAYERS, HIDDEN, HIDDEN))
    wv = w(ks[4], (N_LAYERS, HIDDEN, HIDDEN))
    bq = jnp.zeros((N_LAYERS, HIDDEN), jnp.float32) * scale
    bk = jnp.zeros((N_LAYERS, HIDDEN), jnp.float32)
    bv = jnp.zeros((N_LAYERS, HIDDEN), jnp.float32)

    def to_heads_w(m):   # [L, H, H] -> [L, NH, H, HD]
        return m.reshape(N_LAYERS, HIDDEN, N_HEADS, HEAD_DIM).transpose(0, 2, 1, 3)

    def to_heads_b(b):   # [L, H] -> [L, NH, HD]
        return b.reshape(N_LAYERS, N_HEADS, HEAD_DIM)

    wqkv = jnp.stack([to_heads_w(wq), to_heads_w(wk), to_heads_w(wv)], axis=1)
    wqkv = wqkv.reshape(N_LAYERS * 3 * N_HEADS, HIDDEN, HEAD_DIM).astype(jnp.bfloat16)
    bqkv = jnp.stack([to_heads_b(bq), to_heads_b(bk), to_heads_b(bv)], axis=1)
    bqkv = bqkv.reshape(N_LAYERS * 3 * N_HEADS, HEAD_DIM)

    # packed per-layer width-H vectors: bo, ln1_g, ln1_b, ff2_b, ln2_g, ln2_b
    vecs = jnp.stack([
        jnp.zeros((N_LAYERS, HIDDEN), jnp.float32),   # bo
        jnp.ones((N_LAYERS, HIDDEN), jnp.float32),    # ln1_g
        jnp.zeros((N_LAYERS, HIDDEN), jnp.float32),   # ln1_b
        jnp.zeros((N_LAYERS, HIDDEN), jnp.float32),   # ff2_b
        jnp.ones((N_LAYERS, HIDDEN), jnp.float32),    # ln2_g
        jnp.zeros((N_LAYERS, HIDDEN), jnp.float32),   # ln2_b
    ], axis=1)                                        # [L, 6, H]

    cls2_w = jnp.zeros((CLS_HIDDEN, CLS_PAD), jnp.float32)
    cls2_w = cls2_w.at[:, :NUM_CLASSES].set(w(ks[7], (CLS_HIDDEN, NUM_CLASSES)))

    return {
        "word_emb": word_emb.astype(jnp.bfloat16),
        "pos_emb": w(ks[1], (MAX_POS, HIDDEN)),
        "emb_ln": jnp.stack([jnp.ones((HIDDEN,), jnp.float32),
                             jnp.zeros((HIDDEN,), jnp.float32)], axis=0),
        "wqkv": wqkv,
        "bqkv": bqkv,
        "wo": w(ks[5], (N_LAYERS, HIDDEN, HIDDEN)).astype(jnp.bfloat16),
        "vecs": vecs,
        "ff1_w": w(ks[6], (N_LAYERS, HIDDEN, FFN)).astype(jnp.bfloat16),
        "ff1_b": jnp.zeros((N_LAYERS, 1, FFN), jnp.float32),
        "ff2_w": w(ks[8], (N_LAYERS, FFN, HIDDEN)).astype(jnp.bfloat16),
        "cls1_w": w(ks[9], (HIDDEN, CLS_HIDDEN)).astype(jnp.bfloat16),
        "cls2_w": cls2_w.astype(jnp.bfloat16),        # lane-dense; cols >= 3 are 0
        "cls_b": jnp.zeros((2, CLS_PAD), jnp.float32),
    }


def nlp_classifier_forward(params, input_ids, attention_mask=None):
    """Mirror of NLPClassifier.forward (eval mode: dropout = identity)."""
    B_, S_ = input_ids.shape
    if attention_mask is None:
        attention_mask = jnp.ones((B_, S_), jnp.float32)
    return fused_forward(params, input_ids, attention_mask)       # [B, NUM_CLASSES]


# ---------------------------------- main ------------------------------------
if __name__ == "__main__":
    key = jax.random.PRNGKey(0)
    k_params, k_ids = jax.random.split(key)

    params = init_params(k_params)

    input_ids = jax.random.randint(k_ids, (BATCH, SEQ), 0, VOCAB, dtype=jnp.int32)
    attention_mask = jnp.ones((BATCH, SEQ), jnp.float32)
    attention_mask = attention_mask.at[1, 6:].set(0.0)   # pad tail of sample 1

    logits = nlp_classifier_forward(params, input_ids, attention_mask)
    logits = jax.block_until_ready(logits)
    assert logits.shape == (BATCH, NUM_CLASSES)
    assert bool(jnp.all(jnp.isfinite(logits)))
    print("KERNEL_OK")
</pallas_src>

<mosaic_0001>
module attributes {stable_mosaic.version = 11 : i64} {
  func.func @_fused_forward_kernel(%arg0: memref<16x1xi32, #tpu.memory_space<vmem>>, %arg1: memref<2x8xf32, #tpu.memory_space<vmem>>, %arg2: memref<128x32xbf16, #tpu.memory_space<vmem>>, %arg3: memref<64x32xf32, #tpu.memory_space<vmem>>, %arg4: memref<2x32xf32, #tpu.memory_space<vmem>>, %arg5: memref<24x32x8xbf16, #tpu.memory_space<vmem>>, %arg6: memref<24x8xf32, #tpu.memory_space<vmem>>, %arg7: memref<2x32x32xbf16, #tpu.memory_space<vmem>>, %arg8: memref<2x6x32xf32, #tpu.memory_space<vmem>>, %arg9: memref<2x32x64xbf16, #tpu.memory_space<vmem>>, %arg10: memref<2x1x64xf32, #tpu.memory_space<vmem>>, %arg11: memref<2x64x32xbf16, #tpu.memory_space<vmem>>, %arg12: memref<32x128xbf16, #tpu.memory_space<vmem>>, %arg13: memref<128x128xbf16, #tpu.memory_space<vmem>>, %arg14: memref<2x128xf32, #tpu.memory_space<vmem>>, %arg15: memref<2x128xf32, #tpu.memory_space<vmem>>) attributes {dimension_semantics = [], scalar_prefetch = 0 : i64, scratch_operands = 0 : i64, tpu.core_type = #tpu.core_type<tc>} {
    %c0 = arith.constant 0 : index
    %c0_0 = arith.constant 0 : index
    %0 = vector.load %arg0[%c0, %c0_0] : memref<16x1xi32, #tpu.memory_space<vmem>>, vector<16x1xi32>
    %1 = tpu.iota {dimensions = array<i32: 1>} : vector<16x128xi32>
    %2 = vector.broadcast %0 : vector<16x1xi32> to vector<16x128xi32>
    %3 = arith.cmpi eq, %1, %2 : vector<16x128xi32>
    %4 = arith.extui %3 : vector<16x128xi1> to vector<16x128xi32>
    %5 = arith.sitofp %4 : vector<16x128xi32> to vector<16x128xf32>
    %6 = arith.truncf %5 : vector<16x128xf32> to vector<16x128xbf16>
    %c0_1 = arith.constant 0 : index
    %c0_2 = arith.constant 0 : index
    %7 = vector.load %arg2[%c0_1, %c0_2] : memref<128x32xbf16, #tpu.memory_space<vmem>>, vector<128x32xbf16>
    %cst = arith.constant dense<0.000000e+00> : vector<16x32xf32>
    %8 = tpu.matmul %6, %7, %cst {dimension_numbers = #tpu.dot_dimension_numbers<[1], [0], [0], [1], [0, 0, 1, 1], [], []>} : vector<16x128xbf16>, vector<128x32xbf16>, vector<16x32xf32> -> vector<16x32xf32>
    %c0_3 = arith.constant 0 : index
    %c0_4 = arith.constant 0 : index
    %9 = vector.load %arg3[%c0_3, %c0_4] : memref<64x32xf32, #tpu.memory_space<vmem>>, vector<8x32xf32>
    %10 = vector.shape_cast %8 : vector<16x32xf32> to vector<2x8x32xf32>
    %11 = vector.shape_cast %9 : vector<8x32xf32> to vector<1x8x32xf32>
    %12 = vector.broadcast %11 : vector<1x8x32xf32> to vector<2x8x32xf32>
    %13 = arith.addf %10, %12 : vector<2x8x32xf32>
    %14 = vector.shape_cast %13 : vector<2x8x32xf32> to vector<16x32xf32>
    %c0_5 = arith.constant 0 : index
    %c0_6 = arith.constant 0 : index
    %15 = vector.load %arg4[%c0_5, %c0_6] : memref<2x32xf32, #tpu.memory_space<vmem>>, vector<1x32xf32>
    %16 = vector.shape_cast %15 : vector<1x32xf32> to vector<32xf32>
    %c1 = arith.constant 1 : index
    %c0_7 = arith.constant 0 : index
    %17 = vector.load %arg4[%c1, %c0_7] : memref<2x32xf32, #tpu.memory_space<vmem>>, vector<1x32xf32>
    %18 = vector.shape_cast %17 : vector<1x32xf32> to vector<32xf32>
    %cst_8 = arith.constant dense<0.000000e+00> : vector<16xf32>
    %19 = vector.multi_reduction <add>, %14, %cst_8 [1] : vector<16x32xf32> to vector<16xf32>
    %20 = vector.shape_cast %19 : vector<16xf32> to vector<16x1xf32>
    %cst_9 = arith.constant 3.200000e+01 : f32
    %21 = vector.broadcast %cst_9 : f32 to vector<16x1xf32>
    %22 = arith.divf %20, %21 : vector<16x1xf32>
    %23 = vector.broadcast %22 : vector<16x1xf32> to vector<16x32xf32>
    %24 = arith.subf %14, %23 : vector<16x32xf32>
    %25 = arith.mulf %24, %24 : vector<16x32xf32>
    %cst_10 = arith.constant dense<0.000000e+00> : vector<16xf32>
    %26 = vector.multi_reduction <add>, %25, %cst_10 [1] : vector<16x32xf32> to vector<16xf32>
    %27 = vector.shape_cast %26 : vector<16xf32> to vector<16x1xf32>
    %cst_11 = arith.constant 3.200000e+01 : f32
    %28 = vector.broadcast %cst_11 : f32 to vector<16x1xf32>
    %29 = arith.divf %27, %28 : vector<16x1xf32>
    %cst_12 = arith.constant 9.99999996E-13 : f32
    %30 = vector.broadcast %cst_12 : f32 to vector<16x1xf32>
    %31 = arith.addf %29, %30 : vector<16x1xf32>
    %32 = math.rsqrt %31 : vector<16x1xf32>
    %33 = vector.broadcast %32 : vector<16x1xf32> to vector<16x32xf32>
    %34 = arith.mulf %24, %33 : vector<16x32xf32>
    %35 = vector.shape_cast %16 : vector<32xf32> to vector<1x32xf32>
    %36 = vector.broadcast %35 : vector<1x32xf32> to vector<16x32xf32>
    %37 = arith.mulf %34, %36 : vector<16x32xf32>
    %38 = vector.shape_cast %18 : vector<32xf32> to vector<1x32xf32>
    %39 = vector.broadcast %38 : vector<1x32xf32> to vector<16x32xf32>
    %40 = arith.addf %37, %39 : vector<16x32xf32>
    %c0_13 = arith.constant 0 : index
    %c0_14 = arith.constant 0 : index
    %41 = vector.load %arg1[%c0_13, %c0_14] : memref<2x8xf32, #tpu.memory_space<vmem>>, vector<2x8xf32>
    %cst_15 = arith.constant 1.000000e+00 : f32
    %42 = vector.broadcast %cst_15 : f32 to vector<2x8xf32>
    %43 = arith.subf %42, %41 : vector<2x8xf32>
    %cst_16 = arith.constant -1.000000e+09 : f32
    %44 = vector.broadcast %cst_16 : f32 to vector<2x8xf32>
    %45 = arith.mulf %43, %44 : vector<2x8xf32>
    %46 = vector.shape_cast %45 : vector<2x8xf32> to vector<2x1x8xf32>
    %47 = vector.shape_cast %46 : vector<2x1x8xf32> to vector<1x2x1x8xf32>
    %48 = vector.shape_cast %47 : vector<1x2x1x8xf32> to vector<1x2x1x8xf32>
    %49 = vector.broadcast %48 : vector<1x2x1x8xf32> to vector<4x2x1x8xf32>
    %50 = vector.shape_cast %49 : vector<4x2x1x8xf32> to vector<8x1x8xf32>
    %51 = arith.truncf %40 : vector<16x32xf32> to vector<16x32xbf16>
    %c0_17 = arith.constant 0 : index
    %c0_18 = arith.constant 0 : index
    %c0_19 = arith.constant 0 : index
    %52 = vector.load %arg5[%c0_17, %c0_18, %c0_19] : memref<24x32x8xbf16, #tpu.memory_space<vmem>>, vector<1x32x8xbf16>
    %53 = vector.shape_cast %52 : vector<1x32x8xbf16> to vector<32x8xbf16>
    %cst_20 = arith.constant dense<0.000000e+00> : vector<16x8xf32>
    %54 = tpu.matmul %51, %53, %cst_20 {dimension_numbers = #tpu.dot_dimension_numbers<[1], [0], [0], [1], [0, 0, 1, 1], [], []>} : vector<16x32xbf16>, vector<32x8xbf16>, vector<16x8xf32> -> vector<16x8xf32>
    %c0_21 = arith.constant 0 : index
    %c0_22 = arith.constant 0 : index
    %55 = vector.load %arg6[%c0_21, %c0_22] : memref<24x8xf32, #tpu.memory_space<vmem>>, vector<1x8xf32>
    %56 = vector.shape_cast %55 : vector<1x8xf32> to vector<8xf32>
    %57 = vector.shape_cast %56 : vector<8xf32> to vector<1x8xf32>
    %58 = vector.broadcast %57 : vector<1x8xf32> to vector<16x8xf32>
    %59 = arith.addf %54, %58 : vector<16x8xf32>
    %60 = vector.shape_cast %59 : vector<16x8xf32> to vector<2x8x8xf32>
    %c1_23 = arith.constant 1 : index
    %c0_24 = arith.constant 0 : index
    %c0_25 = arith.constant 0 : index
    %61 = vector.load %arg5[%c1_23, %c0_24, %c0_25] : memref<24x32x8xbf16, #tpu.memory_space<vmem>>, vector<1x32x8xbf16>
    %62 = vector.shape_cast %61 : vector<1x32x8xbf16> to vector<32x8xbf16>
    %cst_26 = arith.constant dense<0.000000e+00> : vector<16x8xf32>
    %63 = tpu.matmul %51, %62, %cst_26 {dimension_numbers = #tpu.dot_dimension_numbers<[1], [0], [0], [1], [0, 0, 1, 1], [], []>} : vector<16x32xbf16>, vector<32x8xbf16>, vector<16x8xf32> -> vector<16x8xf32>
    %c1_27 = arith.constant 1 : index
    %c0_28 = arith.constant 0 : index
    %64 = vector.load %arg6[%c1_27, %c0_28] : memref<24x8xf32, #tpu.memory_space<vmem>>, vector<1x8xf32>
    %65 = vector.shape_cast %64 : vector<1x8xf32> to vector<8xf32>
    %66 = vector.shape_cast %65 : vector<8xf32> to vector<1x8xf32>
    %67 = vector.broadcast %66 : vector<1x8xf32> to vector<16x8xf32>
    %68 = arith.addf %63, %67 : vector<16x8xf32>
    %69 = vector.shape_cast %68 : vector<16x8xf32> to vector<2x8x8xf32>
    %c2 = arith.constant 2 : index
    %c0_29 = arith.constant 0 : index
    %c0_30 = arith.constant 0 : index
    %70 = vector.load %arg5[%c2, %c0_29, %c0_30] : memref<24x32x8xbf16, #tpu.memory_space<vmem>>, vector<1x32x8xbf16>
    %71 = vector.shape_cast %70 : vector<1x32x8xbf16> to vector<32x8xbf16>
    %cst_31 = arith.constant dense<0.000000e+00> : vector<16x8xf32>
    %72 = tpu.matmul %51, %71, %cst_31 {dimension_numbers = #tpu.dot_dimension_numbers<[1], [0], [0], [1], [0, 0, 1, 1], [], []>} : vector<16x32xbf16>, vector<32x8xbf16>, vector<16x8xf32> -> vector<16x8xf32>
    %c2_32 = arith.constant 2 : index
    %c0_33 = arith.constant 0 : index
    %73 = vector.load %arg6[%c2_32, %c0_33] : memref<24x8xf32, #tpu.memory_space<vmem>>, vector<1x8xf32>
    %74 = vector.shape_cast %73 : vector<1x8xf32> to vector<8xf32>
    %75 = vector.shape_cast %74 : vector<8xf32> to vector<1x8xf32>
    %76 = vector.broadcast %75 : vector<1x8xf32> to vector<16x8xf32>
    %77 = arith.addf %72, %76 : vector<16x8xf32>
    %78 = vector.shape_cast %77 : vector<16x8xf32> to vector<2x8x8xf32>
    %c3 = arith.constant 3 : index
    %c0_34 = arith.constant 0 : index
    %c0_35 = arith.constant 0 : index
    %79 = vector.load %arg5[%c3, %c0_34, %c0_35] : memref<24x32x8xbf16, #tpu.memory_space<vmem>>, vector<1x32x8xbf16>
    %80 = vector.shape_cast %79 : vector<1x32x8xbf16> to vector<32x8xbf16>
    %cst_36 = arith.constant dense<0.000000e+00> : vector<16x8xf32>
    %81 = tpu.matmul %51, %80, %cst_36 {dimension_numbers = #tpu.dot_dimension_numbers<[1], [0], [0], [1], [0, 0, 1, 1], [], []>} : vector<16x32xbf16>, vector<32x8xbf16>, vector<16x8xf32> -> vector<16x8xf32>
    %c3_37 = arith.constant 3 : index
    %c0_38 = arith.constant 0 : index
    %82 = vector.load %arg6[%c3_37, %c0_38] : memref<24x8xf32, #tpu.memory_space<vmem>>, vector<1x8xf32>
    %83 = vector.shape_cast %82 : vector<1x8xf32> to vector<8xf32>
    %84 = vector.shape_cast %83 : vector<8xf32> to vector<1x8xf32>
    %85 = vector.broadcast %84 : vector<1x8xf32> to vector<16x8xf32>
    %86 = arith.addf %81, %85 : vector<16x8xf32>
    %87 = vector.shape_cast %86 : vector<16x8xf32> to vector<2x8x8xf32>
    %88 = vector.shape_cast %60 : vector<2x8x8xf32> to vector<1x2x8x8xf32>
    %89 = vector.shape_cast %69 : vector<2x8x8xf32> to vector<1x2x8x8xf32>
    %90 = vector.shape_cast %78 : vector<2x8x8xf32> to vector<1x2x8x8xf32>
    %91 = vector.shape_cast %87 : vector<2x8x8xf32> to vector<1x2x8x8xf32>
    %92 = tpu.concatenate %88, %89, %90, %91 in 0 : vector<1x2x8x8xf32>, vector<1x2x8x8xf32>, vector<1x2x8x8xf32>, vector<1x2x8x8xf32> -> vector<4x2x8x8xf32>
    %93 = vector.shape_cast %92 : vector<4x2x8x8xf32> to vector<8x8x8xf32>
    %c4 = arith.constant 4 : index
    %c0_39 = arith.constant 0 : index
    %c0_40 = arith.constant 0 : index
    %94 = vector.load %arg5[%c4, %c0_39, %c0_40] : memref<24x32x8xbf16, #tpu.memory_space<vmem>>, vector<1x32x8xbf16>
    %95 = vector.shape_cast %94 : vector<1x32x8xbf16> to vector<32x8xbf16>
    %cst_41 = arith.constant dense<0.000000e+00> : vector<16x8xf32>
    %96 = tpu.matmul %51, %95, %cst_41 {dimension_numbers = #tpu.dot_dimension_numbers<[1], [0], [0], [1], [0, 0, 1, 1], [], []>} : vector<16x32xbf16>, vector<32x8xbf16>, vector<16x8xf32> -> vector<16x8xf32>
    %c4_42 = arith.constant 4 : index
    %c0_43 = arith.constant 0 : index
    %97 = vector.load %arg6[%c4_42, %c0_43] : memref<24x8xf32, #tpu.memory_space<vmem>>, vector<1x8xf32>
    %98 = vector.shape_cast %97 : vector<1x8xf32> to vector<8xf32>
    %99 = vector.shape_cast %98 : vector<8xf32> to vector<1x8xf32>
    %100 = vector.broadcast %99 : vector<1x8xf32> to vector<16x8xf32>
    %101 = arith.addf %96, %100 : vector<16x8xf32>
    %102 = vector.shape_cast %101 : vector<16x8xf32> to vector<2x8x8xf32>
    %c5 = arith.constant 5 : index
    %c0_44 = arith.constant 0 : index
    %c0_45 = arith.constant 0 : index
    %103 = vector.load %arg5[%c5, %c0_44, %c0_45] : memref<24x32x8xbf16, #tpu.memory_space<vmem>>, vector<1x32x8xbf16>
    %104 = vector.shape_cast %103 : vector<1x32x8xbf16> to vector<32x8xbf16>
    %cst_46 = arith.constant dense<0.000000e+00> : vector<16x8xf32>
    %105 = tpu.matmul %51, %104, %cst_46 {dimension_numbers = #tpu.dot_dimension_numbers<[1], [0], [0], [1], [0, 0, 1, 1], [], []>} : vector<16x32xbf16>, vector<32x8xbf16>, vector<16x8xf32> -> vector<16x8xf32>
    %c5_47 = arith.constant 5 : index
    %c0_48 = arith.constant 0 : index
    %106 = vector.load %arg6[%c5_47, %c0_48] : memref<24x8xf32, #tpu.memory_space<vmem>>, vector<1x8xf32>
    %107 = vector.shape_cast %106 : vector<1x8xf32> to vector<8xf32>
    %108 = vector.shape_cast %107 : vector<8xf32> to vector<1x8xf32>
    %109 = vector.broadcast %108 : vector<1x8xf32> to vector<16x8xf32>
    %110 = arith.addf %105, %109 : vector<16x8xf32>
    %111 = vector.shape_cast %110 : vector<16x8xf32> to vector<2x8x8xf32>
    %c6 = arith.constant 6 : index
    %c0_49 = arith.constant 0 : index
    %c0_50 = arith.constant 0 : index
    %112 = vector.load %arg5[%c6, %c0_49, %c0_50] : memref<24x32x8xbf16, #tpu.memory_space<vmem>>, vector<1x32x8xbf16>
    %113 = vector.shape_cast %112 : vector<1x32x8xbf16> to vector<32x8xbf16>
    %cst_51 = arith.constant dense<0.000000e+00> : vector<16x8xf32>
    %114 = tpu.matmul %51, %113, %cst_51 {dimension_numbers = #tpu.dot_dimension_numbers<[1], [0], [0], [1], [0, 0, 1, 1], [], []>} : vector<16x32xbf16>, vector<32x8xbf16>, vector<16x8xf32> -> vector<16x8xf32>
    %c6_52 = arith.constant 6 : index
    %c0_53 = arith.constant 0 : index
    %115 = vector.load %arg6[%c6_52, %c0_53] : memref<24x8xf32, #tpu.memory_space<vmem>>, vector<1x8xf32>
    %116 = vector.shape_cast %115 : vector<1x8xf32> to vector<8xf32>
    %117 = vector.shape_cast %116 : vector<8xf32> to vector<1x8xf32>
    %118 = vector.broadcast %117 : vector<1x8xf32> to vector<16x8xf32>
    %119 = arith.addf %114, %118 : vector<16x8xf32>
    %120 = vector.shape_cast %119 : vector<16x8xf32> to vector<2x8x8xf32>
    %c7 = arith.constant 7 : index
    %c0_54 = arith.constant 0 : index
    %c0_55 = arith.constant 0 : index
    %121 = vector.load %arg5[%c7, %c0_54, %c0_55] : memref<24x32x8xbf16, #tpu.memory_space<vmem>>, vector<1x32x8xbf16>
    %122 = vector.shape_cast %121 : vector<1x32x8xbf16> to vector<32x8xbf16>
    %cst_56 = arith.constant dense<0.000000e+00> : vector<16x8xf32>
    %123 = tpu.matmul %51, %122, %cst_56 {dimension_numbers = #tpu.dot_dimension_numbers<[1], [0], [0], [1], [0, 0, 1, 1], [], []>} : vector<16x32xbf16>, vector<32x8xbf16>, vector<16x8xf32> -> vector<16x8xf32>
    %c7_57 = arith.constant 7 : index
    %c0_58 = arith.constant 0 : index
    %124 = vector.load %arg6[%c7_57, %c0_58] : memref<24x8xf32, #tpu.memory_space<vmem>>, vector<1x8xf32>
    %125 = vector.shape_cast %124 : vector<1x8xf32> to vector<8xf32>
    %126 = vector.shape_cast %125 : vector<8xf32> to vector<1x8xf32>
    %127 = vector.broadcast %126 : vector<1x8xf32> to vector<16x8xf32>
    %128 = arith.addf %123, %127 : vector<16x8xf32>
    %129 = vector.shape_cast %128 : vector<16x8xf32> to vector<2x8x8xf32>
    %130 = vector.shape_cast %102 : vector<2x8x8xf32> to vector<1x2x8x8xf32>
    %131 = vector.shape_cast %111 : vector<2x8x8xf32> to vector<1x2x8x8xf32>
    %132 = vector.shape_cast %120 : vector<2x8x8xf32> to vector<1x2x8x8xf32>
    %133 = vector.shape_cast %129 : vector<2x8x8xf32> to vector<1x2x8x8xf32>
    %134 = tpu.concatenate %130, %131, %132, %133 in 0 : vector<1x2x8x8xf32>, vector<1x2x8x8xf32>, vector<1x2x8x8xf32>, vector<1x2x8x8xf32> -> vector<4x2x8x8xf32>
    %135 = vector.shape_cast %134 : vector<4x2x8x8xf32> to vector<8x8x8xf32>
    %c8 = arith.constant 8 : index
    %c0_59 = arith.constant 0 : index
    %c0_60 = arith.constant 0 : index
    %136 = vector.load %arg5[%c8, %c0_59, %c0_60] : memref<24x32x8xbf16, #tpu.memory_space<vmem>>, vector<1x32x8xbf16>
    %137 = vector.shape_cast %136 : vector<1x32x8xbf16> to vector<32x8xbf16>
    %cst_61 = arith.constant dense<0.000000e+00> : vector<16x8xf32>
    %138 = tpu.matmul %51, %137, %cst_61 {dimension_numbers = #tpu.dot_dimension_numbers<[1], [0], [0], [1], [0, 0, 1, 1], [], []>} : vector<16x32xbf16>, vector<32x8xbf16>, vector<16x8xf32> -> vector<16x8xf32>
    %c8_62 = arith.constant 8 : index
    %c0_63 = arith.constant 0 : index
    %139 = vector.load %arg6[%c8_62, %c0_63] : memref<24x8xf32, #tpu.memory_space<vmem>>, vector<1x8xf32>
    %140 = vector.shape_cast %139 : vector<1x8xf32> to vector<8xf32>
    %141 = vector.shape_cast %140 : vector<8xf32> to vector<1x8xf32>
    %142 = vector.broadcast %141 : vector<1x8xf32> to vector<16x8xf32>
    %143 = arith.addf %138, %142 : vector<16x8xf32>
    %144 = vector.shape_cast %143 : vector<16x8xf32> to vector<2x8x8xf32>
    %c9 = arith.constant 9 : index
    %c0_64 = arith.constant 0 : index
    %c0_65 = arith.constant 0 : index
    %145 = vector.load %arg5[%c9, %c0_64, %c0_65] : memref<24x32x8xbf16, #tpu.memory_space<vmem>>, vector<1x32x8xbf16>
    %146 = vector.shape_cast %145 : vector<1x32x8xbf16> to vector<32x8xbf16>
    %cst_66 = arith.constant dense<0.000000e+00> : vector<16x8xf32>
    %147 = tpu.matmul %51, %146, %cst_66 {dimension_numbers = #tpu.dot_dimension_numbers<[1], [0], [0], [1], [0, 0, 1, 1], [], []>} : vector<16x32xbf16>, vector<32x8xbf16>, vector<16x8xf32> -> vector<16x8xf32>
    %c9_67 = arith.constant 9 : index
    %c0_68 = arith.constant 0 : index
    %148 = vector.load %arg6[%c9_67, %c0_68] : memref<24x8xf32, #tpu.memory_space<vmem>>, vector<1x8xf32>
    %149 = vector.shape_cast %148 : vector<1x8xf32> to vector<8xf32>
    %150 = vector.shape_cast %149 : vector<8xf32> to vector<1x8xf32>
    %151 = vector.broadcast %150 : vector<1x8xf32> to vector<16x8xf32>
    %152 = arith.addf %147, %151 : vector<16x8xf32>
    %153 = vector.shape_cast %152 : vector<16x8xf32> to vector<2x8x8xf32>
    %c10 = arith.constant 10 : index
    %c0_69 = arith.constant 0 : index
    %c0_70 = arith.constant 0 : index
    %154 = vector.load %arg5[%c10, %c0_69, %c0_70] : memref<24x32x8xbf16, #tpu.memory_space<vmem>>, vector<1x32x8xbf16>
    %155 = vector.shape_cast %154 : vector<1x32x8xbf16> to vector<32x8xbf16>
    %cst_71 = arith.constant dense<0.000000e+00> : vector<16x8xf32>
    %156 = tpu.matmul %51, %155, %cst_71 {dimension_numbers = #tpu.dot_dimension_numbers<[1], [0], [0], [1], [0, 0, 1, 1], [], []>} : vector<16x32xbf16>, vector<32x8xbf16>, vector<16x8xf32> -> vector<16x8xf32>
    %c10_72 = arith.constant 10 : index
    %c0_73 = arith.constant 0 : index
    %157 = vector.load %arg6[%c10_72, %c0_73] : memref<24x8xf32, #tpu.memory_space<vmem>>, vector<1x8xf32>
    %158 = vector.shape_cast %157 : vector<1x8xf32> to vector<8xf32>
    %159 = vector.shape_cast %158 : vector<8xf32> to vector<1x8xf32>
    %160 = vector.broadcast %159 : vector<1x8xf32> to vector<16x8xf32>
    %161 = arith.addf %156, %160 : vector<16x8xf32>
    %162 = vector.shape_cast %161 : vector<16x8xf32> to vector<2x8x8xf32>
    %c11 = arith.constant 11 : index
    %c0_74 = arith.constant 0 : index
    %c0_75 = arith.constant 0 : index
    %163 = vector.load %arg5[%c11, %c0_74, %c0_75] : memref<24x32x8xbf16, #tpu.memory_space<vmem>>, vector<1x32x8xbf16>
    %164 = vector.shape_cast %163 : vector<1x32x8xbf16> to vector<32x8xbf16>
    %cst_76 = arith.constant dense<0.000000e+00> : vector<16x8xf32>
    %165 = tpu.matmul %51, %164, %cst_76 {dimension_numbers = #tpu.dot_dimension_numbers<[1], [0], [0], [1], [0, 0, 1, 1], [], []>} : vector<16x32xbf16>, vector<32x8xbf16>, vector<16x8xf32> -> vector<16x8xf32>
    %c11_77 = arith.constant 11 : index
    %c0_78 = arith.constant 0 : index
    %166 = vector.load %arg6[%c11_77, %c0_78] : memref<24x8xf32, #tpu.memory_space<vmem>>, vector<1x8xf32>
    %167 = vector.shape_cast %166 : vector<1x8xf32> to vector<8xf32>
    %168 = vector.shape_cast %167 : vector<8xf32> to vector<1x8xf32>
    %169 = vector.broadcast %168 : vector<1x8xf32> to vector<16x8xf32>
    %170 = arith.addf %165, %169 : vector<16x8xf32>
    %171 = vector.shape_cast %170 : vector<16x8xf32> to vector<2x8x8xf32>
    %172 = vector.shape_cast %144 : vector<2x8x8xf32> to vector<1x2x8x8xf32>
    %173 = vector.shape_cast %153 : vector<2x8x8xf32> to vector<1x2x8x8xf32>
    %174 = vector.shape_cast %162 : vector<2x8x8xf32> to vector<1x2x8x8xf32>
    %175 = vector.shape_cast %171 : vector<2x8x8xf32> to vector<1x2x8x8xf32>
    %176 = tpu.concatenate %172, %173, %174, %175 in 0 : vector<1x2x8x8xf32>, vector<1x2x8x8xf32>, vector<1x2x8x8xf32>, vector<1x2x8x8xf32> -> vector<4x2x8x8xf32>
    %177 = vector.shape_cast %176 : vector<4x2x8x8xf32> to vector<8x8x8xf32>
    %178 = arith.truncf %93 : vector<8x8x8xf32> to vector<8x8x8xbf16>
    %179 = arith.truncf %135 : vector<8x8x8xf32> to vector<8x8x8xbf16>
    "tpu.trace_start"() <{level = 10 : i32, message = "gqd,gkd->gqk"}> : () -> ()
    %cst_79 = arith.constant dense<0.000000e+00> : vector<8x8x8xf32>
    %180 = tpu.matmul %178, %179, %cst_79 {dimension_numbers = #tpu.dot_dimension_numbers<[2], [2], [1], [1], [0, 0, 0, 1, 1, 1], [0], [0]>} : vector<8x8x8xbf16>, vector<8x8x8xbf16>, vector<8x8x8xf32> -> vector<8x8x8xf32>
    "tpu.trace_stop"() : () -> ()
    %181 = vector.broadcast %50 : vector<8x1x8xf32> to vector<8x8x8xf32>
    %182 = arith.addf %180, %181 : vector<8x8x8xf32>
    %cst_80 = arith.constant dense<0xFF800000> : vector<8x8xf32>
    %183 = vector.multi_reduction <maximumf>, %182, %cst_80 [2] : vector<8x8x8xf32> to vector<8x8xf32>
    %184 = vector.shape_cast %183 : vector<8x8xf32> to vector<8x8x1xf32>
    %185 = vector.broadcast %184 : vector<8x8x1xf32> to vector<8x8x8xf32>
    %186 = arith.subf %182, %185 : vector<8x8x8xf32>
    %187 = math.exp %186 : vector<8x8x8xf32>
    %cst_81 = arith.constant dense<0.000000e+00> : vector<8x8xf32>
    %188 = vector.multi_reduction <add>, %187, %cst_81 [2] : vector<8x8x8xf32> to vector<8x8xf32>
    %189 = vector.shape_cast %188 : vector<8x8xf32> to vector<8x8x1xf32>
    %190 = tpu.reciprocal %189 {approx = true} : vector<8x8x1xf32> -> vector<8x8x1xf32>
    %191 = vector.broadcast %190 : vector<8x8x1xf32> to vector<8x8x8xf32>
    %192 = arith.mulf %187, %191 : vector<8x8x8xf32>
    %193 = arith.truncf %192 : vector<8x8x8xf32> to vector<8x8x8xbf16>
    %194 = arith.truncf %177 : vector<8x8x8xf32> to vector<8x8x8xbf16>
    "tpu.trace_start"() <{level = 10 : i32, message = "gqk,gkd->gqd"}> : () -> ()
    %cst_82 = arith.constant dense<0.000000e+00> : vector<8x8x8xf32>
    %195 = tpu.matmul %193, %194, %cst_82 {dimension_numbers = #tpu.dot_dimension_numbers<[2], [1], [1], [2], [0, 0, 0, 1, 1, 2], [0], [0]>} : vector<8x8x8xbf16>, vector<8x8x8xbf16>, vector<8x8x8xf32> -> vector<8x8x8xf32>
    "tpu.trace_stop"() : () -> ()
    %196 = vector.shape_cast %195 : vector<8x8x8xf32> to vector<4x16x8xf32>
    %c0_83 = arith.constant 0 : index
    %c0_84 = arith.constant 0 : index
    %c0_85 = arith.constant 0 : index
    %197 = vector.load %arg7[%c0_83, %c0_84, %c0_85] : memref<2x32x32xbf16, #tpu.memory_space<vmem>>, vector<1x32x32xbf16>
    %198 = vector.shape_cast %197 : vector<1x32x32xbf16> to vector<32x32xbf16>
    %cst_86 = arith.constant 0.000000e+00 : f32
    %199 = vector.broadcast %cst_86 : f32 to vector<16x32xf32>
    %200 = vector.extract_strided_slice %196 {offsets = [0, 0, 0], sizes = [1, 16, 8], strides = [1, 1, 1]} : vector<4x16x8xf32> to vector<1x16x8xf32>
    %201 = vector.shape_cast %200 : vector<1x16x8xf32> to vector<16x8xf32>
    %202 = arith.truncf %201 : vector<16x8xf32> to vector<16x8xbf16>
    %203 = vector.extract_strided_slice %198 {offsets = [0, 0], sizes = [8, 32], strides = [1, 1]} : vector<32x32xbf16> to vector<8x32xbf16>
    %cst_87 = arith.constant dense<0.000000e+00> : vector<16x32xf32>
    %204 = tpu.matmul %202, %203, %cst_87 {dimension_numbers = #tpu.dot_dimension_numbers<[1], [0], [0], [1], [0, 0, 1, 1], [], []>} : vector<16x8xbf16>, vector<8x32xbf16>, vector<16x32xf32> -> vector<16x32xf32>
    %205 = arith.addf %199, %204 : vector<16x32xf32>
    %206 = vector.extract_strided_slice %196 {offsets = [1, 0, 0], sizes = [1, 16, 8], strides = [1, 1, 1]} : vector<4x16x8xf32> to vector<1x16x8xf32>
    %207 = vector.shape_cast %206 : vector<1x16x8xf32> to vector<16x8xf32>
    %208 = arith.truncf %207 : vector<16x8xf32> to vector<16x8xbf16>
    %209 = vector.extract_strided_slice %198 {offsets = [8, 0], sizes = [8, 32], strides = [1, 1]} : vector<32x32xbf16> to vector<8x32xbf16>
    %cst_88 = arith.constant dense<0.000000e+00> : vector<16x32xf32>
    %210 = tpu.matmul %208, %209, %cst_88 {dimension_numbers = #tpu.dot_dimension_numbers<[1], [0], [0], [1], [0, 0, 1, 1], [], []>} : vector<16x8xbf16>, vector<8x32xbf16>, vector<16x32xf32> -> vector<16x32xf32>
    %211 = arith.addf %205, %210 : vector<16x32xf32>
    %212 = vector.extract_strided_slice %196 {offsets = [2, 0, 0], sizes = [1, 16, 8], strides = [1, 1, 1]} : vector<4x16x8xf32> to vector<1x16x8xf32>
    %213 = vector.shape_cast %212 : vector<1x16x8xf32> to vector<16x8xf32>
    %214 = arith.truncf %213 : vector<16x8xf32> to vector<16x8xbf16>
    %215 = vector.extract_strided_slice %198 {offsets = [16, 0], sizes = [8, 32], strides = [1, 1]} : vector<32x32xbf16> to vector<8x32xbf16>
    %cst_89 = arith.constant dense<0.000000e+00> : vector<16x32xf32>
    %216 = tpu.matmul %214, %215, %cst_89 {dimension_numbers = #tpu.dot_dimension_numbers<[1], [0], [0], [1], [0, 0, 1, 1], [], []>} : vector<16x8xbf16>, vector<8x32xbf16>, vector<16x32xf32> -> vector<16x32xf32>
    %217 = arith.addf %211, %216 : vector<16x32xf32>
    %218 = vector.extract_strided_slice %196 {offsets = [3, 0, 0], sizes = [1, 16, 8], strides = [1, 1, 1]} : vector<4x16x8xf32> to vector<1x16x8xf32>
    %219 = vector.shape_cast %218 : vector<1x16x8xf32> to vector<16x8xf32>
    %220 = arith.truncf %219 : vector<16x8xf32> to vector<16x8xbf16>
    %221 = vector.extract_strided_slice %198 {offsets = [24, 0], sizes = [8, 32], strides = [1, 1]} : vector<32x32xbf16> to vector<8x32xbf16>
    %cst_90 = arith.constant dense<0.000000e+00> : vector<16x32xf32>
    %222 = tpu.matmul %220, %221, %cst_90 {dimension_numbers = #tpu.dot_dimension_numbers<[1], [0], [0], [1], [0, 0, 1, 1], [], []>} : vector<16x8xbf16>, vector<8x32xbf16>, vector<16x32xf32> -> vector<16x32xf32>
    %223 = arith.addf %217, %222 : vector<16x32xf32>
    %c0_91 = arith.constant 0 : index
    %c0_92 = arith.constant 0 : index
    %c0_93 = arith.constant 0 : index
    %224 = vector.load %arg8[%c0_91, %c0_92, %c0_93] : memref<2x6x32xf32, #tpu.memory_space<vmem>>, vector<1x1x32xf32>
    %225 = vector.shape_cast %224 : vector<1x1x32xf32> to vector<32xf32>
    %226 = vector.shape_cast %225 : vector<32xf32> to vector<1x32xf32>
    %227 = vector.broadcast %226 : vector<1x32xf32> to vector<16x32xf32>
    %228 = arith.addf %223, %227 : vector<16x32xf32>
    %229 = arith.addf %40, %228 : vector<16x32xf32>
    %c0_94 = arith.constant 0 : index
    %c1_95 = arith.constant 1 : index
    %c0_96 = arith.constant 0 : index
    %230 = vector.load %arg8[%c0_94, %c1_95, %c0_96] : memref<2x6x32xf32, #tpu.memory_space<vmem>>, vector<1x1x32xf32>
    %231 = vector.shape_cast %230 : vector<1x1x32xf32> to vector<32xf32>
    %c0_97 = arith.constant 0 : index
    %c2_98 = arith.constant 2 : index
    %c0_99 = arith.constant 0 : index
    %232 = vector.load %arg8[%c0_97, %c2_98, %c0_99] : memref<2x6x32xf32, #tpu.memory_space<vmem>>, vector<1x1x32xf32>
    %233 = vector.shape_cast %232 : vector<1x1x32xf32> to vector<32xf32>
    %cst_100 = arith.constant dense<0.000000e+00> : vector<16xf32>
    %234 = vector.multi_reduction <add>, %229, %cst_100 [1] : vector<16x32xf32> to vector<16xf32>
    %235 = vector.shape_cast %234 : vector<16xf32> to vector<16x1xf32>
    %cst_101 = arith.constant 3.200000e+01 : f32
    %236 = vector.broadcast %cst_101 : f32 to vector<16x1xf32>
    %237 = arith.divf %235, %236 : vector<16x1xf32>
    %238 = vector.broadcast %237 : vector<16x1xf32> to vector<16x32xf32>
    %239 = arith.subf %229, %238 : vector<16x32xf32>
    %240 = arith.mulf %239, %239 : vector<16x32xf32>
    %cst_102 = arith.constant dense<0.000000e+00> : vector<16xf32>
    %241 = vector.multi_reduction <add>, %240, %cst_102 [1] : vector<16x32xf32> to vector<16xf32>
    %242 = vector.shape_cast %241 : vector<16xf32> to vector<16x1xf32>
    %cst_103 = arith.constant 3.200000e+01 : f32
    %243 = vector.broadcast %cst_103 : f32 to vector<16x1xf32>
    %244 = arith.divf %242, %243 : vector<16x1xf32>
    %cst_104 = arith.constant 9.99999996E-13 : f32
    %245 = vector.broadcast %cst_104 : f32 to vector<16x1xf32>
    %246 = arith.addf %244, %245 : vector<16x1xf32>
    %247 = math.rsqrt %246 : vector<16x1xf32>
    %248 = vector.broadcast %247 : vector<16x1xf32> to vector<16x32xf32>
    %249 = arith.mulf %239, %248 : vector<16x32xf32>
    %250 = vector.shape_cast %231 : vector<32xf32> to vector<1x32xf32>
    %251 = vector.broadcast %250 : vector<1x32xf32> to vector<16x32xf32>
    %252 = arith.mulf %249, %251 : vector<16x32xf32>
    %253 = vector.shape_cast %233 : vector<32xf32> to vector<1x32xf32>
    %254 = vector.broadcast %253 : vector<1x32xf32> to vector<16x32xf32>
    %255 = arith.addf %252, %254 : vector<16x32xf32>
    %256 = arith.truncf %255 : vector<16x32xf32> to vector<16x32xbf16>
    %c0_105 = arith.constant 0 : index
    %c0_106 = arith.constant 0 : index
    %c0_107 = arith.constant 0 : index
    %257 = vector.load %arg9[%c0_105, %c0_106, %c0_107] : memref<2x32x64xbf16, #tpu.memory_space<vmem>>, vector<1x32x64xbf16>
    %258 = vector.shape_cast %257 : vector<1x32x64xbf16> to vector<32x64xbf16>
    %cst_108 = arith.constant dense<0.000000e+00> : vector<16x64xf32>
    %259 = tpu.matmul %256, %258, %cst_108 {dimension_numbers = #tpu.dot_dimension_numbers<[1], [0], [0], [1], [0, 0, 1, 1], [], []>} : vector<16x32xbf16>, vector<32x64xbf16>, vector<16x64xf32> -> vector<16x64xf32>
    %c0_109 = arith.constant 0 : index
    %c0_110 = arith.constant 0 : index
    %c0_111 = arith.constant 0 : index
    %260 = vector.load %arg10[%c0_109, %c0_110, %c0_111] : memref<2x1x64xf32, #tpu.memory_space<vmem>>, vector<1x1x64xf32>
    %261 = vector.shape_cast %260 : vector<1x1x64xf32> to vector<1x64xf32>
    %262 = vector.broadcast %261 : vector<1x64xf32> to vector<16x64xf32>
    %263 = arith.addf %259, %262 : vector<16x64xf32>
    %cst_112 = arith.constant 5.000000e-01 : f32
    %264 = vector.broadcast %cst_112 : f32 to vector<16x64xf32>
    %265 = arith.mulf %264, %263 : vector<16x64xf32>
    %cst_113 = arith.constant 4.471500e-02 : f32
    %266 = vector.broadcast %cst_113 : f32 to vector<16x64xf32>
    %267 = arith.mulf %266, %263 : vector<16x64xf32>
    %268 = arith.mulf %267, %263 : vector<16x64xf32>
    %269 = arith.mulf %268, %263 : vector<16x64xf32>
    %270 = arith.addf %263, %269 : vector<16x64xf32>
    %cst_114 = arith.constant 0.797884583 : f32
    %271 = vector.broadcast %cst_114 : f32 to vector<16x64xf32>
    %272 = arith.mulf %271, %270 : vector<16x64xf32>
    %273 = math.tanh %272 : vector<16x64xf32>
    %cst_115 = arith.constant 1.000000e+00 : f32
    %274 = vector.broadcast %cst_115 : f32 to vector<16x64xf32>
    %275 = arith.addf %274, %273 : vector<16x64xf32>
    %276 = arith.mulf %265, %275 : vector<16x64xf32>
    %277 = arith.truncf %276 : vector<16x64xf32> to vector<16x64xbf16>
    %c0_116 = arith.constant 0 : index
    %c0_117 = arith.constant 0 : index
    %c0_118 = arith.constant 0 : index
    %278 = vector.load %arg11[%c0_116, %c0_117, %c0_118] : memref<2x64x32xbf16, #tpu.memory_space<vmem>>, vector<1x64x32xbf16>
    %279 = vector.shape_cast %278 : vector<1x64x32xbf16> to vector<64x32xbf16>
    %cst_119 = arith.constant dense<0.000000e+00> : vector<16x32xf32>
    %280 = tpu.matmul %277, %279, %cst_119 {dimension_numbers = #tpu.dot_dimension_numbers<[1], [0], [0], [1], [0, 0, 1, 1], [], []>} : vector<16x64xbf16>, vector<64x32xbf16>, vector<16x32xf32> -> vector<16x32xf32>
    %c0_120 = arith.constant 0 : index
    %c3_121 = arith.constant 3 : index
    %c0_122 = arith.constant 0 : index
    %281 = vector.load %arg8[%c0_120, %c3_121, %c0_122] : memref<2x6x32xf32, #tpu.memory_space<vmem>>, vector<1x1x32xf32>
    %282 = vector.shape_cast %281 : vector<1x1x32xf32> to vector<32xf32>
    %283 = vector.shape_cast %282 : vector<32xf32> to vector<1x32xf32>
    %284 = vector.broadcast %283 : vector<1x32xf32> to vector<16x32xf32>
    %285 = arith.addf %280, %284 : vector<16x32xf32>
    %286 = arith.addf %255, %285 : vector<16x32xf32>
    %c0_123 = arith.constant 0 : index
    %c4_124 = arith.constant 4 : index
    %c0_125 = arith.constant 0 : index
    %287 = vector.load %arg8[%c0_123, %c4_124, %c0_125] : memref<2x6x32xf32, #tpu.memory_space<vmem>>, vector<1x1x32xf32>
    %288 = vector.shape_cast %287 : vector<1x1x32xf32> to vector<32xf32>
    %c0_126 = arith.constant 0 : index
    %c5_127 = arith.constant 5 : index
    %c0_128 = arith.constant 0 : index
    %289 = vector.load %arg8[%c0_126, %c5_127, %c0_128] : memref<2x6x32xf32, #tpu.memory_space<vmem>>, vector<1x1x32xf32>
    %290 = vector.shape_cast %289 : vector<1x1x32xf32> to vector<32xf32>
    %cst_129 = arith.constant dense<0.000000e+00> : vector<16xf32>
    %291 = vector.multi_reduction <add>, %286, %cst_129 [1] : vector<16x32xf32> to vector<16xf32>
    %292 = vector.shape_cast %291 : vector<16xf32> to vector<16x1xf32>
    %cst_130 = arith.constant 3.200000e+01 : f32
    %293 = vector.broadcast %cst_130 : f32 to vector<16x1xf32>
    %294 = arith.divf %292, %293 : vector<16x1xf32>
    %295 = vector.broadcast %294 : vector<16x1xf32> to vector<16x32xf32>
    %296 = arith.subf %286, %295 : vector<16x32xf32>
    %297 = arith.mulf %296, %296 : vector<16x32xf32>
    %cst_131 = arith.constant dense<0.000000e+00> : vector<16xf32>
    %298 = vector.multi_reduction <add>, %297, %cst_131 [1] : vector<16x32xf32> to vector<16xf32>
    %299 = vector.shape_cast %298 : vector<16xf32> to vector<16x1xf32>
    %cst_132 = arith.constant 3.200000e+01 : f32
    %300 = vector.broadcast %cst_132 : f32 to vector<16x1xf32>
    %301 = arith.divf %299, %300 : vector<16x1xf32>
    %cst_133 = arith.constant 9.99999996E-13 : f32
    %302 = vector.broadcast %cst_133 : f32 to vector<16x1xf32>
    %303 = arith.addf %301, %302 : vector<16x1xf32>
    %304 = math.rsqrt %303 : vector<16x1xf32>
    %305 = vector.broadcast %304 : vector<16x1xf32> to vector<16x32xf32>
    %306 = arith.mulf %296, %305 : vector<16x32xf32>
    %307 = vector.shape_cast %288 : vector<32xf32> to vector<1x32xf32>
    %308 = vector.broadcast %307 : vector<1x32xf32> to vector<16x32xf32>
    %309 = arith.mulf %306, %308 : vector<16x32xf32>
    %310 = vector.shape_cast %290 : vector<32xf32> to vector<1x32xf32>
    %311 = vector.broadcast %310 : vector<1x32xf32> to vector<16x32xf32>
    %312 = arith.addf %309, %311 : vector<16x32xf32>
    %313 = arith.truncf %312 : vector<16x32xf32> to vector<16x32xbf16>
    %c12 = arith.constant 12 : index
    %c0_134 = arith.constant 0 : index
    %c0_135 = arith.constant 0 : index
    %314 = vector.load %arg5[%c12, %c0_134, %c0_135] : memref<24x32x8xbf16, #tpu.memory_space<vmem>>, vector<1x32x8xbf16>
    %315 = vector.shape_cast %314 : vector<1x32x8xbf16> to vector<32x8xbf16>
    %cst_136 = arith.constant dense<0.000000e+00> : vector<16x8xf32>
    %316 = tpu.matmul %313, %315, %cst_136 {dimension_numbers = #tpu.dot_dimension_numbers<[1], [0], [0], [1], [0, 0, 1, 1], [], []>} : vector<16x32xbf16>, vector<32x8xbf16>, vector<16x8xf32> -> vector<16x8xf32>
    %c12_137 = arith.constant 12 : index
    %c0_138 = arith.constant 0 : index
    %317 = vector.load %arg6[%c12_137, %c0_138] : memref<24x8xf32, #tpu.memory_space<vmem>>, vector<1x8xf32>
    %318 = vector.shape_cast %317 : vector<1x8xf32> to vector<8xf32>
    %319 = vector.shape_cast %318 : vector<8xf32> to vector<1x8xf32>
    %320 = vector.broadcast %319 : vector<1x8xf32> to vector<16x8xf32>
    %321 = arith.addf %316, %320 : vector<16x8xf32>
    %322 = vector.shape_cast %321 : vector<16x8xf32> to vector<2x8x8xf32>
    %c13 = arith.constant 13 : index
    %c0_139 = arith.constant 0 : index
    %c0_140 = arith.constant 0 : index
    %323 = vector.load %arg5[%c13, %c0_139, %c0_140] : memref<24x32x8xbf16, #tpu.memory_space<vmem>>, vector<1x32x8xbf16>
    %324 = vector.shape_cast %323 : vector<1x32x8xbf16> to vector<32x8xbf16>
    %cst_141 = arith.constant dense<0.000000e+00> : vector<16x8xf32>
    %325 = tpu.matmul %313, %324, %cst_141 {dimension_numbers = #tpu.dot_dimension_numbers<[1], [0], [0], [1], [0, 0, 1, 1], [], []>} : vector<16x32xbf16>, vector<32x8xbf16>, vector<16x8xf32> -> vector<16x8xf32>
    %c13_142 = arith.constant 13 : index
    %c0_143 = arith.constant 0 : index
    %326 = vector.load %arg6[%c13_142, %c0_143] : memref<24x8xf32, #tpu.memory_space<vmem>>, vector<1x8xf32>
    %327 = vector.shape_cast %326 : vector<1x8xf32> to vector<8xf32>
    %328 = vector.shape_cast %327 : vector<8xf32> to vector<1x8xf32>
    %329 = vector.broadcast %328 : vector<1x8xf32> to vector<16x8xf32>
    %330 = arith.addf %325, %329 : vector<16x8xf32>
    %331 = vector.shape_cast %330 : vector<16x8xf32> to vector<2x8x8xf32>
    %c14 = arith.constant 14 : index
    %c0_144 = arith.constant 0 : index
    %c0_145 = arith.constant 0 : index
    %332 = vector.load %arg5[%c14, %c0_144, %c0_145] : memref<24x32x8xbf16, #tpu.memory_space<vmem>>, vector<1x32x8xbf16>
    %333 = vector.shape_cast %332 : vector<1x32x8xbf16> to vector<32x8xbf16>
    %cst_146 = arith.constant dense<0.000000e+00> : vector<16x8xf32>
    %334 = tpu.matmul %313, %333, %cst_146 {dimension_numbers = #tpu.dot_dimension_numbers<[1], [0], [0], [1], [0, 0, 1, 1], [], []>} : vector<16x32xbf16>, vector<32x8xbf16>, vector<16x8xf32> -> vector<16x8xf32>
    %c14_147 = arith.constant 14 : index
    %c0_148 = arith.constant 0 : index
    %335 = vector.load %arg6[%c14_147, %c0_148] : memref<24x8xf32, #tpu.memory_space<vmem>>, vector<1x8xf32>
    %336 = vector.shape_cast %335 : vector<1x8xf32> to vector<8xf32>
    %337 = vector.shape_cast %336 : vector<8xf32> to vector<1x8xf32>
    %338 = vector.broadcast %337 : vector<1x8xf32> to vector<16x8xf32>
    %339 = arith.addf %334, %338 : vector<16x8xf32>
    %340 = vector.shape_cast %339 : vector<16x8xf32> to vector<2x8x8xf32>
    %c15 = arith.constant 15 : index
    %c0_149 = arith.constant 0 : index
    %c0_150 = arith.constant 0 : index
    %341 = vector.load %arg5[%c15, %c0_149, %c0_150] : memref<24x32x8xbf16, #tpu.memory_space<vmem>>, vector<1x32x8xbf16>
    %342 = vector.shape_cast %341 : vector<1x32x8xbf16> to vector<32x8xbf16>
    %cst_151 = arith.constant dense<0.000000e+00> : vector<16x8xf32>
    %343 = tpu.matmul %313, %342, %cst_151 {dimension_numbers = #tpu.dot_dimension_numbers<[1], [0], [0], [1], [0, 0, 1, 1], [], []>} : vector<16x32xbf16>, vector<32x8xbf16>, vector<16x8xf32> -> vector<16x8xf32>
    %c15_152 = arith.constant 15 : index
    %c0_153 = arith.constant 0 : index
    %344 = vector.load %arg6[%c15_152, %c0_153] : memref<24x8xf32, #tpu.memory_space<vmem>>, vector<1x8xf32>
    %345 = vector.shape_cast %344 : vector<1x8xf32> to vector<8xf32>
    %346 = vector.shape_cast %345 : vector<8xf32> to vector<1x8xf32>
    %347 = vector.broadcast %346 : vector<1x8xf32> to vector<16x8xf32>
    %348 = arith.addf %343, %347 : vector<16x8xf32>
    %349 = vector.shape_cast %348 : vector<16x8xf32> to vector<2x8x8xf32>
    %350 = vector.shape_cast %322 : vector<2x8x8xf32> to vector<1x2x8x8xf32>
    %351 = vector.shape_cast %331 : vector<2x8x8xf32> to vector<1x2x8x8xf32>
    %352 = vector.shape_cast %340 : vector<2x8x8xf32> to vector<1x2x8x8xf32>
    %353 = vector.shape_cast %349 : vector<2x8x8xf32> to vector<1x2x8x8xf32>
    %354 = tpu.concatenate %350, %351, %352, %353 in 0 : vector<1x2x8x8xf32>, vector<1x2x8x8xf32>, vector<1x2x8x8xf32>, vector<1x2x8x8xf32> -> vector<4x2x8x8xf32>
    %355 = vector.shape_cast %354 : vector<4x2x8x8xf32> to vector<8x8x8xf32>
    %c16 = arith.constant 16 : index
    %c0_154 = arith.constant 0 : index
    %c0_155 = arith.constant 0 : index
    %356 = vector.load %arg5[%c16, %c0_154, %c0_155] : memref<24x32x8xbf16, #tpu.memory_space<vmem>>, vector<1x32x8xbf16>
    %357 = vector.shape_cast %356 : vector<1x32x8xbf16> to vector<32x8xbf16>
    %cst_156 = arith.constant dense<0.000000e+00> : vector<16x8xf32>
    %358 = tpu.matmul %313, %357, %cst_156 {dimension_numbers = #tpu.dot_dimension_numbers<[1], [0], [0], [1], [0, 0, 1, 1], [], []>} : vector<16x32xbf16>, vector<32x8xbf16>, vector<16x8xf32> -> vector<16x8xf32>
    %c16_157 = arith.constant 16 : index
    %c0_158 = arith.constant 0 : index
    %359 = vector.load %arg6[%c16_157, %c0_158] : memref<24x8xf32, #tpu.memory_space<vmem>>, vector<1x8xf32>
    %360 = vector.shape_cast %359 : vector<1x8xf32> to vector<8xf32>
    %361 = vector.shape_cast %360 : vector<8xf32> to vector<1x8xf32>
    %362 = vector.broadcast %361 : vector<1x8xf32> to vector<16x8xf32>
    %363 = arith.addf %358, %362 : vector<16x8xf32>
    %364 = vector.shape_cast %363 : vector<16x8xf32> to vector<2x8x8xf32>
    %c17 = arith.constant 17 : index
    %c0_159 = arith.constant 0 : index
    %c0_160 = arith.constant 0 : index
    %365 = vector.load %arg5[%c17, %c0_159, %c0_160] : memref<24x32x8xbf16, #tpu.memory_space<vmem>>, vector<1x32x8xbf16>
    %366 = vector.shape_cast %365 : vector<1x32x8xbf16> to vector<32x8xbf16>
    %cst_161 = arith.constant dense<0.000000e+00> : vector<16x8xf32>
    %367 = tpu.matmul %313, %366, %cst_161 {dimension_numbers = #tpu.dot_dimension_numbers<[1], [0], [0], [1], [0, 0, 1, 1], [], []>} : vector<16x32xbf16>, vector<32x8xbf16>, vector<16x8xf32> -> vector<16x8xf32>
    %c17_162 = arith.constant 17 : index
    %c0_163 = arith.constant 0 : index
    %368 = vector.load %arg6[%c17_162, %c0_163] : memref<24x8xf32, #tpu.memory_space<vmem>>, vector<1x8xf32>
    %369 = vector.shape_cast %368 : vector<1x8xf32> to vector<8xf32>
    %370 = vector.shape_cast %369 : vector<8xf32> to vector<1x8xf32>
    %371 = vector.broadcast %370 : vector<1x8xf32> to vector<16x8xf32>
    %372 = arith.addf %367, %371 : vector<16x8xf32>
    %373 = vector.shape_cast %372 : vector<16x8xf32> to vector<2x8x8xf32>
    %c18 = arith.constant 18 : index
    %c0_164 = arith.constant 0 : index
    %c0_165 = arith.constant 0 : index
    %374 = vector.load %arg5[%c18, %c0_164, %c0_165] : memref<24x32x8xbf16, #tpu.memory_space<vmem>>, vector<1x32x8xbf16>
    %375 = vector.shape_cast %374 : vector<1x32x8xbf16> to vector<32x8xbf16>
    %cst_166 = arith.constant dense<0.000000e+00> : vector<16x8xf32>
    %376 = tpu.matmul %313, %375, %cst_166 {dimension_numbers = #tpu.dot_dimension_numbers<[1], [0], [0], [1], [0, 0, 1, 1], [], []>} : vector<16x32xbf16>, vector<32x8xbf16>, vector<16x8xf32> -> vector<16x8xf32>
    %c18_167 = arith.constant 18 : index
    %c0_168 = arith.constant 0 : index
    %377 = vector.load %arg6[%c18_167, %c0_168] : memref<24x8xf32, #tpu.memory_space<vmem>>, vector<1x8xf32>
    %378 = vector.shape_cast %377 : vector<1x8xf32> to vector<8xf32>
    %379 = vector.shape_cast %378 : vector<8xf32> to vector<1x8xf32>
    %380 = vector.broadcast %379 : vector<1x8xf32> to vector<16x8xf32>
    %381 = arith.addf %376, %380 : vector<16x8xf32>
    %382 = vector.shape_cast %381 : vector<16x8xf32> to vector<2x8x8xf32>
    %c19 = arith.constant 19 : index
    %c0_169 = arith.constant 0 : index
    %c0_170 = arith.constant 0 : index
    %383 = vector.load %arg5[%c19, %c0_169, %c0_170] : memref<24x32x8xbf16, #tpu.memory_space<vmem>>, vector<1x32x8xbf16>
    %384 = vector.shape_cast %383 : vector<1x32x8xbf16> to vector<32x8xbf16>
    %cst_171 = arith.constant dense<0.000000e+00> : vector<16x8xf32>
    %385 = tpu.matmul %313, %384, %cst_171 {dimension_numbers = #tpu.dot_dimension_numbers<[1], [0], [0], [1], [0, 0, 1, 1], [], []>} : vector<16x32xbf16>, vector<32x8xbf16>, vector<16x8xf32> -> vector<16x8xf32>
    %c19_172 = arith.constant 19 : index
    %c0_173 = arith.constant 0 : index
    %386 = vector.load %arg6[%c19_172, %c0_173] : memref<24x8xf32, #tpu.memory_space<vmem>>, vector<1x8xf32>
    %387 = vector.shape_cast %386 : vector<1x8xf32> to vector<8xf32>
    %388 = vector.shape_cast %387 : vector<8xf32> to vector<1x8xf32>
    %389 = vector.broadcast %388 : vector<1x8xf32> to vector<16x8xf32>
    %390 = arith.addf %385, %389 : vector<16x8xf32>
    %391 = vector.shape_cast %390 : vector<16x8xf32> to vector<2x8x8xf32>
    %392 = vector.shape_cast %364 : vector<2x8x8xf32> to vector<1x2x8x8xf32>
    %393 = vector.shape_cast %373 : vector<2x8x8xf32> to vector<1x2x8x8xf32>
    %394 = vector.shape_cast %382 : vector<2x8x8xf32> to vector<1x2x8x8xf32>
    %395 = vector.shape_cast %391 : vector<2x8x8xf32> to vector<1x2x8x8xf32>
    %396 = tpu.concatenate %392, %393, %394, %395 in 0 : vector<1x2x8x8xf32>, vector<1x2x8x8xf32>, vector<1x2x8x8xf32>, vector<1x2x8x8xf32> -> vector<4x2x8x8xf32>
    %397 = vector.shape_cast %396 : vector<4x2x8x8xf32> to vector<8x8x8xf32>
    %c20 = arith.constant 20 : index
    %c0_174 = arith.constant 0 : index
    %c0_175 = arith.constant 0 : index
    %398 = vector.load %arg5[%c20, %c0_174, %c0_175] : memref<24x32x8xbf16, #tpu.memory_space<vmem>>, vector<1x32x8xbf16>
    %399 = vector.shape_cast %398 : vector<1x32x8xbf16> to vector<32x8xbf16>
    %cst_176 = arith.constant dense<0.000000e+00> : vector<16x8xf32>
    %400 = tpu.matmul %313, %399, %cst_176 {dimension_numbers = #tpu.dot_dimension_numbers<[1], [0], [0], [1], [0, 0, 1, 1], [], []>} : vector<16x32xbf16>, vector<32x8xbf16>, vector<16x8xf32> -> vector<16x8xf32>
    %c20_177 = arith.constant 20 : index
    %c0_178 = arith.constant 0 : index
    %401 = vector.load %arg6[%c20_177, %c0_178] : memref<24x8xf32, #tpu.memory_space<vmem>>, vector<1x8xf32>
    %402 = vector.shape_cast %401 : vector<1x8xf32> to vector<8xf32>
    %403 = vector.shape_cast %402 : vector<8xf32> to vector<1x8xf32>
    %404 = vector.broadcast %403 : vector<1x8xf32> to vector<16x8xf32>
    %405 = arith.addf %400, %404 : vector<16x8xf32>
    %406 = vector.shape_cast %405 : vector<16x8xf32> to vector<2x8x8xf32>
    %c21 = arith.constant 21 : index
    %c0_179 = arith.constant 0 : index
    %c0_180 = arith.constant 0 : index
    %407 = vector.load %arg5[%c21, %c0_179, %c0_180] : memref<24x32x8xbf16, #tpu.memory_space<vmem>>, vector<1x32x8xbf16>
    %408 = vector.shape_cast %407 : vector<1x32x8xbf16> to vector<32x8xbf16>
    %cst_181 = arith.constant dense<0.000000e+00> : vector<16x8xf32>
    %409 = tpu.matmul %313, %408, %cst_181 {dimension_numbers = #tpu.dot_dimension_numbers<[1], [0], [0], [1], [0, 0, 1, 1], [], []>} : vector<16x32xbf16>, vector<32x8xbf16>, vector<16x8xf32> -> vector<16x8xf32>
    %c21_182 = arith.constant 21 : index
    %c0_183 = arith.constant 0 : index
    %410 = vector.load %arg6[%c21_182, %c0_183] : memref<24x8xf32, #tpu.memory_space<vmem>>, vector<1x8xf32>
    %411 = vector.shape_cast %410 : vector<1x8xf32> to vector<8xf32>
    %412 = vector.shape_cast %411 : vector<8xf32> to vector<1x8xf32>
    %413 = vector.broadcast %412 : vector<1x8xf32> to vector<16x8xf32>
    %414 = arith.addf %409, %413 : vector<16x8xf32>
    %415 = vector.shape_cast %414 : vector<16x8xf32> to vector<2x8x8xf32>
    %c22 = arith.constant 22 : index
    %c0_184 = arith.constant 0 : index
    %c0_185 = arith.constant 0 : index
    %416 = vector.load %arg5[%c22, %c0_184, %c0_185] : memref<24x32x8xbf16, #tpu.memory_space<vmem>>, vector<1x32x8xbf16>
    %417 = vector.shape_cast %416 : vector<1x32x8xbf16> to vector<32x8xbf16>
    %cst_186 = arith.constant dense<0.000000e+00> : vector<16x8xf32>
    %418 = tpu.matmul %313, %417, %cst_186 {dimension_numbers = #tpu.dot_dimension_numbers<[1], [0], [0], [1], [0, 0, 1, 1], [], []>} : vector<16x32xbf16>, vector<32x8xbf16>, vector<16x8xf32> -> vector<16x8xf32>
    %c22_187 = arith.constant 22 : index
    %c0_188 = arith.constant 0 : index
    %419 = vector.load %arg6[%c22_187, %c0_188] : memref<24x8xf32, #tpu.memory_space<vmem>>, vector<1x8xf32>
    %420 = vector.shape_cast %419 : vector<1x8xf32> to vector<8xf32>
    %421 = vector.shape_cast %420 : vector<8xf32> to vector<1x8xf32>
    %422 = vector.broadcast %421 : vector<1x8xf32> to vector<16x8xf32>
    %423 = arith.addf %418, %422 : vector<16x8xf32>
    %424 = vector.shape_cast %423 : vector<16x8xf32> to vector<2x8x8xf32>
    %c23 = arith.constant 23 : index
    %c0_189 = arith.constant 0 : index
    %c0_190 = arith.constant 0 : index
    %425 = vector.load %arg5[%c23, %c0_189, %c0_190] : memref<24x32x8xbf16, #tpu.memory_space<vmem>>, vector<1x32x8xbf16>
    %426 = vector.shape_cast %425 : vector<1x32x8xbf16> to vector<32x8xbf16>
    %cst_191 = arith.constant dense<0.000000e+00> : vector<16x8xf32>
    %427 = tpu.matmul %313, %426, %cst_191 {dimension_numbers = #tpu.dot_dimension_numbers<[1], [0], [0], [1], [0, 0, 1, 1], [], []>} : vector<16x32xbf16>, vector<32x8xbf16>, vector<16x8xf32> -> vector<16x8xf32>
    %c23_192 = arith.constant 23 : index
    %c0_193 = arith.constant 0 : index
    %428 = vector.load %arg6[%c23_192, %c0_193] : memref<24x8xf32, #tpu.memory_space<vmem>>, vector<1x8xf32>
    %429 = vector.shape_cast %428 : vector<1x8xf32> to vector<8xf32>
    %430 = vector.shape_cast %429 : vector<8xf32> to vector<1x8xf32>
    %431 = vector.broadcast %430 : vector<1x8xf32> to vector<16x8xf32>
    %432 = arith.addf %427, %431 : vector<16x8xf32>
    %433 = vector.shape_cast %432 : vector<16x8xf32> to vector<2x8x8xf32>
    %434 = vector.shape_cast %406 : vector<2x8x8xf32> to vector<1x2x8x8xf32>
    %435 = vector.shape_cast %415 : vector<2x8x8xf32> to vector<1x2x8x8xf32>
    %436 = vector.shape_cast %424 : vector<2x8x8xf32> to vector<1x2x8x8xf32>
    %437 = vector.shape_cast %433 : vector<2x8x8xf32> to vector<1x2x8x8xf32>
    %438 = tpu.concatenate %434, %435, %436, %437 in 0 : vector<1x2x8x8xf32>, vector<1x2x8x8xf32>, vector<1x2x8x8xf32>, vector<1x2x8x8xf32> -> vector<4x2x8x8xf32>
    %439 = vector.shape_cast %438 : vector<4x2x8x8xf32> to vector<8x8x8xf32>
    %440 = arith.truncf %355 : vector<8x8x8xf32> to vector<8x8x8xbf16>
    %441 = arith.truncf %397 : vector<8x8x8xf32> to vector<8x8x8xbf16>
    "tpu.trace_start"() <{level = 10 : i32, message = "gqd,gkd->gqk"}> : () -> ()
    %cst_194 = arith.constant dense<0.000000e+00> : vector<8x8x8xf32>
    %442 = tpu.matmul %440, %441, %cst_194 {dimension_numbers = #tpu.dot_dimension_numbers<[2], [2], [1], [1], [0, 0, 0, 1, 1, 1], [0], [0]>} : vector<8x8x8xbf16>, vector<8x8x8xbf16>, vector<8x8x8xf32> -> vector<8x8x8xf32>
    "tpu.trace_stop"() : () -> ()
    %443 = vector.broadcast %50 : vector<8x1x8xf32> to vector<8x8x8xf32>
    %444 = arith.addf %442, %443 : vector<8x8x8xf32>
    %cst_195 = arith.constant dense<0xFF800000> : vector<8x8xf32>
    %445 = vector.multi_reduction <maximumf>, %444, %cst_195 [2] : vector<8x8x8xf32> to vector<8x8xf32>
    %446 = vector.shape_cast %445 : vector<8x8xf32> to vector<8x8x1xf32>
    %447 = vector.broadcast %446 : vector<8x8x1xf32> to vector<8x8x8xf32>
    %448 = arith.subf %444, %447 : vector<8x8x8xf32>
    %449 = math.exp %448 : vector<8x8x8xf32>
    %cst_196 = arith.constant dense<0.000000e+00> : vector<8x8xf32>
    %450 = vector.multi_reduction <add>, %449, %cst_196 [2] : vector<8x8x8xf32> to vector<8x8xf32>
    %451 = vector.shape_cast %450 : vector<8x8xf32> to vector<8x8x1xf32>
    %452 = tpu.reciprocal %451 {approx = true} : vector<8x8x1xf32> -> vector<8x8x1xf32>
    %453 = vector.broadcast %452 : vector<8x8x1xf32> to vector<8x8x8xf32>
    %454 = arith.mulf %449, %453 : vector<8x8x8xf32>
    %455 = arith.truncf %454 : vector<8x8x8xf32> to vector<8x8x8xbf16>
    %456 = arith.truncf %439 : vector<8x8x8xf32> to vector<8x8x8xbf16>
    "tpu.trace_start"() <{level = 10 : i32, message = "gqk,gkd->gqd"}> : () -> ()
    %cst_197 = arith.constant dense<0.000000e+00> : vector<8x8x8xf32>
    %457 = tpu.matmul %455, %456, %cst_197 {dimension_numbers = #tpu.dot_dimension_numbers<[2], [1], [1], [2], [0, 0, 0, 1, 1, 2], [0], [0]>} : vector<8x8x8xbf16>, vector<8x8x8xbf16>, vector<8x8x8xf32> -> vector<8x8x8xf32>
    "tpu.trace_stop"() : () -> ()
    %458 = vector.shape_cast %457 : vector<8x8x8xf32> to vector<4x16x8xf32>
    %c1_198 = arith.constant 1 : index
    %c0_199 = arith.constant 0 : index
    %c0_200 = arith.constant 0 : index
    %459 = vector.load %arg7[%c1_198, %c0_199, %c0_200] : memref<2x32x32xbf16, #tpu.memory_space<vmem>>, vector<1x32x32xbf16>
    %460 = vector.shape_cast %459 : vector<1x32x32xbf16> to vector<32x32xbf16>
    %cst_201 = arith.constant 0.000000e+00 : f32
    %461 = vector.broadcast %cst_201 : f32 to vector<16x32xf32>
    %462 = vector.extract_strided_slice %458 {offsets = [0, 0, 0], sizes = [1, 16, 8], strides = [1, 1, 1]} : vector<4x16x8xf32> to vector<1x16x8xf32>
    %463 = vector.shape_cast %462 : vector<1x16x8xf32> to vector<16x8xf32>
    %464 = arith.truncf %463 : vector<16x8xf32> to vector<16x8xbf16>
    %465 = vector.extract_strided_slice %460 {offsets = [0, 0], sizes = [8, 32], strides = [1, 1]} : vector<32x32xbf16> to vector<8x32xbf16>
    %cst_202 = arith.constant dense<0.000000e+00> : vector<16x32xf32>
    %466 = tpu.matmul %464, %465, %cst_202 {dimension_numbers = #tpu.dot_dimension_numbers<[1], [0], [0], [1], [0, 0, 1, 1], [], []>} : vector<16x8xbf16>, vector<8x32xbf16>, vector<16x32xf32> -> vector<16x32xf32>
    %467 = arith.addf %461, %466 : vector<16x32xf32>
    %468 = vector.extract_strided_slice %458 {offsets = [1, 0, 0], sizes = [1, 16, 8], strides = [1, 1, 1]} : vector<4x16x8xf32> to vector<1x16x8xf32>
    %469 = vector.shape_cast %468 : vector<1x16x8xf32> to vector<16x8xf32>
    %470 = arith.truncf %469 : vector<16x8xf32> to vector<16x8xbf16>
    %471 = vector.extract_strided_slice %460 {offsets = [8, 0], sizes = [8, 32], strides = [1, 1]} : vector<32x32xbf16> to vector<8x32xbf16>
    %cst_203 = arith.constant dense<0.000000e+00> : vector<16x32xf32>
    %472 = tpu.matmul %470, %471, %cst_203 {dimension_numbers = #tpu.dot_dimension_numbers<[1], [0], [0], [1], [0, 0, 1, 1], [], []>} : vector<16x8xbf16>, vector<8x32xbf16>, vector<16x32xf32> -> vector<16x32xf32>
    %473 = arith.addf %467, %472 : vector<16x32xf32>
    %474 = vector.extract_strided_slice %458 {offsets = [2, 0, 0], sizes = [1, 16, 8], strides = [1, 1, 1]} : vector<4x16x8xf32> to vector<1x16x8xf32>
    %475 = vector.shape_cast %474 : vector<1x16x8xf32> to vector<16x8xf32>
    %476 = arith.truncf %475 : vector<16x8xf32> to vector<16x8xbf16>
    %477 = vector.extract_strided_slice %460 {offsets = [16, 0], sizes = [8, 32], strides = [1, 1]} : vector<32x32xbf16> to vector<8x32xbf16>
    %cst_204 = arith.constant dense<0.000000e+00> : vector<16x32xf32>
    %478 = tpu.matmul %476, %477, %cst_204 {dimension_numbers = #tpu.dot_dimension_numbers<[1], [0], [0], [1], [0, 0, 1, 1], [], []>} : vector<16x8xbf16>, vector<8x32xbf16>, vector<16x32xf32> -> vector<16x32xf32>
    %479 = arith.addf %473, %478 : vector<16x32xf32>
    %480 = vector.extract_strided_slice %458 {offsets = [3, 0, 0], sizes = [1, 16, 8], strides = [1, 1, 1]} : vector<4x16x8xf32> to vector<1x16x8xf32>
    %481 = vector.shape_cast %480 : vector<1x16x8xf32> to vector<16x8xf32>
    %482 = arith.truncf %481 : vector<16x8xf32> to vector<16x8xbf16>
    %483 = vector.extract_strided_slice %460 {offsets = [24, 0], sizes = [8, 32], strides = [1, 1]} : vector<32x32xbf16> to vector<8x32xbf16>
    %cst_205 = arith.constant dense<0.000000e+00> : vector<16x32xf32>
    %484 = tpu.matmul %482, %483, %cst_205 {dimension_numbers = #tpu.dot_dimension_numbers<[1], [0], [0], [1], [0, 0, 1, 1], [], []>} : vector<16x8xbf16>, vector<8x32xbf16>, vector<16x32xf32> -> vector<16x32xf32>
    %485 = arith.addf %479, %484 : vector<16x32xf32>
    %c1_206 = arith.constant 1 : index
    %c0_207 = arith.constant 0 : index
    %c0_208 = arith.constant 0 : index
    %486 = vector.load %arg8[%c1_206, %c0_207, %c0_208] : memref<2x6x32xf32, #tpu.memory_space<vmem>>, vector<1x1x32xf32>
    %487 = vector.shape_cast %486 : vector<1x1x32xf32> to vector<32xf32>
    %488 = vector.shape_cast %487 : vector<32xf32> to vector<1x32xf32>
    %489 = vector.broadcast %488 : vector<1x32xf32> to vector<16x32xf32>
    %490 = arith.addf %485, %489 : vector<16x32xf32>
    %491 = arith.addf %312, %490 : vector<16x32xf32>
    %c1_209 = arith.constant 1 : index
    %c1_210 = arith.constant 1 : index
    %c0_211 = arith.constant 0 : index
    %492 = vector.load %arg8[%c1_209, %c1_210, %c0_211] : memref<2x6x32xf32, #tpu.memory_space<vmem>>, vector<1x1x32xf32>
    %493 = vector.shape_cast %492 : vector<1x1x32xf32> to vector<32xf32>
    %c1_212 = arith.constant 1 : index
    %c2_213 = arith.constant 2 : index
    %c0_214 = arith.constant 0 : index
    %494 = vector.load %arg8[%c1_212, %c2_213, %c0_214] : memref<2x6x32xf32, #tpu.memory_space<vmem>>, vector<1x1x32xf32>
    %495 = vector.shape_cast %494 : vector<1x1x32xf32> to vector<32xf32>
    %cst_215 = arith.constant dense<0.000000e+00> : vector<16xf32>
    %496 = vector.multi_reduction <add>, %491, %cst_215 [1] : vector<16x32xf32> to vector<16xf32>
    %497 = vector.shape_cast %496 : vector<16xf32> to vector<16x1xf32>
    %cst_216 = arith.constant 3.200000e+01 : f32
    %498 = vector.broadcast %cst_216 : f32 to vector<16x1xf32>
    %499 = arith.divf %497, %498 : vector<16x1xf32>
    %500 = vector.broadcast %499 : vector<16x1xf32> to vector<16x32xf32>
    %501 = arith.subf %491, %500 : vector<16x32xf32>
    %502 = arith.mulf %501, %501 : vector<16x32xf32>
    %cst_217 = arith.constant dense<0.000000e+00> : vector<16xf32>
    %503 = vector.multi_reduction <add>, %502, %cst_217 [1] : vector<16x32xf32> to vector<16xf32>
    %504 = vector.shape_cast %503 : vector<16xf32> to vector<16x1xf32>
    %cst_218 = arith.constant 3.200000e+01 : f32
    %505 = vector.broadcast %cst_218 : f32 to vector<16x1xf32>
    %506 = arith.divf %504, %505 : vector<16x1xf32>
    %cst_219 = arith.constant 9.99999996E-13 : f32
    %507 = vector.broadcast %cst_219 : f32 to vector<16x1xf32>
    %508 = arith.addf %506, %507 : vector<16x1xf32>
    %509 = math.rsqrt %508 : vector<16x1xf32>
    %510 = vector.broadcast %509 : vector<16x1xf32> to vector<16x32xf32>
    %511 = arith.mulf %501, %510 : vector<16x32xf32>
    %512 = vector.shape_cast %493 : vector<32xf32> to vector<1x32xf32>
    %513 = vector.broadcast %512 : vector<1x32xf32> to vector<16x32xf32>
    %514 = arith.mulf %511, %513 : vector<16x32xf32>
    %515 = vector.shape_cast %495 : vector<32xf32> to vector<1x32xf32>
    %516 = vector.broadcast %515 : vector<1x32xf32> to vector<16x32xf32>
    %517 = arith.addf %514, %516 : vector<16x32xf32>
    %518 = arith.truncf %517 : vector<16x32xf32> to vector<16x32xbf16>
    %c1_220 = arith.constant 1 : index
    %c0_221 = arith.constant 0 : index
    %c0_222 = arith.constant 0 : index
    %519 = vector.load %arg9[%c1_220, %c0_221, %c0_222] : memref<2x32x64xbf16, #tpu.memory_space<vmem>>, vector<1x32x64xbf16>
    %520 = vector.shape_cast %519 : vector<1x32x64xbf16> to vector<32x64xbf16>
    %cst_223 = arith.constant dense<0.000000e+00> : vector<16x64xf32>
    %521 = tpu.matmul %518, %520, %cst_223 {dimension_numbers = #tpu.dot_dimension_numbers<[1], [0], [0], [1], [0, 0, 1, 1], [], []>} : vector<16x32xbf16>, vector<32x64xbf16>, vector<16x64xf32> -> vector<16x64xf32>
    %c1_224 = arith.constant 1 : index
    %c0_225 = arith.constant 0 : index
    %c0_226 = arith.constant 0 : index
    %522 = vector.load %arg10[%c1_224, %c0_225, %c0_226] : memref<2x1x64xf32, #tpu.memory_space<vmem>>, vector<1x1x64xf32>
    %523 = vector.shape_cast %522 : vector<1x1x64xf32> to vector<1x64xf32>
    %524 = vector.broadcast %523 : vector<1x64xf32> to vector<16x64xf32>
    %525 = arith.addf %521, %524 : vector<16x64xf32>
    %cst_227 = arith.constant 5.000000e-01 : f32
    %526 = vector.broadcast %cst_227 : f32 to vector<16x64xf32>
    %527 = arith.mulf %526, %525 : vector<16x64xf32>
    %cst_228 = arith.constant 4.471500e-02 : f32
    %528 = vector.broadcast %cst_228 : f32 to vector<16x64xf32>
    %529 = arith.mulf %528, %525 : vector<16x64xf32>
    %530 = arith.mulf %529, %525 : vector<16x64xf32>
    %531 = arith.mulf %530, %525 : vector<16x64xf32>
    %532 = arith.addf %525, %531 : vector<16x64xf32>
    %cst_229 = arith.constant 0.797884583 : f32
    %533 = vector.broadcast %cst_229 : f32 to vector<16x64xf32>
    %534 = arith.mulf %533, %532 : vector<16x64xf32>
    %535 = math.tanh %534 : vector<16x64xf32>
    %cst_230 = arith.constant 1.000000e+00 : f32
    %536 = vector.broadcast %cst_230 : f32 to vector<16x64xf32>
    %537 = arith.addf %536, %535 : vector<16x64xf32>
    %538 = arith.mulf %527, %537 : vector<16x64xf32>
    %539 = arith.truncf %538 : vector<16x64xf32> to vector<16x64xbf16>
    %c1_231 = arith.constant 1 : index
    %c0_232 = arith.constant 0 : index
    %c0_233 = arith.constant 0 : index
    %540 = vector.load %arg11[%c1_231, %c0_232, %c0_233] : memref<2x64x32xbf16, #tpu.memory_space<vmem>>, vector<1x64x32xbf16>
    %541 = vector.shape_cast %540 : vector<1x64x32xbf16> to vector<64x32xbf16>
    %cst_234 = arith.constant dense<0.000000e+00> : vector<16x32xf32>
    %542 = tpu.matmul %539, %541, %cst_234 {dimension_numbers = #tpu.dot_dimension_numbers<[1], [0], [0], [1], [0, 0, 1, 1], [], []>} : vector<16x64xbf16>, vector<64x32xbf16>, vector<16x32xf32> -> vector<16x32xf32>
    %c1_235 = arith.constant 1 : index
    %c3_236 = arith.constant 3 : index
    %c0_237 = arith.constant 0 : index
    %543 = vector.load %arg8[%c1_235, %c3_236, %c0_237] : memref<2x6x32xf32, #tpu.memory_space<vmem>>, vector<1x1x32xf32>
    %544 = vector.shape_cast %543 : vector<1x1x32xf32> to vector<32xf32>
    %545 = vector.shape_cast %544 : vector<32xf32> to vector<1x32xf32>
    %546 = vector.broadcast %545 : vector<1x32xf32> to vector<16x32xf32>
    %547 = arith.addf %542, %546 : vector<16x32xf32>
    %548 = arith.addf %517, %547 : vector<16x32xf32>
    %c1_238 = arith.constant 1 : index
    %c4_239 = arith.constant 4 : index
    %c0_240 = arith.constant 0 : index
    %549 = vector.load %arg8[%c1_238, %c4_239, %c0_240] : memref<2x6x32xf32, #tpu.memory_space<vmem>>, vector<1x1x32xf32>
    %550 = vector.shape_cast %549 : vector<1x1x32xf32> to vector<32xf32>
    %c1_241 = arith.constant 1 : index
    %c5_242 = arith.constant 5 : index
    %c0_243 = arith.constant 0 : index
    %551 = vector.load %arg8[%c1_241, %c5_242, %c0_243] : memref<2x6x32xf32, #tpu.memory_space<vmem>>, vector<1x1x32xf32>
    %552 = vector.shape_cast %551 : vector<1x1x32xf32> to vector<32xf32>
    %cst_244 = arith.constant dense<0.000000e+00> : vector<16xf32>
    %553 = vector.multi_reduction <add>, %548, %cst_244 [1] : vector<16x32xf32> to vector<16xf32>
    %554 = vector.shape_cast %553 : vector<16xf32> to vector<16x1xf32>
    %cst_245 = arith.constant 3.200000e+01 : f32
    %555 = vector.broadcast %cst_245 : f32 to vector<16x1xf32>
    %556 = arith.divf %554, %555 : vector<16x1xf32>
    %557 = vector.broadcast %556 : vector<16x1xf32> to vector<16x32xf32>
    %558 = arith.subf %548, %557 : vector<16x32xf32>
    %559 = arith.mulf %558, %558 : vector<16x32xf32>
    %cst_246 = arith.constant dense<0.000000e+00> : vector<16xf32>
    %560 = vector.multi_reduction <add>, %559, %cst_246 [1] : vector<16x32xf32> to vector<16xf32>
    %561 = vector.shape_cast %560 : vector<16xf32> to vector<16x1xf32>
    %cst_247 = arith.constant 3.200000e+01 : f32
    %562 = vector.broadcast %cst_247 : f32 to vector<16x1xf32>
    %563 = arith.divf %561, %562 : vector<16x1xf32>
    %cst_248 = arith.constant 9.99999996E-13 : f32
    %564 = vector.broadcast %cst_248 : f32 to vector<16x1xf32>
    %565 = arith.addf %563, %564 : vector<16x1xf32>
    %566 = math.rsqrt %565 : vector<16x1xf32>
    %567 = vector.broadcast %566 : vector<16x1xf32> to vector<16x32xf32>
    %568 = arith.mulf %558, %567 : vector<16x32xf32>
    %569 = vector.shape_cast %550 : vector<32xf32> to vector<1x32xf32>
    %570 = vector.broadcast %569 : vector<1x32xf32> to vector<16x32xf32>
    %571 = arith.mulf %568, %570 : vector<16x32xf32>
    %572 = vector.shape_cast %552 : vector<32xf32> to vector<1x32xf32>
    %573 = vector.broadcast %572 : vector<1x32xf32> to vector<16x32xf32>
    %574 = arith.addf %571, %573 : vector<16x32xf32>
    %575 = vector.shape_cast %574 : vector<16x32xf32> to vector<2x8x32xf32>
    %576 = vector.extract_strided_slice %575 {offsets = [0, 0, 0], sizes = [2, 1, 32], strides = [1, 1, 1]} : vector<2x8x32xf32> to vector<2x1x32xf32>
    %577 = vector.shape_cast %576 : vector<2x1x32xf32> to vector<2x32xf32>
    %578 = arith.truncf %577 : vector<2x32xf32> to vector<2x32xbf16>
    %c0_249 = arith.constant 0 : index
    %c0_250 = arith.constant 0 : index
    %579 = vector.load %arg12[%c0_249, %c0_250] : memref<32x128xbf16, #tpu.memory_space<vmem>>, vector<32x128xbf16>
    %cst_251 = arith.constant dense<0.000000e+00> : vector<2x128xf32>
    %580 = tpu.matmul %578, %579, %cst_251 {dimension_numbers = #tpu.dot_dimension_numbers<[1], [0], [0], [1], [0, 0, 1, 1], [], []>} : vector<2x32xbf16>, vector<32x128xbf16>, vector<2x128xf32> -> vector<2x128xf32>
    %c0_252 = arith.constant 0 : index
    %c0_253 = arith.constant 0 : index
    %581 = vector.load %arg14[%c0_252, %c0_253] : memref<2x128xf32, #tpu.memory_space<vmem>>, vector<1x128xf32>
    %582 = vector.shape_cast %581 : vector<1x128xf32> to vector<128xf32>
    %583 = vector.shape_cast %582 : vector<128xf32> to vector<1x128xf32>
    %584 = vector.broadcast %583 : vector<1x128xf32> to vector<2x128xf32>
    %585 = arith.addf %580, %584 : vector<2x128xf32>
    %cst_254 = arith.constant 0.000000e+00 : f32
    %586 = vector.broadcast %cst_254 : f32 to vector<2x128xf32>
    %587 = arith.maximumf %585, %586 : vector<2x128xf32>
    %588 = arith.truncf %587 : vector<2x128xf32> to vector<2x128xbf16>
    %c0_255 = arith.constant 0 : index
    %c0_256 = arith.constant 0 : index
    %589 = vector.load %arg13[%c0_255, %c0_256] : memref<128x128xbf16, #tpu.memory_space<vmem>>, vector<128x128xbf16>
    %cst_257 = arith.constant dense<0.000000e+00> : vector<2x128xf32>
    %590 = tpu.matmul %588, %589, %cst_257 {dimension_numbers = #tpu.dot_dimension_numbers<[1], [0], [0], [1], [0, 0, 1, 1], [], []>} : vector<2x128xbf16>, vector<128x128xbf16>, vector<2x128xf32> -> vector<2x128xf32>
    %c1_258 = arith.constant 1 : index
    %c0_259 = arith.constant 0 : index
    %591 = vector.load %arg14[%c1_258, %c0_259] : memref<2x128xf32, #tpu.memory_space<vmem>>, vector<1x128xf32>
    %592 = vector.shape_cast %591 : vector<1x128xf32> to vector<128xf32>
    %593 = vector.shape_cast %592 : vector<128xf32> to vector<1x128xf32>
    %594 = vector.broadcast %593 : vector<1x128xf32> to vector<2x128xf32>
    %595 = arith.addf %590, %594 : vector<2x128xf32>
    %c0_260 = arith.constant 0 : index
    %c0_261 = arith.constant 0 : index
    %596 = vector.load %arg15[%c0_260, %c0_261] : memref<2x128xf32, #tpu.memory_space<vmem>>, vector<2x128xf32>
    tpu.vector_store %arg15[%c0_260, %c0_261], %595 {strides = array<i32>} : memref<2x128xf32, #tpu.memory_space<vmem>>, vector<2x128xf32>,
    return
  }
}

</mosaic_0001>

<bundles_post_ra>
// kernel: tpu_custom_call.1
= control target key start
LH: loop header
LB: loop body
LE: loop exit
PB: predicated region body
PF: predicated region fallthrough
CT: control target
= control target key end

     0   :  { %v3385_v2 = vmov 0   ;;  %s4121_s0 = inlined_call_operand.vmem [shape: s32[16,1], index: 0, kind: input, shape index: {}]   ;;  %s4122_s1 = inlined_call_operand.vmem [shape: f32[2,8], index: 1, kind: input, shape index: {}]   ;;  %s4123_s2 = inlined_call_operand.vmem [shape: bf16[128,32], index: 2, kind: input, shape index: {}]   ;;  %s4124_s3 = inlined_call_operand.vmem [shape: f32[64,32], index: 3, kind: input, shape index: {}]   ;;  %s4125_s4 = inlined_call_operand.vmem [shape: f32[2,32], index: 4, kind: input, shape index: {}]   ;;  %s4126_s5 = inlined_call_operand.vmem [shape: bf16[24,32,8], index: 5, kind: input, shape index: {}]   ;;  %s4127_s6 = inlined_call_operand.vmem [shape: f32[24,8], index: 6, kind: input, shape index: {}]   ;;  %s4128_s7 = inlined_call_operand.vmem [shape: bf16[2,32,32], index: 7, kind: input, shape index: {}]   ;;  %s4129_s8 = inlined_call_operand.vmem [shape: f32[2,6,32], index: 8, kind: input, shape index: {}]   ;;  %s4130_s9 = inlined_call_operand.vmem [shape: bf16[2,32,64], index: 9, kind: input, shape index: {}]   ;;  %s4131_s10 = inlined_call_operand.vmem [shape: f32[2,1,64], index: 10, kind: input, shape index: {}]   ;;  %s4132_s11 = inlined_call_operand.vmem [shape: bf16[2,64,32], index: 11, kind: input, shape index: {}]   ;;  %s4133_s12 = inlined_call_operand.vmem [shape: bf16[32,128], index: 12, kind: input, shape index: {}]   ;;  %s4134_s13 = inlined_call_operand.vmem [shape: bf16[128,128], index: 13, kind: input, shape index: {}]   ;;  %s4135_s14 = inlined_call_operand.vmem [shape: f32[2,128], index: 14, kind: input, shape index: {}]   ;;  %s4136_s15 = inlined_call_operand.hbm [shape: f32[2,128], index: 15, kind: output, shape index: {}]  }
   0x1   :  { %v52_v0 = vld [vmem:[%s4121_s0] sm:$0xff]  ;;  %v3147_v1 = vld [vmem:[%s4123_s2 + $0x38] sm:$0xff]  ;;  %3222 = vset.pattern.permute.xlu0 %v3385_v2  ;;  %v3146_v3 = vld [vmem:[%s4123_s2 + $0x30] sm:$0xff] }
   0x2   :  { %57 = vperm.xlu0 %3222, %v52_v0   ;;  %133 = vmatpush.bf16.msra.mxu0 %v3147_v1  ;;  %v3145_v4 = vld [vmem:[%s4123_s2 + $0x28] sm:$0xff]  ;;  %v3144_v6 = vld [vmem:[%s4123_s2 + $0x20] sm:$0xff]  ;;  %v3143_v7 = vld [vmem:[%s4123_s2 + $0x18] sm:$0xff] }
   0x3   :  { %v53_v5 = vld [vmem:[%s4121_s0 + $0x8] sm:$0xff] }
   0x6   :  { %134 = vmatpush.bf16.msra.mxu0 %v3146_v3 }
   0xa   :  { %60 = vperm.xlu0 %3222, %v53_v5   ;;  %135 = vmatpush.bf16.msra.mxu0 %v3145_v4 }
   0xe   :  { %136 = vmatpush.bf16.msra.mxu0 %v3144_v6 }
   0xf   :  { %20 = vsyncpa [#allocation3], 0  ;;  %v3142_v8 = vld [vmem:[%s4123_s2 + $0x10] sm:$0xff]  ;;  %v3141_v9 = vld [vmem:[%s4123_s2 + $0x8] sm:$0xff]  ;;  %v54_v12 = vlaneseq  ;;  %v3386_v15 = vmov 1.0|1.0  }
  0x10   :  { %v3140_v10 = vld [vmem:[%s4123_s2] sm:$0xff]  ;;  %vm152_vm3 = vcmask 261120   ;;  %v3387_v23 = vmov 32.0   ;;  %v3149_v40 = vld [vmem:[%s4126_s5 + $0x8] sm:$0xff]  ;;  %v3151_v41 = vld [vmem:[%s4126_s5 + $0x18] sm:$0xff]  ;;  %vm634_vm11 = vcmask 64512  }
  0x11   :  { %v55_v13 = vand.u32 127, %v54_v12  ;;  %v147_v16 = vld [vmem:[%s4124_s3] sm:$0xff]  ;;  %3265 = vrcp.f32 %v3387_v23  ;;  %v3153_v42 = vld [vmem:[%s4126_s5 + $0x28] sm:$0xff]  ;;  %243 = vmatpush.bf16.msra.mxu1 %v3149_v40  ;;  %276 = vmatpush.bf16.msra.mxu2 %v3151_v41  ;;  %v3150_v46 = vld [vmem:[%s4126_s5 + $0x10] sm:$0xff]  ;;  %vm894_vm12 = vcmask 1043456   ;;  %s3388_s16 = smov [#allocation2]  }
  0x12   :  { %137 = vmatpush.bf16.msra.mxu0 %v3143_v7  ;;  %309 = vmatpush.bf16.msra.mxu3 %v3153_v42  ;;  %v3148_v45 = vld [vmem:[%s4126_s5] sm:$0xff]  ;;  %v3155_v50 = vld [vmem:[%s4126_s5 + $0x38] sm:$0xff]  ;;  %v3157_v51 = vld [vmem:[%s4126_s5 + $0x48] sm:$0xff]  ;;  %s2629_s17 = sshll.u32 %s3388_s16, 4  ;;  %s2630_s17 = int_to_ptr.vmem [resolvable:$true] %s2629_s17 }
  0x13   :  { %v3152_v47 = vld [vmem:[%s4126_s5 + $0x20] sm:$0xff]  ;;  %v3159_v52 = vld [vmem:[%s4126_s5 + $0x58] sm:$0xff]  ;;  %v3154_v54 = vld [vmem:[%s4126_s5 + $0x30] sm:$0xff] }
  0x14   :  { %v3156_v55 = vld [vmem:[%s4126_s5 + $0x40] sm:$0xff]  ;;  %v3158_v58 = vld [vmem:[%s4126_s5 + $0x50] sm:$0xff]  ;;  %v3167_v23 = vld [vmem:[%s4126_s5 + $0x98] sm:$0xff] }
  0x15   :  { %244 = vmatpush.bf16.msra.mxu1 %v3148_v45  ;;  %277 = vmatpush.bf16.msra.mxu2 %v3150_v46  ;;  %v3223_v6 = vld [vmem:[%s4125_s4] ss:$0 sm:$0xff]  ;;  %v3226_v46 = vld [vmem:[%s4127_s6 + $0x1] ss:$0 sm:$0xff] }
  0x16   :  { %138 = vmatpush.bf16.msra.mxu0 %v3142_v8  ;;  %310 = vmatpush.bf16.msra.mxu3 %v3152_v47 }
  0x17   :  { %v3266_v24 = vpop.eup %3265 }
  0x18   :  { %v160_v25 = vmul.f32 32.0, %v3266_v24  ;;  %vm164_vm4 = vweird.f32 %v3266_v24 }
  0x19   :  { %342 = vmatpush.bf16.msrb.mxu1 %v3155_v50  ;;  %375 = vmatpush.bf16.msrb.mxu2 %v3157_v51  ;;  %v3231_v51 = vld [vmem:[%s4127_s6 + $0x6] ss:$0 sm:$0xff] }
  0x1a   :  { %139 = vmatpush.bf16.msra.mxu0 %v3141_v9  ;;  %v161_v26 = vsub.f32 1.0, %v160_v25  ;;  %408 = vmatpush.bf16.msrb.mxu3 %v3159_v52  ;;  %v3166_v25 = vld [vmem:[%s4126_s5 + $0x90] sm:$0xff] }
  0x1c   :  { %v162_v27 = vmul.f32 %v3266_v24, %v161_v26  ;;  %v3170_v26 = vld [vmem:[%s4126_s5 + $0xb0] sm:$0xff] }
  0x1d   :  { %343 = vmatpush.bf16.msrb.mxu1 %v3154_v54  ;;  %376 = vmatpush.bf16.msrb.mxu2 %v3156_v55 }
  0x1e   :  { %140 = vmatpush.bf16.msra.mxu0 %v3140_v10  ;;  %v163_v28 = vadd.f32 %v3266_v24, %v162_v27  ;;  %409 = vmatpush.bf16.msrb.mxu3 %v3158_v58  ;;  %v3224_v10 = vld [vmem:[%s4125_s4 + $0x1] ss:$0 sm:$0xff]  ;;  %v3169_v27 = vld [vmem:[%s4126_s5 + $0xa8] sm:$0xff] }
  0x20   :  { %v3504_v29 = vsel %vm164_vm4, %v3266_v24, %v163_v28  ;;  %v3171_v24 = vld [vmem:[%s4126_s5 + $0xb8] sm:$0xff]  ;;  %v3168_v28 = vld [vmem:[%s4126_s5 + $0xa0] sm:$0xff]  ;;  %vm1285_vm4 = vcmask 523264  }
  0x74   :  { %v58_v11 = vpop.permute.xlu0 %57 }
  0x75   :  { %vm62_vm0 = vcmp.eq.s32.totalorder %v55_v13, %v58_v11 }
  0x7c   :  { %v61_v14 = vpop.permute.xlu0 %60 }
  0x7d   :  { %vm63_vm1 = vcmp.eq.s32.totalorder %v55_v13, %v61_v14 }
  0x7e   :  { %vm2674_vm2 = vmpackc.low %vm63_vm1, %vm62_vm0 }
  0x7f   :  { %2675 = vmatmul.msk.bf16.vlgmr.msra.gmra.mxu0 %vm2674_vm2, %v3386_v15 }
  0xfc   :  { %v142_v17 = vpop.f32.mrf.mxu0 }
  0xfd   :  { %v148_v18 = vadd.f32 %v147_v16, %v142_v17 }
  0xff   :  { %v153_v19 = vsel %vm152_vm3, %v148_v18, 0.0 }
 0x100   :  { %154 = vadd.xlane.f32.xlu1 %v153_v19  ;;  %v3165_v19 = vld [vmem:[%s4126_s5 + $0x88] sm:$0xff] }
 0x104   :  { %v144_v20 = vpop.f32.mrf.mxu0 }
 0x105   :  { %v149_v21 = vadd.f32 %v147_v16, %v144_v20  ;;  %v3161_v16 = vld [vmem:[%s4126_s5 + $0x68] sm:$0xff]  ;;  %v3160_v20 = vld [vmem:[%s4126_s5 + $0x60] sm:$0xff] }
 0x107   :  { %v156_v22 = vsel %vm152_vm3, %v149_v21, 0.0 }
 0x108   :  { %157 = vadd.xlane.f32.xlu1 %v156_v22  ;;  %v3164_v22 = vld [vmem:[%s4126_s5 + $0x80] sm:$0xff] }
 0x173   :  { %v155_v30 = vpop.xlane.xlu1 %154 }
 0x174   :  { %v166_v31 = vmul.f32 %v3504_v29, %v155_v30 }
 0x176   :  { %v168_v32 = vsub.f32 %v148_v18, %v166_v31  ;;  %v3163_v18 = vld [vmem:[%s4126_s5 + $0x78] sm:$0xff] }
 0x178   :  { %v170_v33 = vmul.f32 %v168_v32, %v168_v32 }
 0x17a   :  { %v172_v34 = vsel %vm152_vm3, %v170_v33, 0.0 }
 0x17b   :  { %173 = vadd.xlane.f32.xlu2 %v172_v34  ;;  %v158_v35 = vpop.xlane.xlu1 %157 }
 0x17c   :  { %v167_v36 = vmul.f32 %v3504_v29, %v158_v35 }
 0x17e   :  { %v169_v37 = vsub.f32 %v149_v21, %v167_v36  ;;  %v3162_v21 = vld [vmem:[%s4126_s5 + $0x70] sm:$0xff] }
 0x180   :  { %v171_v38 = vmul.f32 %v169_v37, %v169_v37 }
 0x182   :  { %v175_v39 = vsel %vm152_vm3, %v171_v38, 0.0  ;;  %v3230_v38 = vld [vmem:[%s4127_s6 + $0x5] ss:$0 sm:$0xff] }
 0x183   :  { %176 = vadd.xlane.f32.xlu2 %v175_v39 }
 0x1ee   :  { %v174_v43 = vpop.xlane.xlu2 %173 }
 0x1ef   :  { %v178_v44 = vmul.f32 %v174_v43, %v3504_v29 }
 0x1f1   :  { %v180_v48 = vadd.f32 1e-12, %v178_v44  ;;  %v3225_v44 = vld [vmem:[%s4127_s6] ss:$0 sm:$0xff] }
 0x1f3   :  { %3267 = vrsqrt.f32 %v180_v48  ;;  %vm188_vm6 = vweird.f32 %v180_v48 }
 0x1f6   :  { %v177_v49 = vpop.xlane.xlu2 %176 }
 0x1f7   :  { %v179_v53 = vmul.f32 %v177_v49, %v3504_v29 }
 0x1f9   :  { %v3268_v56 = vpop.eup %3267  ;;  %v181_v57 = vadd.f32 1e-12, %v179_v53 }
 0x1fa   :  { %v183_v59 = vmul.f32 %v3268_v56, %v180_v48  ;;  %vm189_vm5 = vweird.f32 %v3268_v56 }
 0x1fb   :  { %3269 = vrsqrt.f32 %v181_v57  ;;  %vm190_vm7 = vmor %vm188_vm6, %vm189_vm5  ;;  %vm198_vm9 = vweird.f32 %v181_v57 }
 0x1fc   :  { %v184_v60 = vmul.f32 %v3268_v56, %v183_v59 }
 0x1fe   :  { %v185_v61 = vmul.f32 0.5, %v184_v60 }
 0x200   :  { %v186_v62 = vsub.f32 1.5, %v185_v61 }
 0x201   :  { %v3270_v63 = vpop.eup %3269 }
 0x202   :  { %v187_v0 = vmul.f32 %v3268_v56, %v186_v62  ;;  %v193_v1 = vmul.f32 %v3270_v63, %v181_v57  ;;  %vm199_vm8 = vweird.f32 %v3270_v63 }
 0x203   :  { %vm200_vm10 = vmor %vm198_vm9, %vm199_vm8 }
 0x204   :  { %v194_v2 = vmul.f32 %v3270_v63, %v193_v1  ;;  %v191_v3 = vsel %vm190_vm7, %v3268_v56, %v187_v0  ;;  %v3232_v1 = vld [vmem:[%s4127_s6 + $0x7] ss:$0 sm:$0xff] }
 0x205   :  { %v202_v7 = vmul.f32 %v191_v3, %v168_v32  ;;  %v3233_v3 = vld [vmem:[%s4127_s6 + $0x8] ss:$0 sm:$0xff] }
 0x206   :  { %v195_v4 = vmul.f32 0.5, %v194_v2 }
 0x207   :  { %v205_v11 = vmul.f32 %v3223_v6, %v202_v7 }
 0x208   :  { %v196_v5 = vsub.f32 1.5, %v195_v4 }
 0x209   :  { %v3554_v14 = vadd.f32 %v3224_v10, %v205_v11 }
 0x20a   :  { %v197_v8 = vmul.f32 %v3270_v63, %v196_v5 }
 0x20c   :  { %v201_v9 = vsel %vm200_vm10, %v3270_v63, %v197_v8 }
 0x20d   :  { %v203_v12 = vmul.f32 %v201_v9, %v169_v37  ;;  %v3229_v37 = vld [vmem:[%s4127_s6 + $0x4] ss:$0 sm:$0xff] }
 0x20f   :  { %v206_v13 = vmul.f32 %v3223_v6, %v203_v12  ;;  %v3227_v12 = vld [vmem:[%s4127_s6 + $0x2] ss:$0 sm:$0xff] }
 0x211   :  { %v3556_v15 = vadd.f32 %v3224_v10, %v206_v13 }
 0x213   :  { %v215_v17 = vpack.c.bf16 %v3556_v15, %v3554_v14 }
 0x215   :  { %2684 = vmatmul.msk.bf16.vlgmr.msra.gmra.mxu1 %vm152_vm3, %v215_v17  ;;  %2697 = vmatmul.msk.bf16.vlgmr.msra.gmra.mxu2 %vm152_vm3, %v215_v17 }
 0x216   :  { %2710 = vmatmul.msk.bf16.vlgmr.msra.gmra.mxu3 %vm152_vm3, %v215_v17  ;;  %441 = vmatpush.bf16.msra.mxu1 %v3161_v16 }
 0x217   :  { %474 = vmatpush.bf16.msra.mxu2 %v3163_v18  ;;  %507 = vmatpush.bf16.msra.mxu3 %v3165_v19  ;;  %v3228_v19 = vld [vmem:[%s4127_s6 + $0x3] ss:$0 sm:$0xff] }
 0x21a   :  { %442 = vmatpush.bf16.msra.mxu1 %v3160_v20 }
 0x21b   :  { %475 = vmatpush.bf16.msra.mxu2 %v3162_v21  ;;  %508 = vmatpush.bf16.msra.mxu3 %v3164_v22 }
 0x225   :  { %2723 = vmatmul.msk.bf16.vlgmr.msrb.gmra.mxu1 %vm152_vm3, %v215_v17  ;;  %2736 = vmatmul.msk.bf16.vlgmr.msrb.gmra.mxu2 %vm152_vm3, %v215_v17 }
 0x226   :  { %2749 = vmatmul.msk.bf16.vlgmr.msrb.gmra.mxu3 %vm152_vm3, %v215_v17  ;;  %540 = vmatpush.bf16.msrb.mxu1 %v3167_v23 }
 0x227   :  { %606 = vmatpush.bf16.msrb.mxu2 %v3171_v24 }
 0x22a   :  { %541 = vmatpush.bf16.msrb.mxu1 %v3166_v25 }
 0x22b   :  { %607 = vmatpush.bf16.msrb.mxu2 %v3170_v26  ;;  %v3234_v26 = vld [vmem:[%s4127_s6 + $0x9] ss:$0 sm:$0xff] }
 0x235   :  { %2762 = vmatmul.msk.bf16.vlgmr.msra.gmra.mxu1 %vm152_vm3, %v215_v17  ;;  %2775 = vmatmul.msk.bf16.vlgmr.msra.gmra.mxu2 %vm152_vm3, %v215_v17 }
 0x236   :  { %2788 = vmatmul.msk.bf16.vlgmr.msra.gmra.mxu3 %vm152_vm3, %v215_v17  ;;  %573 = vmatpush.bf16.msra.mxu1 %v3169_v27 }
 0x23a   :  { %574 = vmatpush.bf16.msra.mxu1 %v3168_v28 }
 0x245   :  { %2801 = vmatmul.msk.bf16.vlgmr.msrb.gmra.mxu1 %vm152_vm3, %v215_v17  ;;  %2827 = vmatmul.msk.bf16.vlgmr.msrb.gmra.mxu2 %vm152_vm3, %v215_v17 }
 0x255   :  { %2814 = vmatmul.msk.bf16.vlgmr.msra.gmra.mxu1 %vm152_vm3, %v215_v17 }
 0x292   :  { %v246_v30 = vpop.f32.mrf.mxu1 }
 0x293   :  { %v247_v50 = vadd.f32 %v3225_v44, %v246_v30 }
 0x295   :  { %v614_v58 = vpack.c.bf16 %v247_v50, %v247_v50 }
 0x298   :  { %v279_v31 = vpop.f32.mrf.mxu2 }
 0x299   :  { %v3608_v32 = vpop.f32.mrf.mxu3  ;;  %v280_v52 = vadd.f32 %v3226_v46, %v279_v31 }
 0x29a   :  { %v248_v33 = vpop.f32.mrf.mxu1  ;;  %v313_v24 = vadd.f32 %v3227_v12, %v3608_v32 }
 0x29b   :  { %v616_v61 = vpack.c.bf16 %v280_v52, %v280_v52  ;;  %v249_v4 = vadd.f32 %v3225_v44, %v248_v33 }
 0x29d   :  { %v615_v13 = vpack.c.bf16 %v249_v4, %v249_v4 }
 0x2a0   :  { %v281_v34 = vpop.f32.mrf.mxu2 }
 0x2a1   :  { %v3610_v35 = vpop.f32.mrf.mxu3  ;;  %v282_v6 = vadd.f32 %v3226_v46, %v281_v34 }
 0x2a2   :  { %v3612_v36 = vpop.f32.mrf.mxu1 }
 0x2a3   :  { %v617_v18 = vpack.c.bf16 %v282_v6, %v282_v6  ;;  %v346_v27 = vadd.f32 %v3228_v19, %v3612_v36  ;;  %v3235_v36 = vld [vmem:[%s4127_s6 + $0xb] ss:$0 sm:$0xff] }
 0x2a8   :  { %v378_v39 = vpop.f32.mrf.mxu2 }
 0x2a9   :  { %v379_v40 = vadd.f32 %v3229_v37, %v378_v39  ;;  %v411_v41 = vpop.f32.mrf.mxu3 }
 0x2aa   :  { %v412_v42 = vadd.f32 %v3230_v38, %v411_v41  ;;  %v3620_v43 = vpop.f32.mrf.mxu1 }
 0x2ab   :  { %v622_v45 = vpack.c.bf16 %v379_v40, %v379_v40  ;;  %v620_v40 = vpack.c.bf16 %v346_v27, %v346_v27 }
 0x2ac   :  { %v624_v47 = vpack.c.bf16 %v412_v42, %v412_v42 }
 0x2ad   :  { %v639_v48 = vsel %vm634_vm11, %v622_v45, 0  ;;  %v315_v45 = vadd.f32 %v3227_v12, %v3610_v35 }
 0x2ae   :  { %v677_v49 = vsel %vm634_vm11, %v624_v47, 0  ;;  %648 = vmatpush.bf16.xpose.msrb.mxu3 %v639_v48  ;;  %v348_v47 = vadd.f32 %v3228_v19, %v3620_v43  ;;  %v3236_v43 = vld [vmem:[%s4127_s6 + $0xa] ss:$0 sm:$0xff] }
 0x2af   :  { %686 = vmatpush.bf16.xpose.msrb.mxu1 %v677_v49 }
 0x2b0   :  { %v380_v53 = vpop.f32.mrf.mxu2 }
 0x2b1   :  { %v381_v54 = vadd.f32 %v3229_v37, %v380_v53  ;;  %v413_v55 = vpop.f32.mrf.mxu3  ;;  %v618_v37 = vpack.c.bf16 %v313_v24, %v313_v24 }
 0x2b2   :  { %v414_v56 = vadd.f32 %v3230_v38, %v413_v55  ;;  %v444_v57 = vpop.f32.mrf.mxu1 }
 0x2b3   :  { %v623_v59 = vpack.c.bf16 %v381_v54, %v381_v54  ;;  %v445_v60 = vadd.f32 %v3231_v51, %v444_v57  ;;  %v621_v54 = vpack.c.bf16 %v348_v47, %v348_v47 }
 0x2b4   :  { %v625_v62 = vpack.c.bf16 %v414_v56, %v414_v56 }
 0x2b5   :  { %v626_v63 = vpack.c.bf16 %v445_v60, %v445_v60  ;;  %2828 = vmatmul.msk.bf16.vlgmr.msrb.gmra.mxu3 %vm634_vm11, %v614_v58  ;;  %v658_v0 = vsel %vm634_vm11, %v623_v59, 0 }
 0x2b6   :  { %2830 = vmatmul.msk.bf16.vlgmr.msrb.gmra.mxu1 %vm634_vm11, %v616_v61  ;;  %667 = vmatpush.bf16.xpose.msrb.mxu0 %v658_v0  ;;  %v696_v2 = vsel %vm634_vm11, %v625_v62, 0 }
 0x2b7   :  { %v715_v5 = vsel %vm634_vm11, %v626_v63, 0  ;;  %705 = vmatpush.bf16.xpose.msra.mxu2 %v696_v2 }
 0x2b8   :  { %v477_v7 = vpop.f32.mrf.mxu2  ;;  %724 = vmatpush.bf16.xpose.msra.mxu3 %v715_v5  ;;  %v210_v5 = vld [vmem:[%s4122_s1] sm:$0x3] }
 0x2b9   :  { %v478_v8 = vadd.f32 %v3232_v1, %v477_v7  ;;  %v510_v9 = vpop.f32.mrf.mxu3  ;;  %v211_v6 = vsub.f32 1.0, %v210_v5 }
 0x2ba   :  { %v511_v10 = vadd.f32 %v3233_v3, %v510_v9  ;;  %v446_v11 = vpop.f32.mrf.mxu1 }
 0x2bb   :  { %v628_v16 = vpack.c.bf16 %v478_v8, %v478_v8  ;;  %v447_v17 = vadd.f32 %v3231_v51, %v446_v11  ;;  %v619_v51 = vpack.c.bf16 %v315_v45, %v315_v45  ;;  %v212_v7 = vmul.f32 -1e+09, %v211_v6 }
 0x2bc   :  { %v883_v20 = vpack.c.bf16 %v511_v10, %v511_v10 }
 0x2bd   :  { %v753_v21 = vsel %vm634_vm11, %v628_v16, 0  ;;  %v627_v22 = vpack.c.bf16 %v447_v17, %v447_v17  ;;  %2829 = vmatmul.msk.bf16.vlgmr.msrb.gmra.mxu0 %vm634_vm11, %v615_v13  ;;  %v3683_v8 = vperm.slane %v212_v7, 0  ;;  %v214_v12 = vrot.slane %v212_v7, 1 }
 0x2be   :  { %v896_v23 = vsel %vm894_vm12, %v883_v20, 0  ;;  %2831 = vmatmul.msk.bf16.vlgmr.msra.gmra.mxu2 %vm634_vm11, %v617_v18  ;;  %762 = vmatpush.bf16.xpose.msra.mxu1 %v753_v21 }
 0x2bf   :  { %v734_v25 = vsel %vm634_vm11, %v627_v22, 0  ;;  %v3688_v18 = vperm.slane %v214_v12, 0 }
 0x2c0   :  { %905 = vmatpush.bf16.msrb.mxu3 %v896_v23  ;;  %v479_v28 = vpop.f32.mrf.mxu2  ;;  %743 = vmatpush.bf16.xpose.msra.mxu0 %v734_v25 }
 0x2c1   :  { %v480_v30 = vadd.f32 %v3232_v1, %v479_v28  ;;  %v512_v31 = vpop.f32.mrf.mxu3 }
 0x2c2   :  { %v513_v33 = vadd.f32 %v3233_v3, %v512_v31  ;;  %v543_v34 = vpop.f32.mrf.mxu1 }
 0x2c3   :  { %v629_v38 = vpack.c.bf16 %v480_v30, %v480_v30  ;;  %v544_v39 = vadd.f32 %v3234_v26, %v543_v34 }
 0x2c4   :  { %v884_v32 = vpack.c.bf16 %v513_v33, %v513_v33 }
 0x2c5   :  { %v885_v41 = vpack.c.bf16 %v544_v39, %v544_v39  ;;  %2832 = vmatmul.msk.bf16.vlgmr.msra.gmra.mxu3 %vm634_vm11, %v618_v37  ;;  %v772_v42 = vsel %vm634_vm11, %v629_v38, 0 }
 0x2c6   :  { %2834 = vmatmul.msk.bf16.vlgmr.msra.gmra.mxu1 %vm634_vm11, %v620_v40  ;;  %781 = vmatpush.bf16.xpose.msrb.mxu2 %v772_v42  ;;  %v915_v44 = vsel %vm894_vm12, %v884_v32, 0 }
 0x2c7   :  { %v934_v46 = vsel %vm894_vm12, %v885_v41, 0 }
 0x2c8   :  { %924 = vmatpush.bf16.msrb.mxu0 %v915_v44  ;;  %v609_v48 = vpop.f32.mrf.mxu2  ;;  %943 = vmatpush.bf16.msrb.mxu1 %v934_v46 }
 0x2c9   :  { %v610_v49 = vadd.f32 %v3235_v36, %v609_v48 }
 0x2ca   :  { %v545_v50 = vpop.f32.mrf.mxu1 }
 0x2cb   :  { %v889_v52 = vpack.c.bf16 %v610_v49, %v610_v49  ;;  %v546_v53 = vadd.f32 %v3234_v26, %v545_v50 }
 0x2cd   :  { %v1010_v55 = vsel %vm894_vm12, %v889_v52, 0  ;;  %v886_v56 = vpack.c.bf16 %v546_v53, %v546_v53  ;;  %2833 = vmatmul.msk.bf16.vlgmr.msra.gmra.mxu0 %vm634_vm11, %v619_v51 }
 0x2ce   :  { %2835 = vmatmul.msk.bf16.vlgmr.msrb.gmra.mxu2 %vm634_vm11, %v621_v54  ;;  %1019 = vmatpush.bf16.msra.mxu1 %v1010_v55 }
 0x2cf   :  { %v953_v35 = vsel %vm894_vm12, %v886_v56, 0 }
 0x2d0   :  { %v611_v57 = vpop.f32.mrf.mxu2  ;;  %962 = vmatpush.bf16.msra.mxu2 %v953_v35 }
 0x2d1   :  { %v612_v58 = vadd.f32 %v3235_v36, %v611_v57 }
 0x2d2   :  { %v576_v59 = vpop.f32.mrf.mxu1 }
 0x2d3   :  { %v890_v60 = vpack.c.bf16 %v612_v58, %v612_v58  ;;  %v577_v61 = vadd.f32 %v3236_v43, %v576_v59 }
 0x2d5   :  { %v887_v62 = vpack.c.bf16 %v577_v61, %v577_v61  ;;  %v1029_v63 = vsel %vm894_vm12, %v890_v60, 0 }
 0x2d6   :  { %1038 = vmatpush.bf16.msrb.mxu2 %v1029_v63 }
 0x2d7   :  { %v972_v0 = vsel %vm894_vm12, %v887_v62, 0 }
 0x2d8   :  { %981 = vmatpush.bf16.msra.mxu3 %v972_v0 }
 0x2da   :  { %v578_v1 = vpop.f32.mrf.mxu1 }
 0x2db   :  { %v579_v2 = vadd.f32 %v3236_v43, %v578_v1 }
 0x2dd   :  { %v888_v3 = vpack.c.bf16 %v579_v2, %v579_v2 }
 0x2df   :  { %v991_v4 = vsel %vm894_vm12, %v888_v3, 0 }
 0x2e0   :  { %1000 = vmatpush.bf16.msra.mxu0 %v991_v4 }
 0x333   :  { %v688_v9 = vpop.f32.mrf.mxu1 }
 0x334   :  { %v689_v10 = vadd.f32 %v688_v9, %v3683_v8 }
 0x336   :  { %v793_v11 = vsel %vm634_vm11, %v689_v10, -inf }
 0x337   :  { %794 = vmax.xlane.f32.xlu2 %v793_v11 }
 0x338   :  { %v650_v13 = vpop.f32.mrf.mxu3 }
 0x339   :  { %v651_v16 = vadd.f32 %v650_v13, %v3683_v8 }
 0x33a   :  { %v669_v17 = vpop.f32.mrf.mxu0 }
 0x33b   :  { %v690_v19 = vpop.f32.mrf.mxu1  ;;  %v787_v20 = vsel %vm634_vm11, %v651_v16, -inf  ;;  %v670_v21 = vadd.f32 %v669_v17, %v3688_v18 }
 0x33c   :  { %788 = vmax.xlane.f32.xlu1 %v787_v20 }
 0x33d   :  { %v790_v27 = vsel %vm634_vm11, %v670_v21, -inf }
 0x340   :  { %v652_v22 = vpop.f32.mrf.mxu3 }
 0x341   :  { %v707_v23 = vpop.f32.mrf.mxu2 }
 0x342   :  { %v708_v24 = vadd.f32 %v707_v23, %v3688_v18  ;;  %v671_v25 = vpop.f32.mrf.mxu0 }
 0x343   :  { %v764_v26 = vpop.f32.mrf.mxu1 }
 0x344   :  { %v796_v28 = vsel %vm634_vm11, %v708_v24, -inf  ;;  %791 = vmax.xlane.f32.xlu1 %v790_v27  ;;  %v765_v45 = vadd.f32 %v764_v26, %v3683_v8 }
 0x345   :  { %797 = vmax.xlane.f32.xlu0 %v796_v28 }
 0x346   :  { %v805_v47 = vsel %vm634_vm11, %v765_v45, -inf }
 0x348   :  { %v726_v30 = vpop.f32.mrf.mxu3 }
 0x349   :  { %v709_v31 = vpop.f32.mrf.mxu2  ;;  %v727_v33 = vadd.f32 %v726_v30, %v3683_v8 }
 0x34a   :  { %v745_v34 = vpop.f32.mrf.mxu0 }
 0x34b   :  { %v766_v37 = vpop.f32.mrf.mxu1  ;;  %v799_v38 = vsel %vm634_vm11, %v727_v33, -inf  ;;  %v746_v39 = vadd.f32 %v745_v34, %v3688_v18 }
 0x34c   :  { %800 = vmax.xlane.f32.xlu1 %v799_v38 }
 0x34d   :  { %v802_v36 = vsel %vm634_vm11, %v746_v39, -inf }
 0x350   :  { %v728_v40 = vpop.f32.mrf.mxu3 }
 0x351   :  { %v783_v32 = vpop.f32.mrf.mxu2 }
 0x352   :  { %v784_v41 = vadd.f32 %v783_v32, %v3688_v18  ;;  %v747_v42 = vpop.f32.mrf.mxu0 }
 0x354   :  { %v808_v44 = vsel %vm634_vm11, %v784_v41, -inf  ;;  %803 = vmax.xlane.f32.xlu1 %v802_v36 }
 0x355   :  { %809 = vmax.xlane.f32.xlu2 %v808_v44 }
 0x359   :  { %v785_v46 = vpop.f32.mrf.mxu2 }
 0x35d   :  { %806 = vmax.xlane.f32.xlu2 %v805_v47 }
 0x3aa   :  { %v795_v52 = vpop.xlane.xlu2 %794 }
 0x3ab   :  { %v813_v43 = vsub.f32 %v689_v10, %v795_v52 }
 0x3ad   :  { %v823_v59 = vmul.f32 1.442695, %v813_v43 }
 0x3af   :  { %v789_v48 = vpop.xlane.xlu1 %788 }
 0x3b0   :  { %v811_v49 = vsub.f32 %v651_v16, %v789_v48 }
 0x3b2   :  { %v819_v50 = vmul.f32 1.442695, %v811_v49 }
 0x3b4   :  { %3271 = vpow2.f32 %v819_v50 }
 0x3b7   :  { %v792_v51 = vpop.xlane.xlu1 %791 }
 0x3b8   :  { %v798_v53 = vpop.xlane.xlu0 %797  ;;  %v812_v54 = vsub.f32 %v670_v21, %v792_v51 }
 0x3b9   :  { %v814_v55 = vsub.f32 %v708_v24, %v798_v53 }
 0x3ba   :  { %v3272_v56 = vpop.eup %3271  ;;  %v821_v35 = vmul.f32 1.442695, %v812_v54 }
 0x3bb   :  { %v825_v57 = vmul.f32 1.442695, %v814_v55  ;;  %v835_v58 = vsel %vm634_vm11, %v3272_v56, 0.0 }
 0x3bc   :  { %3273 = vpow2.f32 %v821_v35  ;;  %836 = vadd.xlane.f32.xlu1 %v835_v58 }
 0x3bd   :  { %3275 = vpow2.f32 %v825_v57 }
 0x3be   :  { %3277 = vpow2.f32 %v823_v59  ;;  %v1044_v59 = vld [vmem:[%s4128_s7] sm:$0xf] }
 0x3bf   :  { %v801_v60 = vpop.xlane.xlu1 %800 }
 0x3c0   :  { %v815_v61 = vsub.f32 %v727_v33, %v801_v60  ;;  %v1074_v60 = vsel %vm894_vm12, %v1044_v59, 0 }
 0x3c2   :  { %v3274_v62 = vpop.eup %3273  ;;  %v827_v63 = vmul.f32 1.442695, %v815_v61  ;;  %v1045_v61 = vld [vmem:[%s4128_s7 + $0x4] sm:$0xf] }
 0x3c3   :  { %v3276_v0 = vpop.eup %3275  ;;  %v838_v1 = vsel %vm634_vm11, %v3274_v62, 0.0 }
 0x3c4   :  { %3279 = vpow2.f32 %v827_v63  ;;  %v844_v2 = vsel %vm634_vm11, %v3276_v0, 0.0  ;;  %839 = vadd.xlane.f32.xlu1 %v838_v1  ;;  %v3278_v5 = vpop.eup %3277  ;;  %v1047_v63 = vld [vmem:[%s4128_s7 + $0xc] sm:$0xf]  ;;  %v1046_v1 = vld [vmem:[%s4128_s7 + $0x8] sm:$0xf] }
 0x3c5   :  { %845 = vadd.xlane.f32.xlu2 %v844_v2  ;;  %v841_v12 = vsel %vm634_vm11, %v3278_v5, 0.0  ;;  %v1095_v2 = vsel %vm894_vm12, %v1046_v1, 0 }
 0x3c7   :  { %v804_v4 = vpop.xlane.xlu1 %803 }
 0x3c8   :  { %v810_v3 = vpop.xlane.xlu2 %809  ;;  %v816_v10 = vsub.f32 %v746_v39, %v804_v4 }
 0x3c9   :  { %v818_v6 = vsub.f32 %v784_v41, %v810_v3 }
 0x3ca   :  { %v3280_v7 = vpop.eup %3279  ;;  %v829_v13 = vmul.f32 1.442695, %v816_v10 }
 0x3cb   :  { %v833_v9 = vmul.f32 1.442695, %v818_v6  ;;  %v847_v11 = vsel %vm634_vm11, %v3280_v7, 0.0 }
 0x3cc   :  { %848 = vadd.xlane.f32.xlu0 %v847_v11 }
 0x3cd   :  { %3281 = vpow2.f32 %v833_v9  ;;  %842 = vadd.xlane.f32.xlu2 %v841_v12 }
 0x3ce   :  { %3283 = vpow2.f32 %v829_v13 }
 0x3d0   :  { %v807_v16 = vpop.xlane.xlu2 %806 }
 0x3d1   :  { %v817_v17 = vsub.f32 %v765_v45, %v807_v16 }
 0x3d3   :  { %v3282_v19 = vpop.eup %3281  ;;  %v831_v20 = vmul.f32 1.442695, %v817_v17 }
 0x3d4   :  { %v856_v21 = vsel %vm634_vm11, %v3282_v19, 0.0  ;;  %v3284_v22 = vpop.eup %3283 }
 0x3d5   :  { %3285 = vpow2.f32 %v831_v20  ;;  %857 = vadd.xlane.f32.xlu2 %v856_v21  ;;  %v850_v25 = vsel %vm634_vm11, %v3284_v22, 0.0 }
 0x3db   :  { %v3286_v23 = vpop.eup %3285 }
 0x3dc   :  { %v853_v24 = vsel %vm634_vm11, %v3286_v23, 0.0 }
 0x3dd   :  { %854 = vadd.xlane.f32.xlu1 %v853_v24  ;;  %851 = vadd.xlane.f32.xlu2 %v850_v25 }
 0x42f   :  { %v837_v26 = vpop.xlane.xlu1 %836 }
 0x430   :  { %3287 = vrcp.f32 %v837_v26 }
 0x436   :  { %v3288_v27 = vpop.eup %3287 }
 0x437   :  { %v867_v28 = vmul.f32 %v3288_v27, %v3272_v56  ;;  %v840_v30 = vpop.xlane.xlu1 %839 }
 0x438   :  { %v846_v31 = vpop.xlane.xlu2 %845  ;;  %3289 = vrcp.f32 %v840_v30 }
 0x439   :  { %v875_v33 = vpack.c.bf16 %v867_v28, %v867_v28  ;;  %3291 = vrcp.f32 %v846_v31 }
 0x43b   :  { %2836 = vmatmul.msk.bf16.vlgmr.msrb.gmra.mxu3 %vm634_vm11, %v875_v33 }
 0x43e   :  { %v3290_v34 = vpop.eup %3289 }
 0x43f   :  { %v3292_v37 = vpop.eup %3291  ;;  %v868_v38 = vmul.f32 %v3290_v34, %v3274_v62  ;;  %v849_v39 = vpop.xlane.xlu0 %848  ;;  %v1054_v62 = vsel %vm894_vm12, %v1045_v61, 0  ;;  %v3237_v34 = vld [vmem:[%s4129_s8] ss:$0 sm:$0xff] }
 0x440   :  { %v870_v40 = vmul.f32 %v3292_v37, %v3276_v0  ;;  %v843_v32 = vpop.xlane.xlu2 %842  ;;  %3293 = vrcp.f32 %v849_v39  ;;  %1063 = vmatpush.bf16.msrb.mxu3 %v1054_v62  ;;  %v1118_v0 = vsel %vm894_vm12, %v1047_v63, 0 }
 0x441   :  { %v876_v41 = vpack.c.bf16 %v868_v38, %v868_v38  ;;  %3295 = vrcp.f32 %v843_v32 }
 0x442   :  { %v878_v42 = vpack.c.bf16 %v870_v40, %v870_v40 }
 0x443   :  { %2837 = vmatmul.msk.bf16.vlgmr.msrb.gmra.mxu0 %vm634_vm11, %v876_v41 }
 0x444   :  { %2839 = vmatmul.msk.bf16.vlgmr.msra.gmra.mxu2 %vm634_vm11, %v878_v42  ;;  %1083 = vmatpush.bf16.msrb.mxu0 %v1074_v60  ;;  %v3172_v60 = vld [vmem:[%s4130_s9] sm:$0xff] }
 0x445   :  { %1127 = vmatpush.bf16.msra.mxu2 %v1118_v0 }
 0x446   :  { %v3294_v36 = vpop.eup %3293 }
 0x447   :  { %v3296_v44 = vpop.eup %3295  ;;  %v871_v45 = vmul.f32 %v3294_v36, %v3280_v7 }
 0x448   :  { %v869_v46 = vmul.f32 %v3296_v44, %v3278_v5  ;;  %v858_v47 = vpop.xlane.xlu2 %857 }
 0x449   :  { %v879_v48 = vpack.c.bf16 %v871_v45, %v871_v45  ;;  %3297 = vrcp.f32 %v858_v47 }
 0x44a   :  { %v877_v49 = vpack.c.bf16 %v869_v46, %v869_v46 }
 0x44b   :  { %2840 = vmatmul.msk.bf16.vlgmr.msra.gmra.mxu3 %vm634_vm11, %v879_v48 }
 0x44c   :  { %2838 = vmatmul.msk.bf16.vlgmr.msrb.gmra.mxu1 %vm634_vm11, %v877_v49 }
 0x44d   :  { %1104 = vmatpush.bf16.msrb.mxu1 %v1095_v2 }
 0x44f   :  { %v3298_v50 = vpop.eup %3297 }
 0x450   :  { %v874_v51 = vmul.f32 %v3298_v50, %v3282_v19  ;;  %v852_v52 = vpop.xlane.xlu2 %851  ;;  %v855_v53 = vpop.xlane.xlu1 %854 }
 0x451   :  { %3299 = vrcp.f32 %v852_v52 }
 0x452   :  { %v882_v54 = vpack.c.bf16 %v874_v51, %v874_v51  ;;  %3301 = vrcp.f32 %v855_v53 }
 0x454   :  { %2843 = vmatmul.msk.bf16.vlgmr.msrb.gmra.mxu2 %vm634_vm11, %v882_v54 }
 0x457   :  { %v3300_v55 = vpop.eup %3299 }
 0x458   :  { %v3302_v56 = vpop.eup %3301  ;;  %v872_v35 = vmul.f32 %v3300_v55, %v3284_v22 }
 0x459   :  { %v873_v43 = vmul.f32 %v3302_v56, %v3286_v23 }
 0x45a   :  { %v880_v57 = vpack.c.bf16 %v872_v35, %v872_v35 }
 0x45b   :  { %v881_v58 = vpack.c.bf16 %v873_v43, %v873_v43 }
 0x45c   :  { %2841 = vmatmul.msk.bf16.vlgmr.msra.gmra.mxu0 %vm634_vm11, %v880_v57 }
 0x45d   :  { %2842 = vmatmul.msk.bf16.vlgmr.msra.gmra.mxu1 %vm634_vm11, %v881_v58 }
 0x4be   :  { %v907_v3 = vpop.f32.mrf.mxu3 }
 0x4c0   :  { %v926_v4 = vpop.f32.mrf.mxu0 }
 0x4c1   :  { %v1048_v5 = vpack.c.bf16 %v926_v4, %v907_v3 }
 0x4c3   :  { %2845 = vmatmul.msk.bf16.vlgmr.msrb.gmra.mxu0 %vm634_vm11, %v1048_v5 }
 0x4c6   :  { %v909_v6 = vpop.f32.mrf.mxu3 }
 0x4c7   :  { %v964_v7 = vpop.f32.mrf.mxu2 }
 0x4c8   :  { %v928_v9 = vpop.f32.mrf.mxu0 }
 0x4c9   :  { %v945_v10 = vpop.f32.mrf.mxu1 }
 0x4ca   :  { %v1049_v11 = vpack.c.bf16 %v964_v7, %v945_v10 }
 0x4cc   :  { %2844 = vmatmul.msk.bf16.vlgmr.msrb.gmra.mxu3 %vm634_vm11, %v1049_v11 }
 0x4ce   :  { %v983_v12 = vpop.f32.mrf.mxu3 }
 0x4cf   :  { %v966_v13 = vpop.f32.mrf.mxu2 }
 0x4d1   :  { %v947_v16 = vpop.f32.mrf.mxu1 }
 0x4d2   :  { %v3238_v16 = vld [vmem:[%s4129_s8 + $0x1] ss:$0 sm:$0xff] }
 0x4d6   :  { %v985_v17 = vpop.f32.mrf.mxu3 }
 0x4d7   :  { %v1040_v19 = vpop.f32.mrf.mxu2 }
 0x4d9   :  { %v1002_v20 = vpop.f32.mrf.mxu0 }
 0x4da   :  { %v1090_v21 = vpack.c.bf16 %v1002_v20, %v983_v12  ;;  %v1021_v22 = vpop.f32.mrf.mxu1 }
 0x4db   :  { %v1113_v23 = vpack.c.bf16 %v1040_v19, %v1021_v22 }
 0x4dc   :  { %2846 = vmatmul.msk.bf16.vlgmr.msrb.gmra.mxu1 %vm634_vm11, %v1090_v21  ;;  %v3239_v21 = vld [vmem:[%s4129_s8 + $0x2] ss:$0 sm:$0xff] }
 0x4dd   :  { %2847 = vmatmul.msk.bf16.vlgmr.msra.gmra.mxu2 %vm634_vm11, %v1113_v23 }
 0x4df   :  { %v1042_v24 = vpop.f32.mrf.mxu2 }
 0x4e1   :  { %v1004_v25 = vpop.f32.mrf.mxu0 }
 0x4e2   :  { %v1023_v26 = vpop.f32.mrf.mxu1 }
 0x540   :  { %v1085_v28 = vpop.f32.mrf.mxu0 }
 0x548   :  { %v1087_v32 = vpop.f32.mrf.mxu0 }
 0x54f   :  { %v1065_v27 = vpop.f32.mrf.mxu3 }
 0x550   :  { %v1086_v31 = vadd.f32 %v1085_v28, %v1065_v27  ;;  %v3177_v28 = vld [vmem:[%s4132_s11 + $0x18] sm:$0xff] }
 0x551   :  { %1293 = vmatpush.bf16.msra.mxu0 %v3177_v28  ;;  %v3191_v28 = vld [vmem:[%s4126_s5 + $0x128] sm:$0xff] }
 0x557   :  { %v1067_v39 = vpop.f32.mrf.mxu3 }
 0x558   :  { %v1088_v42 = vadd.f32 %v1087_v32, %v1067_v39 }
 0x559   :  { %v1106_v30 = vpop.f32.mrf.mxu1 }
 0x55a   :  { %v1111_v33 = vadd.f32 %v1106_v30, %v1086_v31  ;;  %v3176_v30 = vld [vmem:[%s4132_s11 + $0x10] sm:$0xff]  ;;  %v3175_v31 = vld [vmem:[%s4132_s11 + $0x8] sm:$0xff] }
 0x55b   :  { %1294 = vmatpush.bf16.msra.mxu0 %v3176_v30 }
 0x55f   :  { %1295 = vmatpush.bf16.msra.mxu0 %v3175_v31  ;;  %v3193_v31 = vld [vmem:[%s4126_s5 + $0x138] sm:$0xff] }
 0x560   :  { %v1129_v37 = vpop.f32.mrf.mxu2 }
 0x561   :  { %v1134_v38 = vadd.f32 %v1129_v37, %v1111_v33  ;;  %v1108_v41 = vpop.f32.mrf.mxu1  ;;  %v3174_v33 = vld [vmem:[%s4132_s11] sm:$0xff] }
 0x562   :  { %v1112_v44 = vadd.f32 %v1108_v41, %v1088_v42 }
 0x563   :  { %v1138_v40 = vadd.f32 %v3237_v34, %v1134_v38  ;;  %1296 = vmatpush.bf16.msra.mxu0 %v3174_v33  ;;  %v3186_v33 = vld [vmem:[%s4126_s5 + $0x100] sm:$0xff] }
 0x565   :  { %v1140_v36 = vadd.f32 %v1138_v40, %v3554_v14 }
 0x567   :  { %v1144_v45 = vsel %vm152_vm3, %v1140_v36, 0.0 }
 0x568   :  { %v1131_v46 = vpop.f32.mrf.mxu2  ;;  %1145 = vadd.xlane.f32.xlu0 %v1144_v45 }
 0x569   :  { %v1135_v47 = vadd.f32 %v1131_v46, %v1112_v44 }
 0x56b   :  { %v1139_v48 = vadd.f32 %v3237_v34, %v1135_v47  ;;  %v3240_v34 = vld [vmem:[%s4131_s10] ss:$0 sm:$0xff] }
 0x56d   :  { %v1141_v49 = vadd.f32 %v1139_v48, %v3556_v15  ;;  %v3173_v15 = vld [vmem:[%s4130_s9 + $0x8] sm:$0xff] }
 0x56e   :  { %1224 = vmatpush.bf16.msra.mxu3 %v3173_v15 }
 0x56f   :  { %v1147_v50 = vsel %vm152_vm3, %v1141_v49, 0.0 }
 0x570   :  { %1148 = vadd.xlane.f32.xlu1 %v1147_v50 }
 0x572   :  { %1225 = vmatpush.bf16.msra.mxu3 %v3172_v60 }
 0x5db   :  { %v1146_v51 = vpop.xlane.xlu0 %1145 }
 0x5dc   :  { %v1150_v52 = vmul.f32 %v1146_v51, %v3504_v29 }
 0x5de   :  { %v1152_v53 = vsub.f32 %v1140_v36, %v1150_v52 }
 0x5e0   :  { %v1154_v54 = vmul.f32 %v1152_v53, %v1152_v53 }
 0x5e2   :  { %v1156_v55 = vsel %vm152_vm3, %v1154_v54, 0.0 }
 0x5e3   :  { %1157 = vadd.xlane.f32.xlu2 %v1156_v55  ;;  %v1149_v14 = vpop.xlane.xlu1 %1148 }
 0x5e4   :  { %v1151_v56 = vmul.f32 %v1149_v14, %v3504_v29 }
 0x5e6   :  { %v1153_v35 = vsub.f32 %v1141_v49, %v1151_v56 }
 0x5e8   :  { %v1155_v43 = vmul.f32 %v1153_v35, %v1153_v35 }
 0x5ea   :  { %v1159_v57 = vsel %vm152_vm3, %v1155_v43, 0.0  ;;  %v3241_v43 = vld [vmem:[%s4129_s8 + $0x3] ss:$0 sm:$0xff] }
 0x5eb   :  { %1160 = vadd.xlane.f32.xlu0 %v1159_v57 }
 0x656   :  { %v1158_v58 = vpop.xlane.xlu2 %1157 }
 0x657   :  { %v1162_v59 = vmul.f32 %v1158_v58, %v3504_v29 }
 0x659   :  { %v1164_v61 = vadd.f32 1e-12, %v1162_v59 }
 0x65b   :  { %3303 = vrsqrt.f32 %v1164_v61  ;;  %vm1172_vm14 = vweird.f32 %v1164_v61 }
 0x65e   :  { %v1161_v62 = vpop.xlane.xlu0 %1160 }
 0x65f   :  { %v1163_v63 = vmul.f32 %v1161_v62, %v3504_v29 }
 0x661   :  { %v3304_v0 = vpop.eup %3303  ;;  %v1165_v1 = vadd.f32 1e-12, %v1163_v63 }
 0x662   :  { %v1167_v2 = vmul.f32 %v3304_v0, %v1164_v61  ;;  %vm1173_vm13 = vweird.f32 %v3304_v0 }
 0x663   :  { %3305 = vrsqrt.f32 %v1165_v1  ;;  %vm1174_vm15 = vmor %vm1172_vm14, %vm1173_vm13  ;;  %vm1182_vm1 = vweird.f32 %v1165_v1 }
 0x664   :  { %v1168_v3 = vmul.f32 %v3304_v0, %v1167_v2 }
 0x666   :  { %v1169_v4 = vmul.f32 0.5, %v1168_v3 }
 0x668   :  { %v1170_v5 = vsub.f32 1.5, %v1169_v4 }
 0x669   :  { %v3306_v6 = vpop.eup %3305 }
 0x66a   :  { %v1171_v7 = vmul.f32 %v3304_v0, %v1170_v5  ;;  %v1177_v9 = vmul.f32 %v3306_v6, %v1165_v1  ;;  %vm1183_vm0 = vweird.f32 %v3306_v6 }
 0x66b   :  { %vm1184_vm2 = vmor %vm1182_vm1, %vm1183_vm0 }
 0x66c   :  { %v1178_v10 = vmul.f32 %v3306_v6, %v1177_v9  ;;  %v1175_v11 = vsel %vm1174_vm15, %v3304_v0, %v1171_v7 }
 0x66d   :  { %v1186_v17 = vmul.f32 %v1175_v11, %v1152_v53  ;;  %v3179_v11 = vld [vmem:[%s4126_s5 + $0xc8] sm:$0xff] }
 0x66e   :  { %v1179_v12 = vmul.f32 0.5, %v1178_v10  ;;  %1386 = vmatpush.bf16.msra.mxu1 %v3179_v11 }
 0x66f   :  { %v1189_v22 = vmul.f32 %v3238_v16, %v1186_v17 }
 0x670   :  { %v1180_v13 = vsub.f32 1.5, %v1179_v12  ;;  %v3181_v12 = vld [vmem:[%s4126_s5 + $0xd8] sm:$0xff] }
 0x671   :  { %v1192_v25 = vadd.f32 %v3239_v21, %v1189_v22  ;;  %1419 = vmatpush.bf16.msrb.mxu2 %v3181_v12  ;;  %v3182_v22 = vld [vmem:[%s4126_s5 + $0xe0] sm:$0xff] }
 0x672   :  { %v1181_v19 = vmul.f32 %v3306_v6, %v1180_v13  ;;  %v3183_v13 = vld [vmem:[%s4126_s5 + $0xe8] sm:$0xff] }
 0x673   :  { %1452 = vmatpush.bf16.msrb.mxu3 %v3183_v13  ;;  %v3249_v13 = vld [vmem:[%s4127_s6 + $0x13] ss:$0 sm:$0xff] }
 0x674   :  { %v1185_v20 = vsel %vm1184_vm2, %v3306_v6, %v1181_v19 }
 0x675   :  { %v1187_v23 = vmul.f32 %v1185_v20, %v1153_v35  ;;  %v3178_v20 = vld [vmem:[%s4126_s5 + $0xc0] sm:$0xff] }
 0x676   :  { %1387 = vmatpush.bf16.msra.mxu1 %v3178_v20  ;;  %v3250_v20 = vld [vmem:[%s4127_s6 + $0x11] ss:$0 sm:$0xff] }
 0x677   :  { %v1190_v24 = vmul.f32 %v3238_v16, %v1187_v23  ;;  %v3185_v16 = vld [vmem:[%s4126_s5 + $0xf8] sm:$0xff]  ;;  %1453 = vmatpush.bf16.msrb.mxu3 %v3182_v22 }
 0x678   :  { %1485 = vmatpush.bf16.msrb.mxu0 %v3185_v16 }
 0x679   :  { %v1193_v26 = vadd.f32 %v3239_v21, %v1190_v24  ;;  %v3180_v21 = vld [vmem:[%s4126_s5 + $0xd0] sm:$0xff] }
 0x67a   :  { %v3184_v24 = vld [vmem:[%s4126_s5 + $0xf0] sm:$0xff]  ;;  %1420 = vmatpush.bf16.msrb.mxu2 %v3180_v21  ;;  %v3244_v21 = vld [vmem:[%s4127_s6 + $0xc] ss:$0 sm:$0xff] }
 0x67b   :  { %v1194_v27 = vpack.c.bf16 %v1193_v26, %v1192_v25 }
 0x67c   :  { %1486 = vmatpush.bf16.msrb.mxu0 %v3184_v24 }
 0x67d   :  { %2856 = vmatmul.msk.bf16.vlgmr.msra.gmra.mxu3 %vm152_vm3, %v1194_v27  ;;  %v3189_v27 = vld [vmem:[%s4126_s5 + $0x118] sm:$0xff] }
 0x67e   :  { %1551 = vmatpush.bf16.msra.mxu2 %v3189_v27  ;;  %1584 = vmatpush.bf16.msra.mxu3 %v3191_v28 }
 0x700   :  { %v1227_v37 = vpop.f32.mrf.mxu3 }
 0x701   :  { %v1228_v38 = vadd.f32 %v3240_v34, %v1227_v37 }
 0x703   :  { %v1234_v39 = vmul.f32 0.044715, %v1228_v38  ;;  %v1232_v53 = vmul.f32 0.5, %v1228_v38 }
 0x705   :  { %v1236_v40 = vmul.f32 %v1234_v39, %v1228_v38  ;;  %v3190_v39 = vld [vmem:[%s4126_s5 + $0x120] sm:$0xff] }
 0x706   :  { %1585 = vmatpush.bf16.msra.mxu3 %v3190_v39 }
 0x707   :  { %v1238_v32 = vmul.f32 %v1236_v40, %v1228_v38  ;;  %v3192_v40 = vld [vmem:[%s4126_s5 + $0x130] sm:$0xff] }
 0x708   :  { %v1229_v41 = vpop.f32.mrf.mxu3 }
 0x709   :  { %v1240_v42 = vadd.f32 %v1238_v32, %v1228_v38  ;;  %v1230_v36 = vadd.f32 %v3240_v34, %v1229_v41  ;;  %v3188_v34 = vld [vmem:[%s4126_s5 + $0x110] sm:$0xff] }
 0x70a   :  { %1552 = vmatpush.bf16.msra.mxu2 %v3188_v34  ;;  %v3246_v34 = vld [vmem:[%s4127_s6 + $0xd] ss:$0 sm:$0xff] }
 0x70b   :  { %v1235_v44 = vmul.f32 0.044715, %v1230_v36  ;;  %v1242_v45 = vmul.f32 0.7978846, %v1240_v42  ;;  %v1233_v54 = vmul.f32 0.5, %v1230_v36 }
 0x70d   :  { %v1237_v46 = vmul.f32 %v1235_v44, %v1230_v36  ;;  %3307 = vtanh.f32 %v1242_v45 }
 0x70f   :  { %v1239_v47 = vmul.f32 %v1237_v46, %v1230_v36 }
 0x711   :  { %v1241_v48 = vadd.f32 %v1239_v47, %v1230_v36 }
 0x713   :  { %v1243_v49 = vmul.f32 0.7978846, %v1241_v48  ;;  %v3308_v50 = vpop.eup %3307 }
 0x714   :  { %v1246_v51 = vadd.f32 1.0, %v3308_v50 }
 0x715   :  { %3309 = vtanh.f32 %v1243_v49 }
 0x716   :  { %v1248_v14 = vmul.f32 %v1246_v51, %v1232_v53  ;;  %v3242_v51 = vld [vmem:[%s4129_s8 + $0x4] ss:$0 sm:$0xff] }
 0x71b   :  { %v3310_v52 = vpop.eup %3309 }
 0x71c   :  { %v1247_v55 = vadd.f32 1.0, %v3310_v52 }
 0x71e   :  { %v1249_v56 = vmul.f32 %v1247_v55, %v1233_v54  ;;  %v3243_v55 = vld [vmem:[%s4129_s8 + $0x5] ss:$0 sm:$0xff] }
 0x720   :  { %v1250_v35 = vpack.c.bf16 %v1249_v56, %v1248_v14 }
 0x722   :  { %2873 = vmatmul.msk.bf16.vlgmr.msra.gmra.mxu0 %vm1285_vm4, %v1250_v35 }
 0x723   :  { %1617 = vmatpush.bf16.msra.mxu0 %v3193_v31 }
 0x727   :  { %1618 = vmatpush.bf16.msra.mxu0 %v3192_v40 }
 0x79f   :  { %v1298_v57 = vpop.f32.mrf.mxu0 }
 0x7a0   :  { %v1299_v15 = vadd.f32 %v3241_v43, %v1298_v57 }
 0x7a2   :  { %v1303_v58 = vadd.f32 %v1299_v15, %v1192_v25 }
 0x7a4   :  { %v1307_v59 = vsel %vm152_vm3, %v1303_v58, 0.0 }
 0x7a5   :  { %1308 = vadd.xlane.f32.xlu1 %v1307_v59  ;;  %v3197_v59 = vld [vmem:[%s4126_s5 + $0x158] sm:$0xff] }
 0x7a7   :  { %v1300_v60 = vpop.f32.mrf.mxu0 }
 0x7a8   :  { %v1301_v61 = vadd.f32 %v3241_v43, %v1300_v60  ;;  %v3199_v60 = vld [vmem:[%s4126_s5 + $0x168] sm:$0xff] }
 0x7aa   :  { %v1304_v62 = vadd.f32 %v1301_v61, %v1193_v26  ;;  %v3187_v26 = vld [vmem:[%s4126_s5 + $0x108] sm:$0xff]  ;;  %v3201_v61 = vld [vmem:[%s4126_s5 + $0x178] sm:$0xff] }
 0x7ab   :  { %1518 = vmatpush.bf16.msrb.mxu1 %v3187_v26 }
 0x7ac   :  { %v1310_v63 = vsel %vm152_vm3, %v1304_v62, 0.0 }
 0x7ad   :  { %1311 = vadd.xlane.f32.xlu2 %v1310_v63  ;;  %v3196_v63 = vld [vmem:[%s4126_s5 + $0x150] sm:$0xff] }
 0x7af   :  { %1519 = vmatpush.bf16.msrb.mxu1 %v3186_v33 }
 0x818   :  { %v1309_v0 = vpop.xlane.xlu1 %1308 }
 0x819   :  { %v1313_v1 = vmul.f32 %v1309_v0, %v3504_v29  ;;  %v3198_v0 = vld [vmem:[%s4126_s5 + $0x160] sm:$0xff] }
 0x81b   :  { %v3787_v2 = vsub.f32 %v1303_v58, %v1313_v1  ;;  %v3195_v58 = vld [vmem:[%s4126_s5 + $0x148] sm:$0xff]  ;;  %v3200_v1 = vld [vmem:[%s4126_s5 + $0x170] sm:$0xff] }
 0x81d   :  { %v1317_v3 = vmul.f32 %v3787_v2, %v3787_v2 }
 0x81f   :  { %v1319_v4 = vsel %vm152_vm3, %v1317_v3, 0.0 }
 0x820   :  { %v1312_v5 = vpop.xlane.xlu2 %1311  ;;  %1320 = vadd.xlane.f32.xlu0 %v1319_v4 }
 0x821   :  { %v1314_v6 = vmul.f32 %v1312_v5, %v3504_v29 }
 0x823   :  { %v3793_v7 = vsub.f32 %v1304_v62, %v1314_v6  ;;  %v3194_v62 = vld [vmem:[%s4126_s5 + $0x140] sm:$0xff] }
 0x825   :  { %v1318_v9 = vmul.f32 %v3793_v7, %v3793_v7 }
 0x827   :  { %v1322_v10 = vsel %vm152_vm3, %v1318_v9, 0.0  ;;  %v3248_v9 = vld [vmem:[%s4127_s6 + $0x10] ss:$0 sm:$0xff] }
 0x828   :  { %1323 = vadd.xlane.f32.xlu1 %v1322_v10 }
 0x893   :  { %v1321_v17 = vpop.xlane.xlu0 %1320 }
 0x894   :  { %v1325_v19 = vmul.f32 %v1321_v17, %v3504_v29 }
 0x896   :  { %v1327_v23 = vadd.f32 1e-12, %v1325_v19 }
 0x898   :  { %3311 = vrsqrt.f32 %v1327_v23  ;;  %vm1335_vm6 = vweird.f32 %v1327_v23 }
 0x89b   :  { %v1324_v25 = vpop.xlane.xlu1 %1323 }
 0x89c   :  { %v1326_v30 = vmul.f32 %v1324_v25, %v3504_v29 }
 0x89e   :  { %v3312_v37 = vpop.eup %3311  ;;  %v1328_v38 = vadd.f32 1e-12, %v1326_v30 }
 0x89f   :  { %v1330_v32 = vmul.f32 %v3312_v37, %v1327_v23  ;;  %vm1336_vm5 = vweird.f32 %v3312_v37  ;;  %v3251_v23 = vld [vmem:[%s4127_s6 + $0x12] ss:$0 sm:$0xff] }
 0x8a0   :  { %3313 = vrsqrt.f32 %v1328_v38  ;;  %vm1337_vm7 = vmor %vm1335_vm6, %vm1336_vm5  ;;  %vm1345_vm9 = vweird.f32 %v1328_v38 }
 0x8a1   :  { %v1331_v41 = vmul.f32 %v3312_v37, %v1330_v32 }
 0x8a3   :  { %v1332_v42 = vmul.f32 0.5, %v1331_v41 }
 0x8a5   :  { %v1333_v36 = vsub.f32 1.5, %v1332_v42 }
 0x8a6   :  { %v3314_v44 = vpop.eup %3313 }
 0x8a7   :  { %v1334_v45 = vmul.f32 %v3312_v37, %v1333_v36  ;;  %v1340_v46 = vmul.f32 %v3314_v44, %v1328_v38  ;;  %vm1346_vm8 = vweird.f32 %v3314_v44 }
 0x8a8   :  { %vm1347_vm10 = vmor %vm1345_vm9, %vm1346_vm8  ;;  %vm2511_vm8 = vcmask 1041409  }
 0x8a9   :  { %v1341_v47 = vmul.f32 %v3314_v44, %v1340_v46  ;;  %v1338_v48 = vsel %vm1337_vm7, %v3312_v37, %v1334_v45 }
 0x8aa   :  { %v1349_v52 = vmul.f32 %v1338_v48, %v3787_v2  ;;  %v3252_v48 = vld [vmem:[%s4127_s6 + $0x14] ss:$0 sm:$0xff] }
 0x8ab   :  { %v1342_v49 = vmul.f32 0.5, %v1341_v47 }
 0x8ac   :  { %v1352_v14 = vmul.f32 %v3242_v51, %v1349_v52 }
 0x8ad   :  { %v1343_v50 = vsub.f32 1.5, %v1342_v49 }
 0x8ae   :  { %v3856_v43 = vadd.f32 %v3243_v55, %v1352_v14 }
 0x8af   :  { %v1344_v53 = vmul.f32 %v3314_v44, %v1343_v50 }
 0x8b1   :  { %v1348_v54 = vsel %vm1347_vm10, %v3314_v44, %v1344_v53 }
 0x8b2   :  { %v1350_v56 = vmul.f32 %v1348_v54, %v3793_v7 }
 0x8b4   :  { %v1353_v35 = vmul.f32 %v3242_v51, %v1350_v56 }
 0x8b6   :  { %v3858_v57 = vadd.f32 %v3243_v55, %v1353_v35 }
 0x8b8   :  { %v1357_v15 = vpack.c.bf16 %v3858_v57, %v3856_v43 }
 0x8ba   :  { %2886 = vmatmul.msk.bf16.vlgmr.msra.gmra.mxu1 %vm152_vm3, %v1357_v15  ;;  %2899 = vmatmul.msk.bf16.vlgmr.msrb.gmra.mxu2 %vm152_vm3, %v1357_v15 }
 0x8bb   :  { %2912 = vmatmul.msk.bf16.vlgmr.msrb.gmra.mxu3 %vm152_vm3, %v1357_v15  ;;  %2925 = vmatmul.msk.bf16.vlgmr.msrb.gmra.mxu0 %vm152_vm3, %v1357_v15 }
 0x8bc   :  { %1650 = vmatpush.bf16.msra.mxu1 %v3195_v58  ;;  %1683 = vmatpush.bf16.msrb.mxu2 %v3197_v59 }
 0x8bd   :  { %1716 = vmatpush.bf16.msrb.mxu3 %v3199_v60  ;;  %1749 = vmatpush.bf16.msrb.mxu0 %v3201_v61  ;;  %v3254_v60 = vld [vmem:[%s4127_s6 + $0x15] ss:$0 sm:$0xff]  ;;  %v3247_v61 = vld [vmem:[%s4127_s6 + $0xe] ss:$0 sm:$0xff] }
 0x8c0   :  { %1651 = vmatpush.bf16.msra.mxu1 %v3194_v62  ;;  %1684 = vmatpush.bf16.msrb.mxu2 %v3196_v63 }
 0x8c1   :  { %1717 = vmatpush.bf16.msrb.mxu3 %v3198_v0  ;;  %1750 = vmatpush.bf16.msrb.mxu0 %v3200_v1  ;;  %v3255_v1 = vld [vmem:[%s4127_s6 + $0x16] ss:$0 sm:$0xff] }
 0x8ca   :  { %2938 = vmatmul.msk.bf16.vlgmr.msrb.gmra.mxu1 %vm152_vm3, %v1357_v15  ;;  %2951 = vmatmul.msk.bf16.vlgmr.msra.gmra.mxu2 %vm152_vm3, %v1357_v15 }
 0x8cb   :  { %2964 = vmatmul.msk.bf16.vlgmr.msra.gmra.mxu3 %vm152_vm3, %v1357_v15  ;;  %2977 = vmatmul.msk.bf16.vlgmr.msra.gmra.mxu0 %vm152_vm3, %v1357_v15 }
 0x8da   :  { %2990 = vmatmul.msk.bf16.vlgmr.msra.gmra.mxu1 %vm152_vm3, %v1357_v15  ;;  %3003 = vmatmul.msk.bf16.vlgmr.msrb.gmra.mxu2 %vm152_vm3, %v1357_v15 }
 0x8db   :  { %3016 = vmatmul.msk.bf16.vlgmr.msrb.gmra.mxu3 %vm152_vm3, %v1357_v15  ;;  %3029 = vmatmul.msk.bf16.vlgmr.msrb.gmra.mxu0 %vm152_vm3, %v1357_v15 }
 0x937   :  { %v1389_v2 = vpop.f32.mrf.mxu1 }
 0x938   :  { %v3898_v3 = vpop.f32.mrf.mxu0  ;;  %v1390_v28 = vadd.f32 %v3244_v21, %v1389_v2 }
 0x93a   :  { %v1757_v42 = vpack.c.bf16 %v1390_v28, %v1390_v28 }
 0x93d   :  { %v1422_v4 = vpop.f32.mrf.mxu2 }
 0x93e   :  { %v3900_v5 = vpop.f32.mrf.mxu3  ;;  %v1423_v46 = vadd.f32 %v3246_v34, %v1422_v4 }
 0x93f   :  { %v1391_v6 = vpop.f32.mrf.mxu1 }
 0x940   :  { %v3902_v7 = vpop.f32.mrf.mxu0  ;;  %v1392_v52 = vadd.f32 %v3244_v21, %v1391_v6  ;;  %v1759_v14 = vpack.c.bf16 %v1423_v46, %v1423_v46 }
 0x942   :  { %v1758_v62 = vpack.c.bf16 %v1392_v52, %v1392_v52 }
 0x945   :  { %v1424_v10 = vpop.f32.mrf.mxu2 }
 0x946   :  { %v3907_v11 = vpop.f32.mrf.mxu3  ;;  %v1425_v2 = vadd.f32 %v3246_v34, %v1424_v10  ;;  %v3245_v10 = vld [vmem:[%s4127_s6 + $0xf] ss:$0 sm:$0xff] }
 0x947   :  { %v1521_v12 = vpop.f32.mrf.mxu1 }
 0x948   :  { %v1522_v16 = vadd.f32 %v3248_v9, %v1521_v12  ;;  %v1620_v17 = vpop.f32.mrf.mxu0  ;;  %v3253_v12 = vld [vmem:[%s4127_s6 + $0x17] ss:$0 sm:$0xff]  ;;  %v1760_v21 = vpack.c.bf16 %v1425_v2, %v1425_v2 }
 0x949   :  { %v1621_v22 = vadd.f32 %v3249_v13, %v1620_v17  ;;  %v1456_v17 = vadd.f32 %v3247_v61, %v3900_v5  ;;  %v1489_v5 = vadd.f32 %v3245_v10, %v3898_v3 }
 0x94a   :  { %v1765_v19 = vpack.c.bf16 %v1522_v16, %v1522_v16 }
 0x94b   :  { %v1771_v30 = vpack.c.bf16 %v1621_v22, %v1621_v22  ;;  %v1761_v28 = vpack.c.bf16 %v1456_v17, %v1456_v17 }
 0x94c   :  { %v1777_v24 = vsel %vm634_vm11, %v1765_v19, 0 }
 0x94d   :  { %v1554_v25 = vpop.f32.mrf.mxu2  ;;  %1786 = vmatpush.bf16.xpose.msrb.mxu1 %v1777_v24  ;;  %v1891_v36 = vsel %vm634_vm11, %v1771_v30, 0 }
 0x94e   :  { %v1555_v26 = vadd.f32 %v3250_v20, %v1554_v25  ;;  %v1587_v27 = vpop.f32.mrf.mxu3 }
 0x94f   :  { %v1588_v31 = vadd.f32 %v3251_v23, %v1587_v27  ;;  %v1523_v33 = vpop.f32.mrf.mxu1 }
 0x950   :  { %v1767_v37 = vpack.c.bf16 %v1555_v26, %v1555_v26  ;;  %v1524_v38 = vadd.f32 %v3248_v9, %v1523_v33  ;;  %v1622_v39 = vpop.f32.mrf.mxu0 }
 0x951   :  { %v1769_v40 = vpack.c.bf16 %v1588_v31, %v1588_v31  ;;  %v1623_v45 = vadd.f32 %v3249_v13, %v1622_v39  ;;  %v1458_v39 = vadd.f32 %v3247_v61, %v3907_v11 }
 0x952   :  { %v1815_v32 = vsel %vm634_vm11, %v1767_v37, 0  ;;  %v1766_v41 = vpack.c.bf16 %v1524_v38, %v1524_v38 }
 0x953   :  { %v1853_v44 = vsel %vm634_vm11, %v1769_v40, 0  ;;  %1824 = vmatpush.bf16.xpose.msra.mxu3 %v1815_v32  ;;  %v1772_v53 = vpack.c.bf16 %v1623_v45, %v1623_v45  ;;  %v1762_v46 = vpack.c.bf16 %v1458_v39, %v1458_v39 }
 0x954   :  { %v1796_v47 = vsel %vm634_vm11, %v1766_v41, 0  ;;  %3030 = vmatmul.msk.bf16.vlgmr.msrb.gmra.mxu1 %vm634_vm11, %v1757_v42  ;;  %v1763_v41 = vpack.c.bf16 %v1489_v5, %v1489_v5 }
 0x955   :  { %1862 = vmatpush.bf16.xpose.msra.mxu1 %v1853_v44  ;;  %v1556_v49 = vpop.f32.mrf.mxu2  ;;  %1805 = vmatpush.bf16.xpose.msra.mxu2 %v1796_v47  ;;  %v1910_v63 = vsel %vm634_vm11, %v1772_v53, 0 }
 0x956   :  { %v1557_v50 = vadd.f32 %v3250_v20, %v1556_v49  ;;  %v1589_v51 = vpop.f32.mrf.mxu3 }
 0x957   :  { %v1590_v54 = vadd.f32 %v3251_v23, %v1589_v51  ;;  %v1653_v55 = vpop.f32.mrf.mxu1 }
 0x958   :  { %v1768_v56 = vpack.c.bf16 %v1557_v50, %v1557_v50  ;;  %v1654_v35 = vadd.f32 %v3252_v48, %v1653_v55  ;;  %v1752_v6 = vpop.f32.mrf.mxu0 }
 0x959   :  { %v1770_v15 = vpack.c.bf16 %v1590_v54, %v1590_v54  ;;  %v1753_v25 = vadd.f32 %v3253_v12, %v1752_v6 }
 0x95a   :  { %v1834_v58 = vsel %vm634_vm11, %v1768_v56, 0  ;;  %v2021_v59 = vpack.c.bf16 %v1654_v35, %v1654_v35  ;;  %3032 = vmatmul.msk.bf16.vlgmr.msra.gmra.mxu3 %vm634_vm11, %v1759_v14 }
 0x95b   :  { %1900 = vmatpush.bf16.xpose.msrb.mxu3 %v1891_v36  ;;  %v1872_v0 = vsel %vm634_vm11, %v1770_v15, 0  ;;  %1843 = vmatpush.bf16.xpose.msra.mxu0 %v1834_v58  ;;  %v2027_v34 = vpack.c.bf16 %v1753_v25, %v1753_v25 }
 0x95c   :  { %v2033_v4 = vsel %vm894_vm12, %v2021_v59, 0  ;;  %3031 = vmatmul.msk.bf16.vlgmr.msra.gmra.mxu2 %vm634_vm11, %v1758_v62 }
 0x95d   :  { %1881 = vmatpush.bf16.xpose.msrb.mxu2 %v1872_v0  ;;  %v1686_v9 = vpop.f32.mrf.mxu2  ;;  %2042 = vmatpush.bf16.msrb.mxu1 %v2033_v4  ;;  %v2147_v44 = vsel %vm894_vm12, %v2027_v34, 0 }
 0x95e   :  { %v1687_v13 = vadd.f32 %v3254_v60, %v1686_v9  ;;  %v1719_v16 = vpop.f32.mrf.mxu3 }
 0x95f   :  { %v1720_v19 = vadd.f32 %v3255_v1, %v1719_v16  ;;  %v1655_v20 = vpop.f32.mrf.mxu1 }
 0x960   :  { %v2023_v22 = vpack.c.bf16 %v1687_v13, %v1687_v13  ;;  %v1656_v23 = vadd.f32 %v3252_v48, %v1655_v20  ;;  %v1754_v40 = vpop.f32.mrf.mxu0  ;;  %v1491_v48 = vadd.f32 %v3245_v10, %v3902_v7 }
 0x961   :  { %v2025_v24 = vpack.c.bf16 %v1720_v19, %v1720_v19  ;;  %v1755_v3 = vadd.f32 %v3253_v12, %v1754_v40 }
 0x962   :  { %v2071_v26 = vsel %vm894_vm12, %v2023_v22, 0  ;;  %v2022_v27 = vpack.c.bf16 %v1656_v23, %v1656_v23  ;;  %3033 = vmatmul.msk.bf16.vlgmr.msra.gmra.mxu0 %vm634_vm11, %v1760_v21  ;;  %v1764_v49 = vpack.c.bf16 %v1491_v48, %v1491_v48 }
 0x963   :  { %1919 = vmatpush.bf16.xpose.msrb.mxu0 %v1910_v63  ;;  %v2109_v30 = vsel %vm894_vm12, %v2025_v24, 0  ;;  %2080 = vmatpush.bf16.msra.mxu3 %v2071_v26  ;;  %v2028_v11 = vpack.c.bf16 %v1755_v3, %v1755_v3 }
 0x964   :  { %v2052_v31 = vsel %vm894_vm12, %v2022_v27, 0  ;;  %3034 = vmatmul.msk.bf16.vlgmr.msra.gmra.mxu1 %vm634_vm11, %v1761_v28 }
 0x965   :  { %v1688_v33 = vpop.f32.mrf.mxu2  ;;  %2061 = vmatpush.bf16.msra.mxu2 %v2052_v31  ;;  %2118 = vmatpush.bf16.msra.mxu1 %v2109_v30  ;;  %v2166_v50 = vsel %vm894_vm12, %v2028_v11, 0 }
 0x966   :  { %v1689_v37 = vadd.f32 %v3254_v60, %v1688_v33  ;;  %v1721_v38 = vpop.f32.mrf.mxu3 }
 0x967   :  { %v1722_v32 = vadd.f32 %v3255_v1, %v1721_v38 }
 0x968   :  { %v2024_v42 = vpack.c.bf16 %v1689_v37, %v1689_v37 }
 0x969   :  { %v2026_v36 = vpack.c.bf16 %v1722_v32, %v1722_v32 }
 0x96a   :  { %v2090_v45 = vsel %vm894_vm12, %v2024_v42, 0  ;;  %3036 = vmatmul.msk.bf16.vlgmr.msrb.gmra.mxu3 %vm634_vm11, %v1763_v41 }
 0x96b   :  { %v2128_v47 = vsel %vm894_vm12, %v2026_v36, 0  ;;  %2156 = vmatpush.bf16.msrb.mxu3 %v2147_v44  ;;  %2099 = vmatpush.bf16.msra.mxu0 %v2090_v45 }
 0x96c   :  { %3035 = vmatmul.msk.bf16.vlgmr.msrb.gmra.mxu2 %vm634_vm11, %v1762_v46 }
 0x96d   :  { %2137 = vmatpush.bf16.msrb.mxu2 %v2128_v47 }
 0x972   :  { %3037 = vmatmul.msk.bf16.vlgmr.msrb.gmra.mxu0 %vm634_vm11, %v1764_v49 }
 0x973   :  { %2175 = vmatpush.bf16.msrb.mxu0 %v2166_v50 }
 0x9d1   :  { %v1788_v51 = vpop.f32.mrf.mxu1 }
 0x9d2   :  { %v1789_v52 = vadd.f32 %v1788_v51, %v3683_v8 }
 0x9d4   :  { %v1925_v53 = vsel %vm634_vm11, %v1789_v52, -inf }
 0x9d5   :  { %1926 = vmax.xlane.f32.xlu0 %v1925_v53 }
 0x9d9   :  { %v1790_v54 = vpop.f32.mrf.mxu1 }
 0x9dd   :  { %v1826_v55 = vpop.f32.mrf.mxu3 }
 0x9de   :  { %v1827_v7 = vadd.f32 %v1826_v55, %v3683_v8 }
 0x9df   :  { %v1845_v14 = vpop.f32.mrf.mxu0  ;;  %v1807_v56 = vpop.f32.mrf.mxu2 }
 0x9e0   :  { %v1931_v35 = vsel %vm634_vm11, %v1827_v7, -inf  ;;  %v1808_v15 = vadd.f32 %v1807_v56, %v3688_v18  ;;  %v1846_v62 = vadd.f32 %v1845_v14, %v3688_v18 }
 0x9e1   :  { %1932 = vmax.xlane.f32.xlu1 %v1931_v35  ;;  %v1864_v58 = vpop.f32.mrf.mxu1 }
 0x9e2   :  { %v1928_v59 = vsel %vm634_vm11, %v1808_v15, -inf  ;;  %v1865_v60 = vadd.f32 %v1864_v58, %v3683_v8  ;;  %v1934_v4 = vsel %vm634_vm11, %v1846_v62, -inf }
 0x9e3   :  { %1929 = vmax.xlane.f32.xlu2 %v1928_v59 }
 0x9e4   :  { %v1937_v1 = vsel %vm634_vm11, %v1865_v60, -inf }
 0x9e5   :  { %v1828_v61 = vpop.f32.mrf.mxu3 }
 0x9e7   :  { %v1847_v63 = vpop.f32.mrf.mxu0  ;;  %v1809_v0 = vpop.f32.mrf.mxu2 }
 0x9e9   :  { %1938 = vmax.xlane.f32.xlu1 %v1937_v1  ;;  %v1866_v2 = vpop.f32.mrf.mxu1 }
 0x9eb   :  { %1935 = vmax.xlane.f32.xlu2 %v1934_v4 }
 0x9ed   :  { %v1902_v6 = vpop.f32.mrf.mxu3 }
 0x9ee   :  { %v1903_v9 = vadd.f32 %v1902_v6, %v3683_v8 }
 0x9ef   :  { %v1921_v12 = vpop.f32.mrf.mxu0  ;;  %v1883_v13 = vpop.f32.mrf.mxu2 }
 0x9f0   :  { %v1884_v16 = vadd.f32 %v1883_v13, %v3688_v18  ;;  %v1943_v17 = vsel %vm634_vm11, %v1903_v9, -inf  ;;  %v1922_v10 = vadd.f32 %v1921_v12, %v3688_v18 }
 0x9f2   :  { %v1940_v19 = vsel %vm634_vm11, %v1884_v16, -inf  ;;  %v1946_v23 = vsel %vm634_vm11, %v1922_v10, -inf }
 0x9f3   :  { %1944 = vmax.xlane.f32.xlu2 %v1943_v17  ;;  %1941 = vmax.xlane.f32.xlu0 %v1940_v19 }
 0x9f5   :  { %v1904_v20 = vpop.f32.mrf.mxu3 }
 0x9f7   :  { %v1923_v21 = vpop.f32.mrf.mxu0  ;;  %v1885_v22 = vpop.f32.mrf.mxu2 }
 0x9fb   :  { %1947 = vmax.xlane.f32.xlu0 %v1946_v23 }
 0xa48   :  { %v1927_v24 = vpop.xlane.xlu0 %1926 }
 0xa49   :  { %v1949_v8 = vsub.f32 %v1789_v52, %v1927_v24 }
 0xa4b   :  { %v1957_v25 = vmul.f32 1.442695, %v1949_v8 }
 0xa4d   :  { %3315 = vpow2.f32 %v1957_v25 }
 0xa53   :  { %v3316_v26 = vpop.eup %3315 }
 0xa54   :  { %v1933_v27 = vpop.xlane.xlu1 %1932  ;;  %v1973_v30 = vsel %vm634_vm11, %v3316_v26, 0.0 }
 0xa55   :  { %v1951_v28 = vsub.f32 %v1827_v7, %v1933_v27  ;;  %1974 = vadd.xlane.f32.xlu2 %v1973_v30 }
 0xa56   :  { %v1930_v31 = vpop.xlane.xlu2 %1929 }
 0xa57   :  { %v1961_v5 = vmul.f32 1.442695, %v1951_v28  ;;  %v1950_v33 = vsub.f32 %v1808_v15, %v1930_v31 }
 0xa59   :  { %3317 = vpow2.f32 %v1961_v5  ;;  %v1959_v18 = vmul.f32 1.442695, %v1950_v33 }
 0xa5b   :  { %3319 = vpow2.f32 %v1959_v18 }
 0xa5c   :  { %v1939_v34 = vpop.xlane.xlu1 %1938 }
 0xa5d   :  { %v1953_v37 = vsub.f32 %v1865_v60, %v1939_v34  ;;  %v3046_v34 = vld [vmem:[%s4128_s7 + $0x10] sm:$0xf] }
 0xa5e   :  { %v1936_v40 = vpop.xlane.xlu2 %1935 }
 0xa5f   :  { %v3318_v38 = vpop.eup %3317  ;;  %v1965_v39 = vmul.f32 1.442695, %v1953_v37  ;;  %v1952_v32 = vsub.f32 %v1846_v62, %v1936_v40  ;;  %v2212_v37 = vsel %vm894_vm12, %v3046_v34, 0  ;;  %v3048_v40 = vld [vmem:[%s4128_s7 + $0x18] sm:$0xf] }
 0xa60   :  { %v1979_v41 = vsel %vm634_vm11, %v3318_v38, 0.0 }
 0xa61   :  { %3321 = vpow2.f32 %v1965_v39  ;;  %1980 = vadd.xlane.f32.xlu0 %v1979_v41  ;;  %v3320_v42 = vpop.eup %3319  ;;  %v1963_v36 = vmul.f32 1.442695, %v1952_v32  ;;  %v2233_v32 = vsel %vm894_vm12, %v3048_v40, 0 }
 0xa62   :  { %v1976_v44 = vsel %vm634_vm11, %v3320_v42, 0.0 }
 0xa63   :  { %3323 = vpow2.f32 %v1963_v36  ;;  %1977 = vadd.xlane.f32.xlu1 %v1976_v44 }
 0xa66   :  { %v1945_v45 = vpop.xlane.xlu2 %1944  ;;  %v1942_v46 = vpop.xlane.xlu0 %1941 }
 0xa67   :  { %v3322_v3 = vpop.eup %3321  ;;  %v1955_v47 = vsub.f32 %v1903_v9, %v1945_v45  ;;  %v1954_v48 = vsub.f32 %v1884_v16, %v1942_v46 }
 0xa68   :  { %v1985_v11 = vsel %vm634_vm11, %v3322_v3, 0.0 }
 0xa69   :  { %1986 = vadd.xlane.f32.xlu0 %v1985_v11  ;;  %v3324_v49 = vpop.eup %3323  ;;  %v1969_v50 = vmul.f32 1.442695, %v1955_v47  ;;  %v1967_v51 = vmul.f32 1.442695, %v1954_v48 }
 0xa6a   :  { %v1982_v52 = vsel %vm634_vm11, %v3324_v49, 0.0 }
 0xa6b   :  { %3325 = vpow2.f32 %v1969_v50  ;;  %1983 = vadd.xlane.f32.xlu1 %v1982_v52 }
 0xa6c   :  { %3327 = vpow2.f32 %v1967_v51 }
 0xa6e   :  { %v1948_v53 = vpop.xlane.xlu0 %1947 }
 0xa6f   :  { %v1956_v54 = vsub.f32 %v1922_v10, %v1948_v53 }
 0xa71   :  { %v3326_v55 = vpop.eup %3325  ;;  %v1971_v7 = vmul.f32 1.442695, %v1956_v54 }
 0xa72   :  { %v3328_v14 = vpop.eup %3327  ;;  %v1991_v56 = vsel %vm634_vm11, %v3326_v55, 0.0 }
 0xa73   :  { %3329 = vpow2.f32 %v1971_v7  ;;  %1992 = vadd.xlane.f32.xlu1 %v1991_v56  ;;  %v1988_v35 = vsel %vm634_vm11, %v3328_v14, 0.0 }
 0xa74   :  { %1989 = vadd.xlane.f32.xlu2 %v1988_v35 }
 0xa79   :  { %v3330_v15 = vpop.eup %3329 }
 0xa7a   :  { %v1994_v58 = vsel %vm634_vm11, %v3330_v15, 0.0 }
 0xa7c   :  { %1995 = vadd.xlane.f32.xlu2 %v1994_v58 }
 0xac8   :  { %v1975_v59 = vpop.xlane.xlu2 %1974 }
 0xac9   :  { %3331 = vrcp.f32 %v1975_v59 }
 0xacf   :  { %v3332_v60 = vpop.eup %3331 }
 0xad0   :  { %v2005_v61 = vmul.f32 %v3332_v60, %v3316_v26 }
 0xad2   :  { %v2013_v62 = vpack.c.bf16 %v2005_v61, %v2005_v61 }
 0xad4   :  { %v1981_v63 = vpop.xlane.xlu0 %1980  ;;  %3038 = vmatmul.msk.bf16.vlgmr.msrb.gmra.mxu1 %vm634_vm11, %v2013_v62 }
 0xad5   :  { %3333 = vrcp.f32 %v1981_v63 }
 0xad6   :  { %v1978_v0 = vpop.xlane.xlu1 %1977 }
 0xad7   :  { %3335 = vrcp.f32 %v1978_v0  ;;  %v3256_v0 = vld [vmem:[%s4129_s8 + $0x8] ss:$0 sm:$0xff] }
 0xadb   :  { %v3334_v1 = vpop.eup %3333 }
 0xadc   :  { %v2007_v2 = vmul.f32 %v3334_v1, %v3318_v38  ;;  %v1987_v4 = vpop.xlane.xlu0 %1986  ;;  %v3047_v38 = vld [vmem:[%s4128_s7 + $0x14] sm:$0xf] }
 0xadd   :  { %3337 = vrcp.f32 %v1987_v4  ;;  %v3336_v6 = vpop.eup %3335  ;;  %v2192_v39 = vsel %vm894_vm12, %v3047_v38, 0 }
 0xade   :  { %v2015_v9 = vpack.c.bf16 %v2007_v2, %v2007_v2  ;;  %v2006_v12 = vmul.f32 %v3336_v6, %v3320_v42  ;;  %v1984_v13 = vpop.xlane.xlu1 %1983  ;;  %2201 = vmatpush.bf16.msrb.mxu1 %v2192_v39  ;;  %v3049_v42 = vld [vmem:[%s4128_s7 + $0x1c] sm:$0xf] }
 0xadf   :  { %3339 = vrcp.f32 %v1984_v13  ;;  %v2256_v36 = vsel %vm894_vm12, %v3049_v42, 0 }
 0xae0   :  { %3040 = vmatmul.msk.bf16.vlgmr.msra.gmra.mxu3 %vm634_vm11, %v2015_v9  ;;  %v2014_v16 = vpack.c.bf16 %v2006_v12, %v2006_v12 }
 0xae1   :  { %2242 = vmatpush.bf16.msra.mxu3 %v2233_v32 }
 0xae2   :  { %3039 = vmatmul.msk.bf16.vlgmr.msra.gmra.mxu2 %vm634_vm11, %v2014_v16 }
 0xae3   :  { %v3338_v17 = vpop.eup %3337  ;;  %2221 = vmatpush.bf16.msra.mxu2 %v2212_v37 }
 0xae4   :  { %v2009_v19 = vmul.f32 %v3338_v17, %v3322_v3 }
 0xae5   :  { %v3340_v20 = vpop.eup %3339 }
 0xae6   :  { %v2017_v10 = vpack.c.bf16 %v2009_v19, %v2009_v19  ;;  %v2008_v21 = vmul.f32 %v3340_v20, %v3324_v49  ;;  %v1993_v22 = vpop.xlane.xlu1 %1992 }
 0xae7   :  { %3341 = vrcp.f32 %v1993_v22  ;;  %v1990_v23 = vpop.xlane.xlu2 %1989 }
 0xae8   :  { %3042 = vmatmul.msk.bf16.vlgmr.msra.gmra.mxu1 %vm634_vm11, %v2017_v10  ;;  %v2016_v24 = vpack.c.bf16 %v2008_v21, %v2008_v21  ;;  %3343 = vrcp.f32 %v1990_v23 }
 0xaea   :  { %3041 = vmatmul.msk.bf16.vlgmr.msra.gmra.mxu0 %vm634_vm11, %v2016_v24 }
 0xaeb   :  { %2265 = vmatpush.bf16.msra.mxu0 %v2256_v36 }
 0xaed   :  { %v3342_v8 = vpop.eup %3341 }
 0xaee   :  { %v3344_v25 = vpop.eup %3343  ;;  %v2011_v26 = vmul.f32 %v3342_v8, %v3326_v55 }
 0xaef   :  { %v2010_v27 = vmul.f32 %v3344_v25, %v3328_v14  ;;  %v1996_v28 = vpop.xlane.xlu2 %1995 }
 0xaf0   :  { %v2019_v30 = vpack.c.bf16 %v2011_v26, %v2011_v26  ;;  %3345 = vrcp.f32 %v1996_v28 }
 0xaf1   :  { %v2018_v5 = vpack.c.bf16 %v2010_v27, %v2010_v27 }
 0xaf2   :  { %3044 = vmatmul.msk.bf16.vlgmr.msrb.gmra.mxu3 %vm634_vm11, %v2019_v30 }
 0xaf3   :  { %3043 = vmatmul.msk.bf16.vlgmr.msrb.gmra.mxu2 %vm634_vm11, %v2018_v5 }
 0xaf6   :  { %v3346_v31 = vpop.eup %3345 }
 0xaf7   :  { %v2012_v33 = vmul.f32 %v3346_v31, %v3330_v15 }
 0xaf9   :  { %v2020_v18 = vpack.c.bf16 %v2012_v33, %v2012_v33 }
 0xafb   :  { %3045 = vmatmul.msk.bf16.vlgmr.msrb.gmra.mxu0 %vm634_vm11, %v2020_v18  ;;  %v3202_v18 = vld [vmem:[%s4130_s9 + $0x10] sm:$0xff] }
 0xb51   :  { %v2044_v41 = vpop.f32.mrf.mxu1 }
 0xb59   :  { %v2046_v44 = vpop.f32.mrf.mxu1 }
 0xb63   :  { %v2082_v3 = vpop.f32.mrf.mxu3 }
 0xb65   :  { %v2120_v45 = vpop.f32.mrf.mxu1  ;;  %v2063_v46 = vpop.f32.mrf.mxu2 }
 0xb66   :  { %v2186_v47 = vpack.c.bf16 %v2063_v46, %v2044_v41 }
 0xb67   :  { %v2101_v48 = vpop.f32.mrf.mxu0 }
 0xb68   :  { %v2187_v11 = vpack.c.bf16 %v2101_v48, %v2082_v3  ;;  %3051 = vmatmul.msk.bf16.vlgmr.msra.gmra.mxu2 %vm634_vm11, %v2186_v47 }
 0xb6a   :  { %3050 = vmatmul.msk.bf16.vlgmr.msrb.gmra.mxu1 %vm634_vm11, %v2187_v11 }
 0xb6b   :  { %v2084_v49 = vpop.f32.mrf.mxu3 }
 0xb6c   :  { %v3257_v49 = vld [vmem:[%s4129_s8 + $0x9] ss:$0 sm:$0xff] }
 0xb6d   :  { %v2122_v50 = vpop.f32.mrf.mxu1  ;;  %v2065_v51 = vpop.f32.mrf.mxu2 }
 0xb6f   :  { %v2103_v52 = vpop.f32.mrf.mxu0 }
 0xb75   :  { %v2158_v53 = vpop.f32.mrf.mxu3 }
 0xb76   :  { %v2139_v54 = vpop.f32.mrf.mxu2 }
 0xb77   :  { %v2228_v55 = vpack.c.bf16 %v2139_v54, %v2120_v45 }
 0xb78   :  { %v2177_v7 = vpop.f32.mrf.mxu0 }
 0xb79   :  { %v2251_v14 = vpack.c.bf16 %v2177_v7, %v2158_v53  ;;  %3052 = vmatmul.msk.bf16.vlgmr.msra.gmra.mxu3 %vm634_vm11, %v2228_v55  ;;  %v3258_v53 = vld [vmem:[%s4129_s8 + $0xa] ss:$0 sm:$0xff] }
 0xb7b   :  { %3053 = vmatmul.msk.bf16.vlgmr.msra.gmra.mxu0 %vm634_vm11, %v2251_v14 }
 0xb7d   :  { %v2160_v56 = vpop.f32.mrf.mxu3 }
 0xb7e   :  { %v2141_v35 = vpop.f32.mrf.mxu2 }
 0xb80   :  { %v2179_v15 = vpop.f32.mrf.mxu0 }
 0xb81   :  { %v3207_v15 = vld [vmem:[%s4132_s11 + $0x38] sm:$0xff] }
 0xb82   :  { %2434 = vmatpush.bf16.msrb.mxu2 %v3207_v15 }
 0xbe7   :  { %v2203_v59 = vpop.f32.mrf.mxu1 }
 0xbeb   :  { %v2223_v58 = vpop.f32.mrf.mxu2 }
 0xbec   :  { %v2224_v60 = vadd.f32 %v2223_v58, %v2203_v59  ;;  %v3206_v58 = vld [vmem:[%s4132_s11 + $0x30] sm:$0xff]  ;;  %v3205_v59 = vld [vmem:[%s4132_s11 + $0x28] sm:$0xff] }
 0xbed   :  { %2435 = vmatpush.bf16.msrb.mxu2 %v3206_v58  ;;  %v3215_v58 = vld [vmem:[%s4134_s13 + $0x28] sm:$0xff] }
 0xbef   :  { %v2205_v6 = vpop.f32.mrf.mxu1 }
 0xbf1   :  { %2436 = vmatpush.bf16.msrb.mxu2 %v3205_v59 }
 0xbf3   :  { %v2225_v2 = vpop.f32.mrf.mxu2 }
 0xbf4   :  { %v2226_v9 = vadd.f32 %v2225_v2, %v2205_v6 }
 0xbf8   :  { %v2267_v61 = vpop.f32.mrf.mxu0 }
 0xbfc   :  { %v2244_v62 = vpop.f32.mrf.mxu3 }
 0xbfd   :  { %v2249_v63 = vadd.f32 %v2244_v62, %v2224_v60  ;;  %v3259_v60 = vld [vmem:[%s4131_s10 + $0x1] ss:$0 sm:$0xff] }
 0xbff   :  { %v2272_v1 = vadd.f32 %v2267_v61, %v2249_v63  ;;  %v3204_v61 = vld [vmem:[%s4132_s11 + $0x20] sm:$0xff] }
 0xc00   :  { %v2269_v19 = vpop.f32.mrf.mxu0  ;;  %2437 = vmatpush.bf16.msrb.mxu2 %v3204_v61 }
 0xc01   :  { %v2277_v4 = vadd.f32 %v3256_v0, %v2272_v1 }
 0xc03   :  { %v2279_v12 = vadd.f32 %v2277_v4, %v3856_v43 }
 0xc04   :  { %v2246_v13 = vpop.f32.mrf.mxu3 }
 0xc05   :  { %v2250_v16 = vadd.f32 %v2246_v13, %v2226_v9  ;;  %v2283_v17 = vsel %vm152_vm3, %v2279_v12, 0.0 }
 0xc06   :  { %2284 = vadd.xlane.f32.xlu0 %v2283_v17 }
 0xc07   :  { %v2273_v20 = vadd.f32 %v2269_v19, %v2250_v16 }
 0xc09   :  { %v2278_v10 = vadd.f32 %v3256_v0, %v2273_v20 }
 0xc0b   :  { %v2280_v21 = vadd.f32 %v2278_v10, %v3858_v57  ;;  %v3203_v57 = vld [vmem:[%s4130_s9 + $0x18] sm:$0xff] }
 0xc0c   :  { %2365 = vmatpush.bf16.msra.mxu1 %v3203_v57 }
 0xc0d   :  { %v2286_v22 = vsel %vm152_vm3, %v2280_v21, 0.0 }
 0xc0e   :  { %2287 = vadd.xlane.f32.xlu1 %v2286_v22 }
 0xc10   :  { %2366 = vmatpush.bf16.msra.mxu1 %v3202_v18 }
 0xc79   :  { %v2285_v23 = vpop.xlane.xlu0 %2284 }
 0xc7a   :  { %v2289_v24 = vmul.f32 %v2285_v23, %v3504_v29 }
 0xc7c   :  { %v2291_v8 = vsub.f32 %v2279_v12, %v2289_v24 }
 0xc7e   :  { %v2293_v25 = vmul.f32 %v2291_v8, %v2291_v8 }
 0xc80   :  { %v2295_v43 = vsel %vm152_vm3, %v2293_v25, 0.0 }
 0xc81   :  { %2296 = vadd.xlane.f32.xlu2 %v2295_v43  ;;  %v2288_v26 = vpop.xlane.xlu1 %2287 }
 0xc82   :  { %v2290_v27 = vmul.f32 %v2288_v26, %v3504_v29 }
 0xc84   :  { %v2292_v28 = vsub.f32 %v2280_v21, %v2290_v27  ;;  %v3260_v27 = vld [vmem:[%s4129_s8 + $0xb] ss:$0 sm:$0xff] }
 0xc86   :  { %v2294_v30 = vmul.f32 %v2292_v28, %v2292_v28 }
 0xc88   :  { %v2298_v5 = vsel %vm152_vm3, %v2294_v30, 0.0 }
 0xc89   :  { %2299 = vadd.xlane.f32.xlu0 %v2298_v5 }
 0xcf4   :  { %v2297_v31 = vpop.xlane.xlu2 %2296 }
 0xcf5   :  { %v2301_v33 = vmul.f32 %v2297_v31, %v3504_v29 }
 0xcf7   :  { %v2303_v34 = vadd.f32 1e-12, %v2301_v33 }
 0xcf9   :  { %3347 = vrsqrt.f32 %v2303_v34  ;;  %vm2311_vm12 = vweird.f32 %v2303_v34 }
 0xcfc   :  { %v2300_v37 = vpop.xlane.xlu0 %2299 }
 0xcfd   :  { %v2302_v38 = vmul.f32 %v2300_v37, %v3504_v29 }
 0xcff   :  { %v3348_v39 = vpop.eup %3347  ;;  %v2304_v40 = vadd.f32 1e-12, %v2302_v38 }
 0xd00   :  { %v2306_v32 = vmul.f32 %v3348_v39, %v2303_v34  ;;  %vm2312_vm11 = vweird.f32 %v3348_v39 }
 0xd01   :  { %3349 = vrsqrt.f32 %v2304_v40  ;;  %vm2313_vm13 = vmor %vm2311_vm12, %vm2312_vm11  ;;  %vm2321_vm15 = vweird.f32 %v2304_v40 }
 0xd02   :  { %v2307_v41 = vmul.f32 %v3348_v39, %v2306_v32 }
 0xd04   :  { %v2308_v42 = vmul.f32 0.5, %v2307_v41 }
 0xd06   :  { %v2309_v36 = vsub.f32 1.5, %v2308_v42 }
 0xd07   :  { %v3350_v44 = vpop.eup %3349 }
 0xd08   :  { %v2310_v3 = vmul.f32 %v3348_v39, %v2309_v36  ;;  %v2316_v45 = vmul.f32 %v3350_v44, %v2304_v40  ;;  %vm2322_vm14 = vweird.f32 %v3350_v44 }
 0xd09   :  { %vm2323_vm0 = vmor %vm2321_vm15, %vm2322_vm14 }
 0xd0a   :  { %v2317_v46 = vmul.f32 %v3350_v44, %v2316_v45  ;;  %v2314_v47 = vsel %vm2313_vm13, %v3348_v39, %v2310_v3 }
 0xd0b   :  { %v2325_v50 = vmul.f32 %v2314_v47, %v2291_v8 }
 0xd0c   :  { %v2318_v48 = vmul.f32 0.5, %v2317_v46 }
 0xd0d   :  { %v2328_v54 = vmul.f32 %v3257_v49, %v2325_v50  ;;  %v3208_v50 = vld [vmem:[%s4133_s12] sm:$0xff] }
 0xd0e   :  { %v2319_v11 = vsub.f32 1.5, %v2318_v48  ;;  %v3209_v48 = vld [vmem:[%s4133_s12 + $0x8] sm:$0xff] }
 0xd0f   :  { %v2331_v14 = vadd.f32 %v3258_v53, %v2328_v54  ;;  %2535 = vmatpush.bf16.msrb.mxu3 %v3209_v48 }
 0xd10   :  { %v2320_v51 = vmul.f32 %v3350_v44, %v2319_v11 }
 0xd12   :  { %v2324_v52 = vsel %vm2323_vm0, %v3350_v44, %v2320_v51 }
 0xd13   :  { %v2326_v55 = vmul.f32 %v2324_v52, %v2292_v28  ;;  %2536 = vmatpush.bf16.msrb.mxu3 %v3208_v50 }
 0xd15   :  { %v2329_v7 = vmul.f32 %v3257_v49, %v2326_v55  ;;  %v3217_v55 = vld [vmem:[%s4134_s13 + $0x38] sm:$0xff] }
 0xd16   :  { %2610 = vmatpush.bf16.msrb.mxu0 %v3217_v55 }
 0xd17   :  { %v2332_v56 = vadd.f32 %v3258_v53, %v2329_v7 }
 0xd19   :  { %v2333_v35 = vpack.c.bf16 %v2332_v56, %v2331_v14 }
 0xd1b   :  { %3070 = vmatmul.msk.bf16.vlgmr.msra.gmra.mxu1 %vm152_vm3, %v2333_v35 }
 0xd98   :  { %v2368_v62 = vpop.f32.mrf.mxu1 }
 0xd99   :  { %v2369_v63 = vadd.f32 %v3259_v60, %v2368_v62  ;;  %v3214_v62 = vld [vmem:[%s4134_s13 + $0x20] sm:$0xff] }
 0xd9b   :  { %v2375_v0 = vmul.f32 0.044715, %v2369_v63  ;;  %v2373_v23 = vmul.f32 0.5, %v2369_v63 }
 0xd9d   :  { %v2377_v1 = vmul.f32 %v2375_v0, %v2369_v63 }
 0xd9f   :  { %v2379_v2 = vmul.f32 %v2377_v1, %v2369_v63 }
 0xda0   :  { %v2370_v4 = vpop.f32.mrf.mxu1 }
 0xda1   :  { %v2381_v6 = vadd.f32 %v2379_v2, %v2369_v63  ;;  %v2371_v9 = vadd.f32 %v3259_v60, %v2370_v4  ;;  %v3261_v63 = vld [vmem:[%s4129_s8 + $0xc] ss:$0 sm:$0xff]  ;;  %v3213_v4 = vld [vmem:[%s4134_s13 + $0x18] sm:$0xff] }
 0xda3   :  { %v2376_v12 = vmul.f32 0.044715, %v2371_v9  ;;  %v2383_v13 = vmul.f32 0.7978846, %v2381_v6  ;;  %v2374_v24 = vmul.f32 0.5, %v2371_v9 }
 0xda4   :  { %v3262_v6 = vld [vmem:[%s4129_s8 + $0xd] ss:$0 sm:$0xff] }
 0xda5   :  { %v2378_v16 = vmul.f32 %v2376_v12, %v2371_v9  ;;  %3351 = vtanh.f32 %v2383_v13 }
 0xda7   :  { %v2380_v17 = vmul.f32 %v2378_v16, %v2371_v9  ;;  %v3212_v16 = vld [vmem:[%s4134_s13 + $0x10] sm:$0xff] }
 0xda9   :  { %v2382_v19 = vadd.f32 %v2380_v17, %v2371_v9 }
 0xdab   :  { %v2384_v20 = vmul.f32 0.7978846, %v2382_v19  ;;  %v3352_v10 = vpop.eup %3351 }
 0xdac   :  { %v2387_v21 = vadd.f32 1.0, %v3352_v10 }
 0xdad   :  { %3353 = vtanh.f32 %v2384_v20 }
 0xdae   :  { %v2389_v25 = vmul.f32 %v2387_v21, %v2373_v23 }
 0xdb3   :  { %v3354_v22 = vpop.eup %3353 }
 0xdb4   :  { %v2388_v8 = vadd.f32 1.0, %v3354_v22 }
 0xdb6   :  { %v2390_v43 = vmul.f32 %v2388_v8, %v2374_v24 }
 0xdb8   :  { %v2391_v26 = vpack.c.bf16 %v2390_v43, %v2389_v25  ;;  %v3211_v43 = vld [vmem:[%s4134_s13 + $0x8] sm:$0xff] }
 0xdba   :  { %3096 = vmatmul.msk.bf16.vlgmr.msrb.gmra.mxu2 %vm1285_vm4, %v2391_v26  ;;  %v3210_v26 = vld [vmem:[%s4134_s13] sm:$0xff] }
 0xe3d   :  { %v2439_v28 = vpop.f32.mrf.mxu2 }
 0xe3e   :  { %v2440_v30 = vadd.f32 %v3260_v27, %v2439_v28 }
 0xe40   :  { %v2444_v5 = vadd.f32 %v2440_v30, %v2331_v14 }
 0xe42   :  { %v2448_v57 = vsel %vm152_vm3, %v2444_v5, 0.0 }
 0xe43   :  { %2449 = vadd.xlane.f32.xlu2 %v2448_v57 }
 0xe45   :  { %v2441_v31 = vpop.f32.mrf.mxu2 }
 0xe46   :  { %v2442_v33 = vadd.f32 %v3260_v27, %v2441_v31  ;;  %v3263_v27 = vld [vmem:[%s4135_s14] ss:$0 sm:$0xff] }
 0xe48   :  { %v2445_v18 = vadd.f32 %v2442_v33, %v2332_v56  ;;  %v3264_v33 = vld [vmem:[%s4135_s14 + $0x1] ss:$0 sm:$0xff] }
 0xe4a   :  { %v2451_v34 = vsel %vm152_vm3, %v2445_v18, 0.0 }
 0xe4b   :  { %2452 = vadd.xlane.f32.xlu1 %v2451_v34 }
 0xeb6   :  { %v2450_v37 = vpop.xlane.xlu2 %2449 }
 0xeb7   :  { %v2454_v38 = vmul.f32 %v2450_v37, %v3504_v29 }
 0xeb9   :  { %v2456_v39 = vsub.f32 %v2444_v5, %v2454_v38 }
 0xebb   :  { %v2458_v40 = vmul.f32 %v2456_v39, %v2456_v39 }
 0xebd   :  { %v2460_v32 = vsel %vm152_vm3, %v2458_v40, 0.0 }
 0xebe   :  { %v2453_v41 = vpop.xlane.xlu1 %2452  ;;  %2461 = vadd.xlane.f32.xlu1 %v2460_v32 }
 0xebf   :  { %v2455_v42 = vmul.f32 %v2453_v41, %v3504_v29 }
 0xec1   :  { %v2457_v36 = vsub.f32 %v2445_v18, %v2455_v42 }
 0xec3   :  { %v2459_v44 = vmul.f32 %v2457_v36, %v2457_v36 }
 0xec5   :  { %v2463_v3 = vsel %vm152_vm3, %v2459_v44, 0.0 }
 0xec6   :  { %2464 = vadd.xlane.f32.xlu0 %v2463_v3 }
 0xf31   :  { %v2462_v45 = vpop.xlane.xlu1 %2461 }
 0xf32   :  { %v2466_v46 = vmul.f32 %v2462_v45, %v3504_v29 }
 0xf34   :  { %v2468_v47 = vadd.f32 1e-12, %v2466_v46 }
 0xf36   :  { %3355 = vrsqrt.f32 %v2468_v47  ;;  %vm2476_vm2 = vweird.f32 %v2468_v47 }
 0xf39   :  { %v2465_v11 = vpop.xlane.xlu0 %2464 }
 0xf3a   :  { %v2467_v49 = vmul.f32 %v2465_v11, %v3504_v29  ;;  %v3216_v29 = vld [vmem:[%s4134_s13 + $0x30] sm:$0xff]  ;;  %s2631_s13 = sshll.u32 %s4136_s15, 4  ;;  %s2632_s13 = int_to_ptr.hbm [resolvable:$true] %s2631_s13 }
 0xf3b   :  { %2611 = vmatpush.bf16.msrb.mxu0 %v3216_v29 }
 0xf3c   :  { %v3356_v51 = vpop.eup %3355  ;;  %v2469_v52 = vadd.f32 1e-12, %v2467_v49 }
 0xf3d   :  { %v2471_v53 = vmul.f32 %v3356_v51, %v2468_v47  ;;  %vm2477_vm1 = vweird.f32 %v3356_v51 }
 0xf3e   :  { %3357 = vrsqrt.f32 %v2469_v52  ;;  %vm2478_vm4 = vmor %vm2476_vm2, %vm2477_vm1  ;;  %vm2486_vm6 = vweird.f32 %v2469_v52 }
 0xf3f   :  { %v2472_v54 = vmul.f32 %v3356_v51, %v2471_v53  ;;  %2612 = vmatpush.bf16.msrb.mxu0 %v3215_v58 }
 0xf41   :  { %v2473_v7 = vmul.f32 0.5, %v2472_v54 }
 0xf43   :  { %v2474_v14 = vsub.f32 1.5, %v2473_v7  ;;  %2613 = vmatpush.bf16.msrb.mxu0 %v3214_v62 }
 0xf44   :  { %v3358_v56 = vpop.eup %3357 }
 0xf45   :  { %v2475_v35 = vmul.f32 %v3356_v51, %v2474_v14  ;;  %v2481_v15 = vmul.f32 %v3358_v56, %v2469_v52  ;;  %vm2487_vm5 = vweird.f32 %v3358_v56 }
 0xf46   :  { %vm2488_vm7 = vmor %vm2486_vm6, %vm2487_vm5 }
 0xf47   :  { %v2479_v59 = vsel %vm2478_vm4, %v3356_v51, %v2475_v35  ;;  %v2482_v60 = vmul.f32 %v3358_v56, %v2481_v15  ;;  %2614 = vmatpush.bf16.msrb.mxu0 %v3213_v4 }
 0xf48   :  { %v2490_v0 = vmul.f32 %v2479_v59, %v2456_v39 }
 0xf49   :  { %v2483_v61 = vmul.f32 0.5, %v2482_v60 }
 0xf4a   :  { %v2493_v9 = vmul.f32 %v3261_v63, %v2490_v0 }
 0xf4b   :  { %v2484_v1 = vsub.f32 1.5, %v2483_v61  ;;  %2615 = vmatpush.bf16.msrb.mxu0 %v3212_v16 }
 0xf4c   :  { %v2496_v17 = vadd.f32 %v3262_v6, %v2493_v9 }
 0xf4d   :  { %v2485_v2 = vmul.f32 %v3358_v56, %v2484_v1 }
 0xf4e   :  { %v2498_v10 = vpack.c.bf16 %v2496_v17, %v2496_v17 }
 0xf4f   :  { %v2489_v12 = vsel %vm2488_vm7, %v3358_v56, %v2485_v2  ;;  %2616 = vmatpush.bf16.msrb.mxu0 %v3211_v43 }
 0xf50   :  { %v2491_v13 = vmul.f32 %v2489_v12, %v2457_v36  ;;  %v2508_v23 = vunpack.c.l.b16 %v2498_v10 }
 0xf52   :  { %v2494_v19 = vmul.f32 %v3261_v63, %v2491_v13 }
 0xf53   :  { %2617 = vmatpush.bf16.msrb.mxu0 %v3210_v26 }
 0xf54   :  { %v2497_v20 = vadd.f32 %v3262_v6, %v2494_v19 }
 0xf56   :  { %v2499_v21 = vpack.c.bf16 %v2497_v20, %v2497_v20 }
 0xf58   :  { %v2509_v22 = vunpack.c.l.b16 %v2499_v21 }
 0xf5a   :  { %v2510_v24 = vrot.slane %v2509_v22, 7 }
 0xf5c   :  { %v2512_v8 = vsel %vm2511_vm8, %v2510_v24, %v2508_v23 }
 0xf5d   :  { %v2513_v25 = vpack.c.b16 %v2512_v8, %v2512_v8 }
 0xf5f   :  { %3107 = vmatmul.msk.bf16.vlgmr.msrb.gmra.mxu3 %vm152_vm3, %v2513_v25 }
 0xfe2   :  { %v2538_v28 = vpop.f32.mrf.mxu3 }
 0xfe3   :  { %v2539_v30 = vadd.f32 %v3263_v27, %v2538_v28 }
 0xfe5   :  { %v2542_v5 = vmax.f32 %v2539_v30, 0.0 }
 0xfe7   :  { %v2543_v57 = vpack.c.bf16 %v2542_v5, %v2542_v5 }
 0xfe9   :  { %2618 = vmatmul.bf16.vlgmr.msrb.gmra.mxu0 %v2543_v57 }
 0xfea   :  { %v2540_v31 = vpop.f32.mrf.mxu3 }
0x1066   :  { %v2619_v18 = vpop.f32.mrf.mxu0 }
0x1067   :  { %v2620_v34 = vadd.f32 %v3264_v33, %v2619_v18 }
0x1069   :  { %2623 = vst [vmem:[#allocation2] sm:$0x3] %v2620_v34 }
0x106a   :  { %2634 = dma.vmem_to_hbm [thread:$0]  %s2630_s17, 32, %s2632_s13, [#allocation3]  }
0x106e   :  { %v2621_v37 = vpop.f32.mrf.mxu0 }
0x106f   :  { %3383 = dma.done.wait [#allocation3], 32  }
0x1070   :  { %3384 = vsyncadd [#allocation3], 4294967264 }
0x1071   :  { %2639 = vsyncpa [#allocation3], 1 }

</bundles_post_ra>
